<compile_context>
chip_gen: v5e
topology: v5e:2x2
jax: 0.10.0
libtpu: 0.0.40
codegen_flags: <defaults>
</compile_context>

<pallas_src>
import math
import functools

import jax
import jax.numpy as jnp
from jax import lax
from jax.experimental import pallas as pl
from jax.experimental.pallas import tpu as pltpu


# ----------------------------------------------------------------------------
# Kernel
# ----------------------------------------------------------------------------
def _sdpa_kernel(q_ref, k_ref, v_ref, o_ref, m_sc, l_sc, acc_sc, q_sc,
                 *, scale, mxu_dtype):
    # q_ref: (1, tq, dk), k_ref: (1, tk, dk), v_ref: (1, tk, dv)
    # o_ref: (1, tq, dv)
    # scratch: m_sc (tq,1) f32, l_sc (tq,1) f32, acc_sc (tq,dv) f32,
    #          q_sc (tq,dk) mxu_dtype (scaled q, hoisted out of the kv loop)
    ki = pl.program_id(2)

    @pl.when(ki == 0)
    def _init():
        m_sc[...] = jnp.full(m_sc.shape, -jnp.inf, dtype=m_sc.dtype)
        l_sc[...] = jnp.zeros(l_sc.shape, dtype=l_sc.dtype)
        acc_sc[...] = jnp.zeros(acc_sc.shape, dtype=acc_sc.dtype)
        # q block is resident across ki: scale + cast once per q tile.
        q_sc[...] = (q_ref[0].astype(jnp.float32) * scale).astype(q_sc.dtype)

    k = k_ref[0].astype(mxu_dtype)           # (tk, dk) bf16 feed to the MXU

    # q @ k^T without an explicit transpose: contract last dims of both.
    s = lax.dot_general(
        q_sc[...], k,
        dimension_numbers=(((1,), (1,)), ((), ())),
        preferred_element_type=jnp.float32,
    )                                        # (tq, tk) f32

    # Online softmax; all statistics kept in f32 (v5e VPU/EUP have no bf16).
    m_prev = m_sc[...]                       # (tq, 1)
    m_new = jnp.maximum(m_prev, s.max(axis=-1, keepdims=True))
    alpha = jnp.exp(m_prev - m_new)          # rescale factor for old stats
    p = jnp.exp(s - m_new)                   # (tq, tk) f32

    l_sc[...] = alpha * l_sc[...] + p.sum(axis=-1, keepdims=True)
    acc_sc[...] = alpha * acc_sc[...] + jnp.dot(
        p.astype(mxu_dtype), v_ref[0].astype(mxu_dtype),
        preferred_element_type=jnp.float32)
    m_sc[...] = m_new

    @pl.when(ki == pl.num_programs(2) - 1)
    def _finalize():
        # Exact reciprocal: once per q tile, so approx=True buys nothing.
        inv_l = pl.reciprocal(l_sc[...], approx=False)
        o_ref[0] = (acc_sc[...] * inv_l).astype(o_ref.dtype)


# ----------------------------------------------------------------------------
# Wrapper
# ----------------------------------------------------------------------------
def scaled_dot_product_attention(q, k, v, *, block_q=512, block_k=512,
                                 mxu_dtype=jnp.bfloat16):
    """q: (B, Sq, dk), k: (B, Sk, dk), v: (B, Sk, dv) -> (B, Sq, dv)."""
    B, Sq, dk = q.shape
    Bk, Sk, dk2 = k.shape
    Bv, Skv, dv = v.shape
    assert B == Bk == Bv and dk == dk2 and Sk == Skv

    tq = min(block_q, Sq)
    tk = min(block_k, Sk)
    # v7x has 2 TensorCores and shards the "parallel" grid axes across them:
    # keep B * (Sq // tq) >= 2 programs when possible so neither TC idles.
    # (No-op on single-TC v5e / v6e and whenever B >= 2.)
    while B * (Sq // tq) < 2 and tq > 128 and Sq % (tq // 2) == 0:
        tq //= 2
    # TODO(synk): no masking/padding path for ragged sequence lengths.
    assert Sq % tq == 0 and Sk % tk == 0, "seq lengths must be multiples of tiles"

    scale = 1.0 / math.sqrt(dk)
    grid = (B, Sq // tq, Sk // tk)
    q_tiles = Sq // tq
    kv_tiles = Sk // tk

    itemsize = jnp.dtype(q.dtype).itemsize
    cost = pl.CostEstimate(
        flops=2 * B * Sq * Sk * (dk + dv),
        transcendentals=B * Sq * (Sk + kv_tiles),        # p exps + alpha exps
        bytes_accessed=(q.size                           # q read once
                        + (k.size + v.size) * q_tiles    # K/V re-streamed per q tile
                        + B * Sq * dv) * itemsize,       # output written once
    )

    return pl.pallas_call(
        functools.partial(_sdpa_kernel, scale=scale, mxu_dtype=mxu_dtype),
        out_shape=jax.ShapeDtypeStruct((B, Sq, dv), q.dtype),
        grid_spec=pltpu.PrefetchScalarGridSpec(
            num_scalar_prefetch=0,
            grid=grid,
            in_specs=[
                pl.BlockSpec((1, tq, dk), lambda b, qi, ki: (b, qi, 0)),
                pl.BlockSpec((1, tk, dk), lambda b, qi, ki: (b, ki, 0)),
                pl.BlockSpec((1, tk, dv), lambda b, qi, ki: (b, ki, 0)),
            ],
            out_specs=pl.BlockSpec((1, tq, dv), lambda b, qi, ki: (b, qi, 0)),
            scratch_shapes=[
                pltpu.VMEM((tq, 1), jnp.float32),    # running max m
                pltpu.VMEM((tq, 1), jnp.float32),    # running denom l
                pltpu.VMEM((tq, dv), jnp.float32),   # output accumulator
                pltpu.VMEM((tq, dk), mxu_dtype),     # hoisted scaled q
            ],
        ),
        compiler_params=pltpu.CompilerParams(
            dimension_semantics=("parallel", "parallel", "arbitrary")),
        cost_estimate=cost,
    )(q, k, v)


# ----------------------------------------------------------------------------
# Demo
# ----------------------------------------------------------------------------
if __name__ == "__main__":
    key = jax.random.PRNGKey(0)
    kq, kk_, kv_ = jax.random.split(key, 3)

    # Module constants: dmodel=512, h=8 -> dk = dv = 64 (per-head attention).
    batch = 2
    seq_q = 256
    seq_k = 512
    dk_head = 64
    dv_head = 64

    q = jax.random.normal(kq, (batch, seq_q, dk_head), dtype=jnp.float32)
    k = jax.random.normal(kk_, (batch, seq_k, dk_head), dtype=jnp.float32)
    v = jax.random.normal(kv_, (batch, seq_k, dv_head), dtype=jnp.float32)

    out = scaled_dot_product_attention(q, k, v)
    jax.block_until_ready(out)

    # Reference (plain JAX), mirrors:
    #   torch.matmul(F.softmax(torch.matmul(q, k.permute(0,2,1)) / sqrt(dk), 2), v)
    logits = jnp.einsum("bqd,bkd->bqk", q, k) / math.sqrt(dk_head)
    ref = jnp.einsum("bqk,bkd->bqd", jax.nn.softmax(logits, axis=-1), v)

    assert out.shape == (batch, seq_q, dv_head)
    # bf16 MXU operands (with f32 accumulation) => a few-1e-3 deviation from
    # the pure-f32 reference is expected; tolerance set accordingly.
    max_err = float(jnp.max(jnp.abs(out - ref)))
    assert jnp.allclose(out, ref, atol=2e-2, rtol=2e-2), max_err

    print("KERNEL_OK")
</pallas_src>

<mosaic_0001>
module attributes {stable_mosaic.version = 11 : i64} {
  func.func @_sdpa_kernel(%arg0: i32, %arg1: i32, %arg2: i32, %arg3: memref<1x256x64xf32, #tpu.memory_space<vmem>>, %arg4: memref<1x512x64xf32, #tpu.memory_space<vmem>>, %arg5: memref<1x512x64xf32, #tpu.memory_space<vmem>>, %arg6: memref<1x256x64xf32, #tpu.memory_space<vmem>>, %arg7: memref<256x1xf32, #tpu.memory_space<vmem>>, %arg8: memref<256x1xf32, #tpu.memory_space<vmem>>, %arg9: memref<256x64xf32, #tpu.memory_space<vmem>>, %arg10: memref<256x64xbf16, #tpu.memory_space<vmem>>) attributes {dimension_semantics = [#tpu.dimension_semantics<parallel>, #tpu.dimension_semantics<parallel>, #tpu.dimension_semantics<arbitrary>], iteration_bounds = array<i64: 2, 1, 1>, scalar_prefetch = 0 : i64, scratch_operands = 4 : i64, tpu.core_type = #tpu.core_type<tc>, window_params = [{transform_indices = @transform_0, window_bounds = array<i64: 1, 256, 64>}, {transform_indices = @transform_1, window_bounds = array<i64: 1, 512, 64>}, {transform_indices = @transform_2, window_bounds = array<i64: 1, 512, 64>}, {transform_indices = @transform_3, window_bounds = array<i64: 1, 256, 64>}]} {
    %c0_i32 = arith.constant 0 : i32
    %0 = arith.cmpi eq, %arg2, %c0_i32 : i32
    %1 = arith.extui %0 : i1 to i32
    %c0_i32_0 = arith.constant 0 : i32
    %2 = arith.cmpi ne, %1, %c0_i32_0 : i32
    scf.if %2 {
      %cst_25 = arith.constant 0xFF800000 : f32
      %37 = vector.broadcast %cst_25 : f32 to vector<256x1xf32>
      %c0_26 = arith.constant 0 : index
      %c0_27 = arith.constant 0 : index
      %38 = vector.load %arg7[%c0_26, %c0_27] : memref<256x1xf32, #tpu.memory_space<vmem>>, vector<256x1xf32>
      tpu.vector_store %arg7[%c0_26, %c0_27], %37 {strides = array<i32>} : memref<256x1xf32, #tpu.memory_space<vmem>>, vector<256x1xf32>,
      %cst_28 = arith.constant 0.000000e+00 : f32
      %39 = vector.broadcast %cst_28 : f32 to vector<256x1xf32>
      %c0_29 = arith.constant 0 : index
      %c0_30 = arith.constant 0 : index
      %40 = vector.load %arg8[%c0_29, %c0_30] : memref<256x1xf32, #tpu.memory_space<vmem>>, vector<256x1xf32>
      tpu.vector_store %arg8[%c0_29, %c0_30], %39 {strides = array<i32>} : memref<256x1xf32, #tpu.memory_space<vmem>>, vector<256x1xf32>,
      %cst_31 = arith.constant 0.000000e+00 : f32
      %41 = vector.broadcast %cst_31 : f32 to vector<256x64xf32>
      %c0_32 = arith.constant 0 : index
      %c0_33 = arith.constant 0 : index
      %42 = vector.load %arg9[%c0_32, %c0_33] : memref<256x64xf32, #tpu.memory_space<vmem>>, vector<256x64xf32>
      tpu.vector_store %arg9[%c0_32, %c0_33], %41 {strides = array<i32>} : memref<256x64xf32, #tpu.memory_space<vmem>>, vector<256x64xf32>,
      %c0_34 = arith.constant 0 : index
      %c0_35 = arith.constant 0 : index
      %c0_36 = arith.constant 0 : index
      %43 = vector.load %arg3[%c0_34, %c0_35, %c0_36] : memref<1x256x64xf32, #tpu.memory_space<vmem>>, vector<1x256x64xf32>
      %44 = vector.shape_cast %43 : vector<1x256x64xf32> to vector<256x64xf32>
      %cst_37 = arith.constant 1.250000e-01 : f32
      %45 = vector.broadcast %cst_37 : f32 to vector<256x64xf32>
      %46 = arith.mulf %44, %45 : vector<256x64xf32>
      %47 = arith.truncf %46 : vector<256x64xf32> to vector<256x64xbf16>
      %c0_38 = arith.constant 0 : index
      %c0_39 = arith.constant 0 : index
      %48 = vector.load %arg10[%c0_38, %c0_39] : memref<256x64xbf16, #tpu.memory_space<vmem>>, vector<256x64xbf16>
      tpu.vector_store %arg10[%c0_38, %c0_39], %47 {strides = array<i32>} : memref<256x64xbf16, #tpu.memory_space<vmem>>, vector<256x64xbf16>,
    } else {
    }
    %c0 = arith.constant 0 : index
    %c0_1 = arith.constant 0 : index
    %c0_2 = arith.constant 0 : index
    %3 = vector.load %arg4[%c0, %c0_1, %c0_2] : memref<1x512x64xf32, #tpu.memory_space<vmem>>, vector<1x512x64xf32>
    %4 = vector.shape_cast %3 : vector<1x512x64xf32> to vector<512x64xf32>
    %5 = arith.truncf %4 : vector<512x64xf32> to vector<512x64xbf16>
    %c0_3 = arith.constant 0 : index
    %c0_4 = arith.constant 0 : index
    %6 = vector.load %arg10[%c0_3, %c0_4] : memref<256x64xbf16, #tpu.memory_space<vmem>>, vector<256x64xbf16>
    %cst = arith.constant dense<0.000000e+00> : vector<256x512xf32>
    %7 = tpu.matmul %6, %5, %cst {dimension_numbers = #tpu.dot_dimension_numbers<[1], [1], [0], [0], [0, 0, 1, 0], [], []>} : vector<256x64xbf16>, vector<512x64xbf16>, vector<256x512xf32> -> vector<256x512xf32>
    %c0_5 = arith.constant 0 : index
    %c0_6 = arith.constant 0 : index
    %8 = vector.load %arg7[%c0_5, %c0_6] : memref<256x1xf32, #tpu.memory_space<vmem>>, vector<256x1xf32>
    %cst_7 = arith.constant dense<0xFF800000> : vector<256xf32>
    %9 = vector.multi_reduction <maximumf>, %7, %cst_7 [1] : vector<256x512xf32> to vector<256xf32>
    %10 = vector.shape_cast %9 : vector<256xf32> to vector<256x1xf32>
    %11 = arith.maximumf %8, %10 : vector<256x1xf32>
    %12 = arith.subf %8, %11 : vector<256x1xf32>
    %13 = math.exp %12 : vector<256x1xf32>
    %14 = vector.broadcast %11 : vector<256x1xf32> to vector<256x512xf32>
    %15 = arith.subf %7, %14 : vector<256x512xf32>
    %16 = math.exp %15 : vector<256x512xf32>
    %c0_8 = arith.constant 0 : index
    %c0_9 = arith.constant 0 : index
    %17 = vector.load %arg8[%c0_8, %c0_9] : memref<256x1xf32, #tpu.memory_space<vmem>>, vector<256x1xf32>
    %18 = arith.mulf %13, %17 : vector<256x1xf32>
    %cst_10 = arith.constant dense<0.000000e+00> : vector<256xf32>
    %19 = vector.multi_reduction <add>, %16, %cst_10 [1] : vector<256x512xf32> to vector<256xf32>
    %20 = vector.shape_cast %19 : vector<256xf32> to vector<256x1xf32>
    %21 = arith.addf %18, %20 : vector<256x1xf32>
    %c0_11 = arith.constant 0 : index
    %c0_12 = arith.constant 0 : index
    %22 = vector.load %arg8[%c0_11, %c0_12] : memref<256x1xf32, #tpu.memory_space<vmem>>, vector<256x1xf32>
    tpu.vector_store %arg8[%c0_11, %c0_12], %21 {strides = array<i32>} : memref<256x1xf32, #tpu.memory_space<vmem>>, vector<256x1xf32>,
    %c0_13 = arith.constant 0 : index
    %c0_14 = arith.constant 0 : index
    %23 = vector.load %arg9[%c0_13, %c0_14] : memref<256x64xf32, #tpu.memory_space<vmem>>, vector<256x64xf32>
    %24 = vector.broadcast %13 : vector<256x1xf32> to vector<256x64xf32>
    %25 = arith.mulf %24, %23 : vector<256x64xf32>
    %26 = arith.truncf %16 : vector<256x512xf32> to vector<256x512xbf16>
    %c0_15 = arith.constant 0 : index
    %c0_16 = arith.constant 0 : index
    %c0_17 = arith.constant 0 : index
    %27 = vector.load %arg5[%c0_15, %c0_16, %c0_17] : memref<1x512x64xf32, #tpu.memory_space<vmem>>, vector<1x512x64xf32>
    %28 = vector.shape_cast %27 : vector<1x512x64xf32> to vector<512x64xf32>
    %29 = arith.truncf %28 : vector<512x64xf32> to vector<512x64xbf16>
    %cst_18 = arith.constant dense<0.000000e+00> : vector<256x64xf32>
    %30 = tpu.matmul %26, %29, %cst_18 {dimension_numbers = #tpu.dot_dimension_numbers<[1], [0], [0], [1], [0, 0, 1, 1], [], []>} : vector<256x512xbf16>, vector<512x64xbf16>, vector<256x64xf32> -> vector<256x64xf32>
    %31 = arith.addf %25, %30 : vector<256x64xf32>
    %c0_19 = arith.constant 0 : index
    %c0_20 = arith.constant 0 : index
    %32 = vector.load %arg9[%c0_19, %c0_20] : memref<256x64xf32, #tpu.memory_space<vmem>>, vector<256x64xf32>
    tpu.vector_store %arg9[%c0_19, %c0_20], %31 {strides = array<i32>} : memref<256x64xf32, #tpu.memory_space<vmem>>, vector<256x64xf32>,
    %c0_21 = arith.constant 0 : index
    %c0_22 = arith.constant 0 : index
    %33 = vector.load %arg7[%c0_21, %c0_22] : memref<256x1xf32, #tpu.memory_space<vmem>>, vector<256x1xf32>
    tpu.vector_store %arg7[%c0_21, %c0_22], %11 {strides = array<i32>} : memref<256x1xf32, #tpu.memory_space<vmem>>, vector<256x1xf32>,
    %c0_i32_23 = arith.constant 0 : i32
    %34 = arith.cmpi eq, %arg2, %c0_i32_23 : i32
    %35 = arith.extui %34 : i1 to i32
    %c0_i32_24 = arith.constant 0 : i32
    %36 = arith.cmpi ne, %35, %c0_i32_24 : i32
    scf.if %36 {
      %c0_25 = arith.constant 0 : index
      %c0_26 = arith.constant 0 : index
      %37 = vector.load %arg8[%c0_25, %c0_26] : memref<256x1xf32, #tpu.memory_space<vmem>>, vector<256x1xf32>
      %38 = tpu.reciprocal %37 : vector<256x1xf32> -> vector<256x1xf32>
      %c0_27 = arith.constant 0 : index
      %c0_28 = arith.constant 0 : index
      %39 = vector.load %arg9[%c0_27, %c0_28] : memref<256x64xf32, #tpu.memory_space<vmem>>, vector<256x64xf32>
      %40 = vector.broadcast %38 : vector<256x1xf32> to vector<256x64xf32>
      %41 = arith.mulf %39, %40 : vector<256x64xf32>
      %c0_29 = arith.constant 0 : index
      %c0_30 = arith.constant 0 : index
      %c0_31 = arith.constant 0 : index
      %42 = vector.load %arg6[%c0_29, %c0_30, %c0_31] : memref<1x256x64xf32, #tpu.memory_space<vmem>>, vector<1x256x64xf32>
      %43 = vector.shape_cast %42 : vector<1x256x64xf32> to vector<256x64xf32>
      %44 = vector.shape_cast %41 : vector<256x64xf32> to vector<1x256x64xf32>
      tpu.vector_store %arg6[%c0_29, %c0_30, %c0_31], %44 {strides = array<i32>} : memref<1x256x64xf32, #tpu.memory_space<vmem>>, vector<1x256x64xf32>,
    } else {
    }
    return
  }
  func.func @transform_0(%arg0: i32, %arg1: i32, %arg2: i32) -> (i32, i32, i32) {
    %c0_i32 = arith.constant 0 : i32
    %c0_i32_0 = arith.constant 0 : i32
    return %arg0, %arg1, %c0_i32 : i32, i32, i32
  }
  func.func @transform_1(%arg0: i32, %arg1: i32, %arg2: i32) -> (i32, i32, i32) {
    %c0_i32 = arith.constant 0 : i32
    %c0_i32_0 = arith.constant 0 : i32
    return %arg0, %arg2, %c0_i32 : i32, i32, i32
  }
  func.func @transform_2(%arg0: i32, %arg1: i32, %arg2: i32) -> (i32, i32, i32) {
    %c0_i32 = arith.constant 0 : i32
    %c0_i32_0 = arith.constant 0 : i32
    return %arg0, %arg2, %c0_i32 : i32, i32, i32
  }
  func.func @transform_3(%arg0: i32, %arg1: i32, %arg2: i32) -> (i32, i32, i32) {
    %c0_i32 = arith.constant 0 : i32
    %c0_i32_0 = arith.constant 0 : i32
    return %arg0, %arg1, %c0_i32 : i32, i32, i32
  }
}

</mosaic_0001>

<bundles_post_ra>
// kernel: tpu_custom_call.1
= control target key start
LH: loop header
LB: loop body
LE: loop exit
PB: predicated region body
PF: predicated region fallthrough
CT: control target
= control target key end

     0   :  { %s4707_s12 = smov 0   ;;  %s4709_s13 = smov 0   ;;  %s7043_s0 = inlined_call_operand.vmem [shape: f32[2,256,64], index: 0, kind: input, shape index: {}]   ;;  %s7044_s1 = inlined_call_operand.vmem [shape: f32[2,512,64], index: 1, kind: input, shape index: {}]   ;;  %s7045_s2 = inlined_call_operand.vmem [shape: f32[2,512,64], index: 2, kind: input, shape index: {}]   ;;  %s7046_s3 = inlined_call_operand.vmem [shape: f32[2,256,64], index: 3, kind: output, shape index: {}]  }
   0x1   :  { %s4711_s14 = smov 0  }
   0x2 LB: > { %s32_s15 = sadd.s32 1, %s4678_s13  ;;  %p4087_p0 = scmp.ge.s32.totalorder %s4682_s14, 1  ;;  %s4682_s14 = sphi %s4711_s14, %s13_s14   ;;  %s4678_s13 = sphi %s4709_s13, %s7493_s13   ;;  %s4674_s12 = sphi %s4707_s12, %s7492_s12  }
   0x3   : > { %p34_p1 = scmp.ge.s32.totalorder %s32_s15, 2  ;;  %p199_p2 = scmp.lt.s32.totalorder %s4682_s14, 3 }
   0x5   : > { %s7495_s15 = smov (%p34_p1, %s32_s15), 0  ;;  %p200_p3 = pnand %p4087_p0, %p199_p2 }
   0x7   : > { %203 = sbr.rel (%p200_p3) target bundleno = 1718 (0x6b6), region = 32 }
   0xc   : > { %p250_p4 = scmp.lt.s32.totalorder %s4674_s12, 1  ;;  %vm358_vm0 = vcmask 523264   ;;  %vm487_vm1 = vcmask 519168   ;;  %vm293_vm2 = vcmask 7168  }
   0xe   : > { %s7497_s12 = smov (!%p250_p4, %s4674_s12), 1 }
   0xf   : > { %s4227_s16 = sshll.u32 %s7497_s12, 9  ;;  %s4226_s20 = sshll.u32 %s7497_s12, 8 }
  0x10   : > { %s4733_s19 = scalar_lea.vmem %s7044_s1, %s4227_s16  ;;  %s4785_s23 = scalar_lea.vmem %s7043_s0, %s4226_s20 }
  0x11   : > { %v534_v0 = vld [vmem:[%s4733_s19 + $0x70] sm:$0xff]  ;;  %v535_v1 = vld [vmem:[%s4733_s19 + $0x78] sm:$0xff]  ;;  %v532_v11 = vld [vmem:[%s4733_s19 + $0x60] sm:$0xff]  ;;  %s5489_s26 = scalar_lea.vmem %s7045_s2, %s4227_s16  ;;  %s6584_s29 = scalar_lea.vmem %s7046_s3, %s4226_s20 }
  0x12   : > { %v550_v2 = vld [vmem:[%s4733_s19 + $0xf0] sm:$0xff]  ;;  %v591_v3 = vpack.c.bf16 %v535_v1, %v534_v0  ;;  %v551_v4 = vld [vmem:[%s4733_s19 + $0xf8] sm:$0xff]  ;;  %v533_v14 = vld [vmem:[%s4733_s19 + $0x68] sm:$0xff] }
  0x13   : > { %v566_v5 = vld [vmem:[%s4733_s19 + $0x170] sm:$0xff]  ;;  %v567_v6 = vld [vmem:[%s4733_s19 + $0x178] sm:$0xff]  ;;  %v599_v7 = vpack.c.bf16 %v551_v4, %v550_v2  ;;  %v548_v15 = vld [vmem:[%s4733_s19 + $0xe0] sm:$0xff]  ;;  %v590_v23 = vpack.c.bf16 %v533_v14, %v532_v11 }
  0x14   : > { %v607_v8 = vpack.c.bf16 %v567_v6, %v566_v5  ;;  %v582_v9 = vld [vmem:[%s4733_s19 + $0x1f0] sm:$0xff]  ;;  %v583_v10 = vld [vmem:[%s4733_s19 + $0x1f8] sm:$0xff]  ;;  %v799_v12 = vsel %vm358_vm0, %v591_v3, 0  ;;  %v549_v16 = vld [vmem:[%s4733_s19 + $0xe8] sm:$0xff] }
  0x15   : > { %v615_v13 = vpack.c.bf16 %v583_v10, %v582_v9  ;;  %873 = vmatpush.bf16.xpose.msra.mxu0 %v799_v12  ;;  %v823_v17 = vsel %vm358_vm0, %v599_v7, 0  ;;  %v564_v19 = vld [vmem:[%s4733_s19 + $0x160] sm:$0xff]  ;;  %v565_v20 = vld [vmem:[%s4733_s19 + $0x168] sm:$0xff]  ;;  %v598_v25 = vpack.c.bf16 %v549_v16, %v548_v15  ;;  %v796_v28 = vsel %vm358_vm0, %v590_v23, 0  ;;  %v530_v31 = vld [vmem:[%s4733_s19 + $0x50] sm:$0xff] }
  0x16   : > { %v847_v18 = vsel %vm358_vm0, %v607_v8, 0  ;;  %v580_v21 = vld [vmem:[%s4733_s19 + $0x1e0] sm:$0xff]  ;;  %962 = vmatpush.bf16.xpose.msra.mxu1 %v823_v17  ;;  %v581_v24 = vld [vmem:[%s4733_s19 + $0x1e8] sm:$0xff]  ;;  %v606_v26 = vpack.c.bf16 %v565_v20, %v564_v19  ;;  %v531_v32 = vld [vmem:[%s4733_s19 + $0x58] sm:$0xff] }
  0x17   : > { %1051 = vmatpush.bf16.xpose.msra.mxu2 %v847_v18  ;;  %v871_v22 = vsel %vm358_vm0, %v615_v13, 0  ;;  %v614_v27 = vpack.c.bf16 %v581_v24, %v580_v21  ;;  %v820_v29 = vsel %vm358_vm0, %v598_v25, 0  ;;  %v546_v33 = vld [vmem:[%s4733_s19 + $0xd0] sm:$0xff]  ;;  %v547_v35 = vld [vmem:[%s4733_s19 + $0xd8] sm:$0xff]  ;;  %v589_v40 = vpack.c.bf16 %v531_v32, %v530_v31  ;;  %v528_v47 = vld [vmem:[%s4733_s19 + $0x40] sm:$0xff] }
  0x18   : > { %1140 = vmatpush.bf16.xpose.msra.mxu3 %v871_v22  ;;  %v844_v30 = vsel %vm358_vm0, %v606_v26, 0  ;;  %v562_v36 = vld [vmem:[%s4733_s19 + $0x150] sm:$0xff]  ;;  %v563_v37 = vld [vmem:[%s4733_s19 + $0x158] sm:$0xff]  ;;  %v597_v41 = vpack.c.bf16 %v547_v35, %v546_v33  ;;  %v529_v48 = vld [vmem:[%s4733_s19 + $0x48] sm:$0xff] }
  0x19   : > { %v868_v34 = vsel %vm358_vm0, %v614_v27, 0  ;;  %v578_v38 = vld [vmem:[%s4733_s19 + $0x1d0] sm:$0xff]  ;;  %v579_v39 = vld [vmem:[%s4733_s19 + $0x1d8] sm:$0xff]  ;;  %v605_v42 = vpack.c.bf16 %v563_v37, %v562_v36  ;;  %v793_v44 = vsel %vm358_vm0, %v589_v40, 0  ;;  %v544_v49 = vld [vmem:[%s4733_s19 + $0xc0] sm:$0xff]  ;;  %v588_v56 = vpack.c.bf16 %v529_v48, %v528_v47 }
  0x1a   : > { %v613_v43 = vpack.c.bf16 %v579_v39, %v578_v38  ;;  %v817_v45 = vsel %vm358_vm0, %v597_v41, 0  ;;  %v545_v51 = vld [vmem:[%s4733_s19 + $0xc8] sm:$0xff]  ;;  %v560_v52 = vld [vmem:[%s4733_s19 + $0x140] sm:$0xff]  ;;  %v526_v3 = vld [vmem:[%s4733_s19 + $0x30] sm:$0xff] }
  0x1b   : > { %v841_v46 = vsel %vm358_vm0, %v605_v42, 0  ;;  %v561_v53 = vld [vmem:[%s4733_s19 + $0x148] sm:$0xff]  ;;  %v576_v54 = vld [vmem:[%s4733_s19 + $0x1c0] sm:$0xff]  ;;  %v596_v57 = vpack.c.bf16 %v545_v51, %v544_v49  ;;  %v790_v0 = vsel %vm358_vm0, %v588_v56, 0  ;;  %v527_v4 = vld [vmem:[%s4733_s19 + $0x38] sm:$0xff] }
  0x1c   : > { %v865_v50 = vsel %vm358_vm0, %v613_v43, 0  ;;  %v577_v55 = vld [vmem:[%s4733_s19 + $0x1c8] sm:$0xff]  ;;  %v604_v58 = vpack.c.bf16 %v561_v53, %v560_v52  ;;  %v391_v60 = vld [vmem:[%s4785_s23] sm:$0xff]  ;;  %v542_v5 = vld [vmem:[%s4733_s19 + $0xb0] sm:$0xff]  ;;  %v587_v14 = vpack.c.bf16 %v527_v4, %v526_v3 }
  0x1d   : > { %874 = vmatpush.bf16.xpose.msra.mxu0 %v796_v28  ;;  %v612_v59 = vpack.c.bf16 %v577_v55, %v576_v54  ;;  %v392_v61 = vld [vmem:[%s4785_s23 + $0x8] sm:$0xff]  ;;  %v423_v62 = vmul.f32 0.125, %v391_v60  ;;  %v814_v1 = vsel %vm358_vm0, %v596_v57, 0  ;;  %v543_v9 = vld [vmem:[%s4733_s19 + $0xb8] sm:$0xff]  ;;  %v558_v10 = vld [vmem:[%s4733_s19 + $0x130] sm:$0xff] }
  0x1e   : > { %963 = vmatpush.bf16.xpose.msra.mxu1 %v820_v29  ;;  %v424_v63 = vmul.f32 0.125, %v392_v61  ;;  %v838_v2 = vsel %vm358_vm0, %v604_v58, 0  ;;  %v559_v11 = vld [vmem:[%s4733_s19 + $0x138] sm:$0xff]  ;;  %v574_v12 = vld [vmem:[%s4733_s19 + $0x1b0] sm:$0xff]  ;;  %v595_v15 = vpack.c.bf16 %v543_v9, %v542_v5  ;;  %v787_v18 = vsel %vm358_vm0, %v587_v14, 0  ;;  %v524_v21 = vld [vmem:[%s4733_s19 + $0x20] sm:$0xff] }
  0x1f   : > { %1052 = vmatpush.bf16.xpose.msra.mxu2 %v844_v30  ;;  %v455_v6 = vpack.c.bf16 %v423_v62, %v423_v62  ;;  %v862_v8 = vsel %vm358_vm0, %v612_v59, 0  ;;  %v575_v13 = vld [vmem:[%s4733_s19 + $0x1b8] sm:$0xff]  ;;  %v603_v16 = vpack.c.bf16 %v559_v11, %v558_v10  ;;  %v525_v22 = vld [vmem:[%s4733_s19 + $0x28] sm:$0xff]  ;;  %v540_v23 = vld [vmem:[%s4733_s19 + $0xa0] sm:$0xff] }
  0x20   : > { %1141 = vmatpush.bf16.xpose.msra.mxu3 %v868_v34  ;;  %v456_v7 = vpack.c.bf16 %v424_v63, %v424_v63  ;;  %v611_v17 = vpack.c.bf16 %v575_v13, %v574_v12  ;;  %v811_v19 = vsel %vm358_vm0, %v595_v15, 0  ;;  %v541_v25 = vld [vmem:[%s4733_s19 + $0xa8] sm:$0xff]  ;;  %v556_v26 = vld [vmem:[%s4733_s19 + $0x120] sm:$0xff]  ;;  %v586_v30 = vpack.c.bf16 %v525_v22, %v524_v21  ;;  %v393_v31 = vld [vmem:[%s4785_s23 + $0x10] sm:$0xff] }
  0x21   : > { %488 = vst.msk [vmem:[#allocation5] sm:$0xf] %vm487_vm1, %v455_v6  ;;  %v835_v20 = vsel %vm358_vm0, %v603_v16, 0  ;;  %v557_v27 = vld [vmem:[%s4733_s19 + $0x128] sm:$0xff]  ;;  %v572_v28 = vld [vmem:[%s4733_s19 + $0x1a0] sm:$0xff]  ;;  %v394_v32 = vld [vmem:[%s4785_s23 + $0x18] sm:$0xff]  ;;  %v594_v33 = vpack.c.bf16 %v541_v25, %v540_v23 }
  0x22   : > { %489 = vst.msk [vmem:[#allocation5 + $0x4] sm:$0xf] %vm487_vm1, %v456_v7  ;;  %v859_v24 = vsel %vm358_vm0, %v611_v17, 0  ;;  %v573_v29 = vld [vmem:[%s4733_s19 + $0x1a8] sm:$0xff]  ;;  %v602_v34 = vpack.c.bf16 %v557_v27, %v556_v26  ;;  %v425_v35 = vmul.f32 0.125, %v393_v31  ;;  %v426_v36 = vmul.f32 0.125, %v394_v32 }
  0x23   : > { %v610_v37 = vpack.c.bf16 %v573_v29, %v572_v28  ;;  %v784_v40 = vsel %vm358_vm0, %v586_v30, 0  ;;  %v522_v41 = vld [vmem:[%s4733_s19 + $0x10] sm:$0xff]  ;;  %v808_v42 = vsel %vm358_vm0, %v594_v33, 0  ;;  %v539_v47 = vld [vmem:[%s4733_s19 + $0x98] sm:$0xff]  ;;  %v520_v59 = vld [vmem:[%s4733_s19] sm:$0xff] }
  0x24   : > { %v457_v38 = vpack.c.bf16 %v425_v35, %v425_v35  ;;  %v458_v39 = vpack.c.bf16 %v426_v36, %v426_v36  ;;  %v832_v43 = vsel %vm358_vm0, %v602_v34, 0  ;;  %v554_v48 = vld [vmem:[%s4733_s19 + $0x110] sm:$0xff]  ;;  %v555_v49 = vld [vmem:[%s4733_s19 + $0x118] sm:$0xff]  ;;  %v521_v60 = vld [vmem:[%s4733_s19 + $0x8] sm:$0xff] }
  0x25   : > { %875 = vmatpush.bf16.xpose.msra.mxu0 %v793_v44  ;;  %v523_v44 = vld [vmem:[%s4733_s19 + $0x18] sm:$0xff]  ;;  %v601_v54 = vpack.c.bf16 %v555_v49, %v554_v48  ;;  %v536_v61 = vld [vmem:[%s4733_s19 + $0x80] sm:$0xff]  ;;  %v537_v63 = vld [vmem:[%s4733_s19 + $0x88] sm:$0xff]  ;;  %v584_v4 = vpack.c.bf16 %v521_v60, %v520_v59 }
  0x26   : > { %964 = vmatpush.bf16.xpose.msra.mxu1 %v817_v45  ;;  %v538_v45 = vld [vmem:[%s4733_s19 + $0x90] sm:$0xff]  ;;  %490 = vst.msk [vmem:[#allocation5 + $0x8] sm:$0xf] %vm487_vm1, %v457_v38  ;;  %v571_v51 = vld [vmem:[%s4733_s19 + $0x198] sm:$0xff]  ;;  %v585_v52 = vpack.c.bf16 %v523_v44, %v522_v41  ;;  %v569_v3 = vld [vmem:[%s4733_s19 + $0x188] sm:$0xff]  ;;  %v592_v7 = vpack.c.bf16 %v537_v63, %v536_v61 }
  0x27   : > { %1053 = vmatpush.bf16.xpose.msra.mxu2 %v841_v46  ;;  %v856_v46 = vsel %vm358_vm0, %v610_v37, 0  ;;  %491 = vst.msk [vmem:[#allocation5 + $0xc] sm:$0xf] %vm487_vm1, %v458_v39  ;;  %v593_v53 = vpack.c.bf16 %v539_v47, %v538_v45  ;;  %v829_v58 = vsel %vm358_vm0, %v601_v54, 0  ;;  %v395_v5 = vld [vmem:[%s4785_s23 + $0x20] sm:$0xff]  ;;  %v396_v6 = vld [vmem:[%s4785_s23 + $0x28] sm:$0xff] }
  0x28   : > { %1142 = vmatpush.bf16.xpose.msra.mxu3 %v865_v50  ;;  %v570_v50 = vld [vmem:[%s4733_s19 + $0x190] sm:$0xff]  ;;  %v781_v56 = vsel %vm358_vm0, %v585_v52, 0  ;;  %v427_v9 = vmul.f32 0.125, %v395_v5  ;;  %v428_v10 = vmul.f32 0.125, %v396_v6  ;;  %v778_v14 = vsel %vm358_vm0, %v584_v4, 0  ;;  %v399_v26 = vld [vmem:[%s4785_s23 + $0x40] sm:$0xff] }
  0x29   : > { %v609_v55 = vpack.c.bf16 %v571_v51, %v570_v50  ;;  %v805_v57 = vsel %vm358_vm0, %v593_v53, 0  ;;  %v802_v15 = vsel %vm358_vm0, %v592_v7, 0  ;;  %v400_v27 = vld [vmem:[%s4785_s23 + $0x48] sm:$0xff]  ;;  %v431_v28 = vmul.f32 0.125, %v399_v26  ;;  %v401_v33 = vld [vmem:[%s4785_s23 + $0x50] sm:$0xff]  ;;  %v402_v34 = vld [vmem:[%s4785_s23 + $0x58] sm:$0xff] }
  0x2a   : > { %v459_v12 = vpack.c.bf16 %v427_v9, %v427_v9  ;;  %v460_v13 = vpack.c.bf16 %v428_v10, %v428_v10  ;;  %v432_v29 = vmul.f32 0.125, %v400_v27  ;;  %v433_v35 = vmul.f32 0.125, %v401_v33  ;;  %v404_v41 = vld [vmem:[%s4785_s23 + $0x68] sm:$0xff]  ;;  %v405_v47 = vld [vmem:[%s4785_s23 + $0x70] sm:$0xff]  ;;  %v406_v48 = vld [vmem:[%s4785_s23 + $0x78] sm:$0xff] }
  0x2b   : > { %v853_v62 = vsel %vm358_vm0, %v609_v55, 0  ;;  %v463_v30 = vpack.c.bf16 %v431_v28, %v431_v28  ;;  %v434_v36 = vmul.f32 0.125, %v402_v34  ;;  %v437_v49 = vmul.f32 0.125, %v405_v47  ;;  %v407_v54 = vld [vmem:[%s4785_s23 + $0x80] sm:$0xff]  ;;  %v408_v55 = vld [vmem:[%s4785_s23 + $0x88] sm:$0xff]  ;;  %v410_v9 = vld [vmem:[%s4785_s23 + $0x98] sm:$0xff] }
  0x2c   : > { %492 = vst.msk [vmem:[#allocation5 + $0x10] sm:$0xf] %vm487_vm1, %v459_v12  ;;  %v464_v31 = vpack.c.bf16 %v432_v29, %v432_v29  ;;  %v465_v37 = vpack.c.bf16 %v433_v35, %v433_v35  ;;  %v438_v50 = vmul.f32 0.125, %v406_v48  ;;  %v442_v12 = vmul.f32 0.125, %v410_v9 }
  0x2d   : > { %876 = vmatpush.bf16.xpose.msra.mxu0 %v790_v0  ;;  %v552_v0 = vld [vmem:[%s4733_s19 + $0x100] sm:$0xff]  ;;  %493 = vst.msk [vmem:[#allocation5 + $0x14] sm:$0xf] %vm487_vm1, %v460_v13  ;;  %v466_v38 = vpack.c.bf16 %v434_v36, %v434_v36  ;;  %v469_v51 = vpack.c.bf16 %v437_v49, %v437_v49 }
  0x2e   : > { %965 = vmatpush.bf16.xpose.msra.mxu1 %v814_v1  ;;  %v553_v1 = vld [vmem:[%s4733_s19 + $0x108] sm:$0xff]  ;;  %496 = vst.msk [vmem:[#allocation5 + $0x20] sm:$0xf] %vm487_vm1, %v463_v30  ;;  %v470_v52 = vpack.c.bf16 %v438_v50, %v438_v50 }
  0x2f   : > { %1054 = vmatpush.bf16.xpose.msra.mxu2 %v838_v2  ;;  %v568_v2 = vld [vmem:[%s4733_s19 + $0x180] sm:$0xff]  ;;  %v4231_v25 = vld [vmem:[#allocation5 + $0x8] sm:$0xff]  ;;  %497 = vst.msk [vmem:[#allocation5 + $0x24] sm:$0xf] %vm487_vm1, %v464_v31 }
  0x30   : > { %1143 = vmatpush.bf16.xpose.msra.mxu3 %v862_v8  ;;  %v600_v8 = vpack.c.bf16 %v553_v1, %v552_v0  ;;  %v608_v11 = vpack.c.bf16 %v569_v3, %v568_v2  ;;  %498 = vst.msk [vmem:[#allocation5 + $0x28] sm:$0xf] %vm487_vm1, %v465_v37 }
  0x31   : > { %499 = vst.msk [vmem:[#allocation5 + $0x2c] sm:$0xf] %vm487_vm1, %v466_v38 }
  0x32   : > { %v826_v16 = vsel %vm358_vm0, %v600_v8, 0  ;;  %v850_v17 = vsel %vm358_vm0, %v608_v11, 0  ;;  %502 = vst.msk [vmem:[#allocation5 + $0x38] sm:$0xf] %vm487_vm1, %v469_v51  ;;  %v409_v8 = vld [vmem:[%s4785_s23 + $0x90] sm:$0xff] }
  0x33   : > { %503 = vst.msk [vmem:[#allocation5 + $0x3c] sm:$0xf] %vm487_vm1, %v470_v52  ;;  %v441_v11 = vmul.f32 0.125, %v409_v8 }
  0x34   : > { %v4232_v32 = vld [vmem:[#allocation5 + $0x10] sm:$0xff] }
  0x35   : > { %877 = vmatpush.bf16.xpose.msra.mxu0 %v787_v18  ;;  %v4230_v18 = vld [vmem:[#allocation5] sm:$0xff] }
  0x36   : > { %966 = vmatpush.bf16.xpose.msra.mxu1 %v811_v19  ;;  %v397_v19 = vld [vmem:[%s4785_s23 + $0x30] sm:$0xff] }
  0x37   : > { %1055 = vmatpush.bf16.xpose.msra.mxu2 %v835_v20  ;;  %v398_v20 = vld [vmem:[%s4785_s23 + $0x38] sm:$0xff]  ;;  %v429_v21 = vmul.f32 0.125, %v397_v19 }
  0x38   : > { %1144 = vmatpush.bf16.xpose.msra.mxu3 %v859_v24  ;;  %v430_v22 = vmul.f32 0.125, %v398_v20  ;;  %v4235_v53 = vld [vmem:[#allocation5 + $0x28] sm:$0xff] }
  0x39   : > { %v461_v23 = vpack.c.bf16 %v429_v21, %v429_v21 }
  0x3a   : > { %v462_v24 = vpack.c.bf16 %v430_v22, %v430_v22  ;;  %v4237_v61 = vld [vmem:[#allocation5 + $0x38] sm:$0xff] }
  0x3b   : > { %494 = vst.msk [vmem:[#allocation5 + $0x18] sm:$0xf] %vm487_vm1, %v461_v23 }
  0x3c   : > { %495 = vst.msk [vmem:[#allocation5 + $0x1c] sm:$0xf] %vm487_vm1, %v462_v24 }
  0x3d   : > { %878 = vmatpush.bf16.xpose.msra.mxu0 %v784_v40  ;;  %v403_v40 = vld [vmem:[%s4785_s23 + $0x60] sm:$0xff] }
  0x3e   : > { %967 = vmatpush.bf16.xpose.msra.mxu1 %v808_v42  ;;  %v435_v42 = vmul.f32 0.125, %v403_v40 }
  0x3f   : > { %1056 = vmatpush.bf16.xpose.msra.mxu2 %v832_v43  ;;  %v436_v43 = vmul.f32 0.125, %v404_v41 }
  0x40   : > { %1145 = vmatpush.bf16.xpose.msra.mxu3 %v856_v46  ;;  %v467_v44 = vpack.c.bf16 %v435_v42, %v435_v42  ;;  %v4234_v46 = vld [vmem:[#allocation5 + $0x20] sm:$0xff] }
  0x41   : > { %v468_v45 = vpack.c.bf16 %v436_v43, %v436_v43 }
  0x42   : > { %500 = vst.msk [vmem:[#allocation5 + $0x30] sm:$0xf] %vm487_vm1, %v467_v44 }
  0x43   : > { %v4233_v39 = vld [vmem:[#allocation5 + $0x18] sm:$0xff]  ;;  %501 = vst.msk [vmem:[#allocation5 + $0x34] sm:$0xf] %vm487_vm1, %v468_v45 }
  0x45   : > { %879 = vmatpush.bf16.xpose.msra.mxu0 %v781_v56  ;;  %v439_v56 = vmul.f32 0.125, %v407_v54 }
  0x46   : > { %968 = vmatpush.bf16.xpose.msra.mxu1 %v805_v57  ;;  %v440_v57 = vmul.f32 0.125, %v408_v55 }
  0x47   : > { %1057 = vmatpush.bf16.xpose.msra.mxu2 %v829_v58  ;;  %v471_v58 = vpack.c.bf16 %v439_v56, %v439_v56 }
  0x48   : > { %1146 = vmatpush.bf16.xpose.msra.mxu3 %v853_v62  ;;  %v472_v59 = vpack.c.bf16 %v440_v57, %v440_v57 }
  0x49   : > { %504 = vst.msk [vmem:[#allocation5 + $0x40] sm:$0xf] %vm487_vm1, %v471_v58 }
  0x4a   : > { %505 = vst.msk [vmem:[#allocation5 + $0x44] sm:$0xf] %vm487_vm1, %v472_v59  ;;  %v4236_v60 = vld [vmem:[#allocation5 + $0x30] sm:$0xff] }
  0x4d   : > { %880 = vmatpush.bf16.xpose.msra.mxu0 %v778_v14 }
  0x4e   : > { %969 = vmatpush.bf16.xpose.msra.mxu1 %v802_v15 }
  0x4f   : > { %1058 = vmatpush.bf16.xpose.msra.mxu2 %v826_v16 }
  0x50   : > { %1147 = vmatpush.bf16.xpose.msra.mxu3 %v850_v17  ;;  %v473_v17 = vpack.c.bf16 %v441_v11, %v441_v11 }
  0x51   : > { %v4238_v62 = vld [vmem:[#allocation5 + $0x40] sm:$0xff] }
  0x52   : > { %506 = vst.msk [vmem:[#allocation5 + $0x48] sm:$0xf] %vm487_vm1, %v473_v17  ;;  %v412_v17 = vld [vmem:[%s4785_s23 + $0xa8] sm:$0xff] }
  0x54   : > { %4160 = vmatmul.msk.bf16.vlgmr.msra.gmra.mxu0 %vm358_vm0, %v4230_v18 }
  0x55   : > { %4176 = vmatmul.msk.bf16.vlgmr.msra.gmra.mxu1 %vm358_vm0, %v4230_v18 }
  0x56   : > { %4192 = vmatmul.msk.bf16.vlgmr.msra.gmra.mxu2 %vm358_vm0, %v4230_v18 }
  0x57   : > { %4208 = vmatmul.msk.bf16.vlgmr.msra.gmra.mxu3 %vm358_vm0, %v4230_v18  ;;  %v474_v18 = vpack.c.bf16 %v442_v12, %v442_v12 }
  0x59   : > { %507 = vst.msk [vmem:[#allocation5 + $0x4c] sm:$0xf] %vm487_vm1, %v474_v18 }
  0x60   : > { %v4239_v28 = vld [vmem:[#allocation5 + $0x48] sm:$0xff] }
  0x64   : > { %4161 = vmatmul.msk.bf16.gmra.mxu0 %vm358_vm0, %v4231_v25 }
  0x65   : > { %4177 = vmatmul.msk.bf16.gmra.mxu1 %vm358_vm0, %v4231_v25 }
  0x66   : > { %4193 = vmatmul.msk.bf16.gmra.mxu2 %vm358_vm0, %v4231_v25 }
  0x67   : > { %4209 = vmatmul.msk.bf16.gmra.mxu3 %vm358_vm0, %v4231_v25 }
  0x74   : > { %4162 = vmatmul.msk.bf16.gmra.mxu0 %vm358_vm0, %v4232_v32 }
  0x75   : > { %4178 = vmatmul.msk.bf16.gmra.mxu1 %vm358_vm0, %v4232_v32 }
  0x76   : > { %4194 = vmatmul.msk.bf16.gmra.mxu2 %vm358_vm0, %v4232_v32 }
  0x77   : > { %4210 = vmatmul.msk.bf16.gmra.mxu3 %vm358_vm0, %v4232_v32 }
  0x84   : > { %4163 = vmatmul.msk.bf16.gmra.mxu0 %vm358_vm0, %v4233_v39 }
  0x85   : > { %4179 = vmatmul.msk.bf16.gmra.mxu1 %vm358_vm0, %v4233_v39 }
  0x86   : > { %4195 = vmatmul.msk.bf16.gmra.mxu2 %vm358_vm0, %v4233_v39 }
  0x87   : > { %4211 = vmatmul.msk.bf16.gmra.mxu3 %vm358_vm0, %v4233_v39 }
  0x94   : > { %4164 = vmatmul.msk.bf16.gmra.mxu0 %vm358_vm0, %v4234_v46 }
  0x95   : > { %4180 = vmatmul.msk.bf16.gmra.mxu1 %vm358_vm0, %v4234_v46 }
  0x96   : > { %4196 = vmatmul.msk.bf16.gmra.mxu2 %vm358_vm0, %v4234_v46 }
  0x97   : > { %4212 = vmatmul.msk.bf16.gmra.mxu3 %vm358_vm0, %v4234_v46 }
  0xa4   : > { %4165 = vmatmul.msk.bf16.gmra.mxu0 %vm358_vm0, %v4235_v53 }
  0xa5   : > { %4181 = vmatmul.msk.bf16.gmra.mxu1 %vm358_vm0, %v4235_v53 }
  0xa6   : > { %4197 = vmatmul.msk.bf16.gmra.mxu2 %vm358_vm0, %v4235_v53 }
  0xa7   : > { %4213 = vmatmul.msk.bf16.gmra.mxu3 %vm358_vm0, %v4235_v53 }
  0xb4   : > { %4166 = vmatmul.msk.bf16.gmra.mxu0 %vm358_vm0, %v4236_v60 }
  0xb5   : > { %4182 = vmatmul.msk.bf16.gmra.mxu1 %vm358_vm0, %v4236_v60 }
  0xb6   : > { %4198 = vmatmul.msk.bf16.gmra.mxu2 %vm358_vm0, %v4236_v60 }
  0xb7   : > { %4214 = vmatmul.msk.bf16.gmra.mxu3 %vm358_vm0, %v4236_v60 }
  0xc4   : > { %4167 = vmatmul.msk.bf16.gmra.mxu0 %vm358_vm0, %v4237_v61 }
  0xc5   : > { %4183 = vmatmul.msk.bf16.gmra.mxu1 %vm358_vm0, %v4237_v61 }
  0xc6   : > { %4199 = vmatmul.msk.bf16.gmra.mxu2 %vm358_vm0, %v4237_v61 }
  0xc7   : > { %4215 = vmatmul.msk.bf16.gmra.mxu3 %vm358_vm0, %v4237_v61 }
  0xd1   : > { %v4907_v63 = vpop.f32.mrf.mxu0 }
  0xd2   : > { %v4909_v0 = vpop.f32.mrf.mxu1 }
  0xd3   : > { %v1261_v1 = vmax.f32 %v4907_v63, %v4909_v0 }
  0xd4   : > { %4168 = vmatmul.msk.bf16.gmra.mxu0 %vm358_vm0, %v4238_v62 }
  0xd5   : > { %4184 = vmatmul.msk.bf16.gmra.mxu1 %vm358_vm0, %v4238_v62 }
  0xd6   : > { %4200 = vmatmul.msk.bf16.gmra.mxu2 %vm358_vm0, %v4238_v62 }
  0xd7   : > { %4216 = vmatmul.msk.bf16.gmra.mxu3 %vm358_vm0, %v4238_v62 }
  0xd9   : > { %v4917_v2 = vpop.f32.mrf.mxu2  ;;  %v4922_v5 = vpop.f32.mrf.mxu0 }
  0xda   : > { %v1262_v3 = vmax.f32 %v1261_v1, %v4917_v2  ;;  %v4920_v4 = vpop.f32.mrf.mxu3  ;;  %v4924_v6 = vpop.f32.mrf.mxu1 }
  0xdb   : > { %v1266_v10 = vmax.f32 %v4922_v5, %v4924_v6 }
  0xdc   : > { %v1263_v7 = vmax.f32 %v1262_v3, %v4920_v4 }
  0xde   : > { %1264 = vmax.xlane.f32.xlu0 %v1263_v7 }
  0xe1   : > { %v4931_v13 = vpop.f32.mrf.mxu2  ;;  %v4935_v15 = vpop.f32.mrf.mxu0 }
  0xe2   : > { %v4933_v14 = vpop.f32.mrf.mxu3  ;;  %v1267_v16 = vmax.f32 %v1266_v10, %v4931_v13  ;;  %v4938_v19 = vpop.f32.mrf.mxu1 }
  0xe3   : > { %v1271_v21 = vmax.f32 %v4935_v15, %v4938_v19 }
  0xe4   : > { %v1268_v20 = vmax.f32 %v1267_v16, %v4933_v14  ;;  %4169 = vmatmul.msk.bf16.gmra.mxu0 %vm358_vm0, %v4239_v28  ;;  %v411_v16 = vld [vmem:[%s4785_s23 + $0xa0] sm:$0xff] }
  0xe5   : > { %4185 = vmatmul.msk.bf16.gmra.mxu1 %vm358_vm0, %v4239_v28  ;;  %v443_v18 = vmul.f32 0.125, %v411_v16 }
  0xe6   : > { %1269 = vmax.xlane.f32.xlu0 %v1268_v20  ;;  %4201 = vmatmul.msk.bf16.gmra.mxu2 %vm358_vm0, %v4239_v28  ;;  %v444_v20 = vmul.f32 0.125, %v412_v17 }
  0xe7   : > { %4217 = vmatmul.msk.bf16.gmra.mxu3 %vm358_vm0, %v4239_v28 }
  0xe9   : > { %v4945_v22 = vpop.f32.mrf.mxu2  ;;  %v4950_v25 = vpop.f32.mrf.mxu0 }
  0xea   : > { %v1272_v23 = vmax.f32 %v1271_v21, %v4945_v22  ;;  %v4948_v24 = vpop.f32.mrf.mxu3  ;;  %v4952_v26 = vpop.f32.mrf.mxu1 }
  0xeb   : > { %v1276_v29 = vmax.f32 %v4950_v25, %v4952_v26 }
  0xec   : > { %v1273_v27 = vmax.f32 %v1272_v23, %v4948_v24  ;;  %v475_v23 = vpack.c.bf16 %v443_v18, %v443_v18 }
  0xee   : > { %1274 = vmax.xlane.f32.xlu1 %v1273_v27  ;;  %v476_v27 = vpack.c.bf16 %v444_v20, %v444_v20  ;;  %508 = vst.msk [vmem:[#allocation5 + $0x50] sm:$0xf] %vm487_vm1, %v475_v23 }
  0xf0   : > { %509 = vst.msk [vmem:[#allocation5 + $0x54] sm:$0xf] %vm487_vm1, %v476_v27 }
  0xf1   : > { %v4961_v30 = vpop.f32.mrf.mxu2  ;;  %v4965_v32 = vpop.f32.mrf.mxu0 }
  0xf2   : > { %v4963_v31 = vpop.f32.mrf.mxu3  ;;  %v1277_v33 = vmax.f32 %v1276_v29, %v4961_v30  ;;  %v4968_v34 = vpop.f32.mrf.mxu1 }
  0xf3   : > { %v1281_v36 = vmax.f32 %v4965_v32, %v4968_v34 }
  0xf4   : > { %v1278_v35 = vmax.f32 %v1277_v33, %v4963_v31 }
  0xf6   : > { %1279 = vmax.xlane.f32.xlu1 %v1278_v35 }
  0xf9   : > { %v4973_v37 = vpop.f32.mrf.mxu2  ;;  %v4978_v40 = vpop.f32.mrf.mxu0 }
  0xfa   : > { %v1282_v38 = vmax.f32 %v1281_v36, %v4973_v37  ;;  %v4976_v39 = vpop.f32.mrf.mxu3  ;;  %v4980_v41 = vpop.f32.mrf.mxu1 }
  0xfb   : > { %v1286_v43 = vmax.f32 %v4978_v40, %v4980_v41 }
  0xfc   : > { %v1283_v42 = vmax.f32 %v1282_v38, %v4976_v39 }
  0xfe   : > { %1284 = vmax.xlane.f32.xlu2 %v1283_v42 }
 0x101   : > { %v4985_v44 = vpop.f32.mrf.mxu2  ;;  %v4989_v46 = vpop.f32.mrf.mxu0 }
 0x102   : > { %v4987_v45 = vpop.f32.mrf.mxu3  ;;  %7194 = vst [vmem:[#allocation7_spill] sm:$0xff] %v4989_v46  ;;  %v1287_v47 = vmax.f32 %v1286_v43, %v4985_v44  ;;  %v4992_v48 = vpop.f32.mrf.mxu1 }
 0x103   : > { %7193 = vst [vmem:[#allocation6_spill] sm:$0xff] %v4987_v45  ;;  %v1291_v50 = vmax.f32 %v4989_v46, %v4992_v48  ;;  %v2681_v46 = vld [vmem:[%s5489_s26 + $0x58] sm:$0xff] }
 0x104   : > { %7195 = vst [vmem:[#allocation8_spill] sm:$0xff] %v4992_v48  ;;  %v1288_v49 = vmax.f32 %v1287_v47, %v4987_v45  ;;  %v2680_v48 = vld [vmem:[%s5489_s26 + $0x50] sm:$0xff] }
 0x106   : > { %1289 = vmax.xlane.f32.xlu2 %v1288_v49 }
 0x109   : > { %v4997_v51 = vpop.f32.mrf.mxu2  ;;  %v5002_v54 = vpop.f32.mrf.mxu0 }
 0x10a   : > { %7196 = vst [vmem:[#allocation9_spill] sm:$0xff] %v4997_v51  ;;  %v1292_v52 = vmax.f32 %v1291_v50, %v4997_v51  ;;  %v5000_v53 = vpop.f32.mrf.mxu3  ;;  %v5004_v55 = vpop.f32.mrf.mxu1 }
 0x10b   : > { %7197 = vst [vmem:[#allocation10_spill] sm:$0xff] %v5000_v53  ;;  %v1296_v57 = vmax.f32 %v5002_v54, %v5004_v55 }
 0x10c   : > { %7198 = vst [vmem:[#allocation11_spill] sm:$0xff] %v5002_v54  ;;  %v1293_v56 = vmax.f32 %v1292_v52, %v5000_v53  ;;  %v4240_v52 = vld [vmem:[#allocation5 + $0x50] sm:$0xff]  ;;  %v2703_v54 = vld [vmem:[%s5489_s26 + $0x108] sm:$0xff] }
 0x10d   : > { %7199 = vst [vmem:[#allocation12_spill] sm:$0xff] %v5004_v55  ;;  %4202 = vmatmul.msk.bf16.gmra.mxu2 %vm358_vm0, %v4240_v52  ;;  %4218 = vmatmul.msk.bf16.gmra.mxu3 %vm358_vm0, %v4240_v52 }
 0x10e   : > { %1294 = vmax.xlane.f32.xlu0 %v1293_v56  ;;  %4170 = vmatmul.msk.bf16.gmra.mxu0 %vm358_vm0, %v4240_v52 }
 0x10f   : > { %4186 = vmatmul.msk.bf16.gmra.mxu1 %vm358_vm0, %v4240_v52  ;;  %v413_v52 = vld [vmem:[%s4785_s23 + $0xb0] sm:$0xff] }
 0x111   : > { %v5009_v58 = vpop.f32.mrf.mxu2  ;;  %v5013_v60 = vpop.f32.mrf.mxu0 }
 0x112   : > { %7200 = vst [vmem:[#allocation13_spill] sm:$0xff] %v5009_v58  ;;  %v5011_v59 = vpop.f32.mrf.mxu3  ;;  %v1297_v61 = vmax.f32 %v1296_v57, %v5009_v58  ;;  %v5016_v62 = vpop.f32.mrf.mxu1  ;;  %v4684_v57 = vmov -inf   ;;  %v2702_v58 = vld [vmem:[%s5489_s26 + $0x100] sm:$0xff] }
 0x113   : > { %7201 = vst [vmem:[#allocation14_spill] sm:$0xff] %v5011_v59  ;;  %v1301_v3 = vmax.f32 %v5013_v60, %v5016_v62 }
 0x114   : > { %7202 = vst [vmem:[#allocation15_spill] sm:$0xff] %v5013_v60  ;;  %v1298_v1 = vmax.f32 %v1297_v61, %v5011_v59 }
 0x115   : > { %7203 = vst [vmem:[#allocation16_spill] sm:$0xff] %v5016_v62 }
 0x116   : > { %1299 = vmax.xlane.f32.xlu1 %v1298_v1  ;;  %294 = vst.msk [vmem:[#allocation2] sm:$0xff] %vm293_vm2, %v4684_v57 }
 0x117   : > { %295 = vst.msk [vmem:[#allocation2 + $0x8] sm:$0xff] %vm293_vm2, %v4684_v57 }
 0x118   : > { %296 = vst.msk [vmem:[#allocation2 + $0x10] sm:$0xff] %vm293_vm2, %v4684_v57 }
 0x119   : > { %v5021_v7 = vpop.f32.mrf.mxu2  ;;  %v5026_v10 = vpop.f32.mrf.mxu0  ;;  %297 = vst.msk [vmem:[#allocation2 + $0x18] sm:$0xff] %vm293_vm2, %v4684_v57 }
 0x11a   : > { %7204 = vst [vmem:[#allocation17_spill] sm:$0xff] %v5021_v7  ;;  %v1302_v8 = vmax.f32 %v1301_v3, %v5021_v7  ;;  %v5024_v9 = vpop.f32.mrf.mxu3  ;;  %v5028_v11 = vpop.f32.mrf.mxu1 }
 0x11b   : > { %7205 = vst [vmem:[#allocation18_spill] sm:$0xff] %v5024_v9  ;;  %v1306_v21 = vmax.f32 %v5026_v10, %v5028_v11 }
 0x11c   : > { %7206 = vst [vmem:[#allocation19_spill] sm:$0xff] %v5026_v10  ;;  %v1303_v12 = vmax.f32 %v1302_v8, %v5024_v9 }
 0x11d   : > { %7207 = vst [vmem:[#allocation20_spill] sm:$0xff] %v5028_v11 }
 0x11e   : > { %1304 = vmax.xlane.f32.xlu2 %v1303_v12  ;;  %298 = vst.msk [vmem:[#allocation2 + $0x20] sm:$0xff] %vm293_vm2, %v4684_v57 }
 0x11f   : > { %299 = vst.msk [vmem:[#allocation2 + $0x28] sm:$0xff] %vm293_vm2, %v4684_v57 }
 0x120   : > { %300 = vst.msk [vmem:[#allocation2 + $0x30] sm:$0xff] %vm293_vm2, %v4684_v57 }
 0x121   : > { %v5035_v28 = vpop.f32.mrf.mxu2  ;;  %v5039_v33 = vpop.f32.mrf.mxu0  ;;  %301 = vst.msk [vmem:[#allocation2 + $0x38] sm:$0xff] %vm293_vm2, %v4684_v57 }
 0x122   : > { %7208 = vst [vmem:[#allocation21_spill] sm:$0xff] %v5035_v28  ;;  %v5037_v29 = vpop.f32.mrf.mxu3  ;;  %v1307_v35 = vmax.f32 %v1306_v21, %v5035_v28  ;;  %v5043_v36 = vpop.f32.mrf.mxu1 }
 0x123   : > { %7209 = vst [vmem:[#allocation22_spill] sm:$0xff] %v5037_v29  ;;  %v1311_v42 = vmax.f32 %v5039_v33, %v5043_v36 }
 0x124   : > { %7210 = vst [vmem:[#allocation23_spill] sm:$0xff] %v5039_v33  ;;  %v1308_v38 = vmax.f32 %v1307_v35, %v5037_v29  ;;  %v2683_v33 = vld [vmem:[%s5489_s26 + $0x68] sm:$0xff] }
 0x125   : > { %7211 = vst [vmem:[#allocation24_spill] sm:$0xff] %v5043_v36 }
 0x126   : > { %1309 = vmax.xlane.f32.xlu0 %v1308_v38  ;;  %302 = vst.msk [vmem:[#allocation2 + $0x40] sm:$0xff] %vm293_vm2, %v4684_v57 }
 0x127   : > { %303 = vst.msk [vmem:[#allocation2 + $0x48] sm:$0xff] %vm293_vm2, %v4684_v57 }
 0x128   : > { %304 = vst.msk [vmem:[#allocation2 + $0x50] sm:$0xff] %vm293_vm2, %v4684_v57  ;;  %v5377_v29 = vld [vmem:[#allocation2 + $0x38] sm:$0xff] }
 0x129   : > { %v5049_v43 = vpop.f32.mrf.mxu2  ;;  %v5054_v50 = vpop.f32.mrf.mxu0  ;;  %305 = vst.msk [vmem:[#allocation2 + $0x58] sm:$0xff] %vm293_vm2, %v4684_v57 }
 0x12a   : > { %7212 = vst [vmem:[#allocation25_spill] sm:$0xff] %v5049_v43  ;;  %v1312_v47 = vmax.f32 %v1311_v42, %v5049_v43  ;;  %v5052_v49 = vpop.f32.mrf.mxu3  ;;  %v5056_v56 = vpop.f32.mrf.mxu1 }
 0x12b   : > { %7213 = vst [vmem:[#allocation26_spill] sm:$0xff] %v5052_v49  ;;  %v1316_v1 = vmax.f32 %v5054_v50, %v5056_v56 }
 0x12c   : > { %7214 = vst [vmem:[#allocation27_spill] sm:$0xff] %v5054_v50  ;;  %v1313_v61 = vmax.f32 %v1312_v47, %v5052_v49 }
 0x12d   : > { %7215 = vst [vmem:[#allocation28_spill] sm:$0xff] %v5056_v56  ;;  %v5409_v62 = vld [vmem:[#allocation2 + $0x40] sm:$0xff] }
 0x12e   : > { %1314 = vmax.xlane.f32.xlu1 %v1313_v61  ;;  %306 = vst.msk [vmem:[#allocation2 + $0x60] sm:$0xff] %vm293_vm2, %v4684_v57 }
 0x12f   : > { %307 = vst.msk [vmem:[#allocation2 + $0x68] sm:$0xff] %vm293_vm2, %v4684_v57 }
 0x130   : > { %308 = vst.msk [vmem:[#allocation2 + $0x70] sm:$0xff] %vm293_vm2, %v4684_v57 }
 0x131   : > { %v5077_v3 = vpop.f32.mrf.mxu2  ;;  %v5083_v12 = vpop.f32.mrf.mxu0  ;;  %309 = vst.msk [vmem:[#allocation2 + $0x78] sm:$0xff] %vm293_vm2, %v4684_v57 }
 0x132   : > { %7216 = vst [vmem:[#allocation29_spill] sm:$0xff] %v5077_v3  ;;  %v5081_v8 = vpop.f32.mrf.mxu3  ;;  %v1317_v16 = vmax.f32 %v1316_v1, %v5077_v3  ;;  %v5088_v17 = vpop.f32.mrf.mxu1  ;;  %v414_v1 = vld [vmem:[%s4785_s23 + $0xb8] sm:$0xff] }
 0x133   : > { %7217 = vst [vmem:[#allocation30_spill] sm:$0xff] %v5081_v8  ;;  %v1321_v20 = vmax.f32 %v5083_v12, %v5088_v17 }
 0x134   : > { %7218 = vst [vmem:[#allocation31_spill] sm:$0xff] %v5083_v12  ;;  %v1318_v18 = vmax.f32 %v1317_v16, %v5081_v8 }
 0x135   : > { %7219 = vst [vmem:[#allocation32_spill] sm:$0xff] %v5088_v17  ;;  %v4685_v17 = vmov 0  }
 0x136   : > { %1319 = vmax.xlane.f32.xlu2 %v1318_v18  ;;  %310 = vst.msk [vmem:[#allocation2 + $0x80] sm:$0xff] %vm293_vm2, %v4684_v57  ;;  %4274 = vset.pattern.permute.xlu0 %v4685_v17 }
 0x137   : > { %311 = vst.msk [vmem:[#allocation2 + $0x88] sm:$0xff] %vm293_vm2, %v4684_v57  ;;  %4273 = vset.pattern.permute.xlu2 %v4685_v17  ;;  %4275 = vset.pattern.permute.xlu1 %v4685_v17 }
 0x138   : > { %312 = vst.msk [vmem:[#allocation2 + $0x90] sm:$0xff] %vm293_vm2, %v4684_v57 }
 0x139   : > { %v5105_v21 = vpop.f32.mrf.mxu2  ;;  %v5112_v35 = vpop.f32.mrf.mxu0  ;;  %313 = vst.msk [vmem:[#allocation2 + $0x98] sm:$0xff] %vm293_vm2, %v4684_v57 }
 0x13a   : > { %7220 = vst [vmem:[#allocation33_spill] sm:$0xff] %v5105_v21  ;;  %v1322_v23 = vmax.f32 %v1321_v20, %v5105_v21  ;;  %v5110_v27 = vpop.f32.mrf.mxu3  ;;  %v5116_v38 = vpop.f32.mrf.mxu1  ;;  %v446_v21 = vmul.f32 0.125, %v414_v1 }
 0x13b   : > { %7221 = vst [vmem:[#allocation34_spill] sm:$0xff] %v5110_v27  ;;  %v1326_v47 = vmax.f32 %v5112_v35, %v5116_v38 }
 0x13c   : > { %7222 = vst [vmem:[#allocation35_spill] sm:$0xff] %v5112_v35  ;;  %v1323_v42 = vmax.f32 %v1322_v23, %v5110_v27  ;;  %v478_v1 = vpack.c.bf16 %v446_v21, %v446_v21  ;;  %v4686_v21 = vmov 0.0   ;;  %v5294_v35 = vld [vmem:[#allocation2 + $0x20] sm:$0xff] }
 0x13d   : > { %7223 = vst [vmem:[#allocation36_spill] sm:$0xff] %v5116_v38 }
 0x13e   : > { %1324 = vmax.xlane.f32.xlu0 %v1323_v42  ;;  %314 = vst.msk [vmem:[#allocation2 + $0xa0] sm:$0xff] %vm293_vm2, %v4684_v57  ;;  %v445_v42 = vmul.f32 0.125, %v413_v52 }
 0x13f   : > { %315 = vst.msk [vmem:[#allocation2 + $0xa8] sm:$0xff] %vm293_vm2, %v4684_v57 }
 0x140   : > { %316 = vst.msk [vmem:[#allocation2 + $0xb0] sm:$0xff] %vm293_vm2, %v4684_v57  ;;  %v477_v52 = vpack.c.bf16 %v445_v42, %v445_v42 }
 0x141   : > { %v5134_v61 = vpop.f32.mrf.mxu2  ;;  %v5141_v18 = vpop.f32.mrf.mxu0  ;;  %317 = vst.msk [vmem:[#allocation2 + $0xb8] sm:$0xff] %vm293_vm2, %v4684_v57 }
 0x142   : > { %7224 = vst [vmem:[#allocation37_spill] sm:$0xff] %v5134_v61  ;;  %v5139_v16 = vpop.f32.mrf.mxu3  ;;  %v1327_v20 = vmax.f32 %v1326_v47, %v5134_v61  ;;  %v5146_v23 = vpop.f32.mrf.mxu1 }
 0x143   : > { %7225 = vst [vmem:[#allocation38_spill] sm:$0xff] %v5139_v16  ;;  %v1331_v47 = vmax.f32 %v5141_v18, %v5146_v23 }
 0x144   : > { %7226 = vst [vmem:[#allocation39_spill] sm:$0xff] %v5141_v18  ;;  %v1328_v27 = vmax.f32 %v1327_v20, %v5139_v16  ;;  %v416_v16 = vld [vmem:[%s4785_s23 + $0xc8] sm:$0xff] }
 0x145   : > { %7227 = vst [vmem:[#allocation40_spill] sm:$0xff] %v5146_v23  ;;  %v448_v61 = vmul.f32 0.125, %v416_v16 }
 0x146   : > { %318 = vst.msk [vmem:[#allocation2 + $0xc0] sm:$0xff] %vm293_vm2, %v4684_v57  ;;  %1329 = vmax.xlane.f32.xlu1 %v1328_v27 }
 0x147   : > { %319 = vst.msk [vmem:[#allocation2 + $0xc8] sm:$0xff] %vm293_vm2, %v4684_v57  ;;  %v480_v38 = vpack.c.bf16 %v448_v61, %v448_v61 }
 0x148   : > { %320 = vst.msk [vmem:[#allocation2 + $0xd0] sm:$0xff] %vm293_vm2, %v4684_v57 }
 0x149   : > { %321 = vst.msk [vmem:[#allocation2 + $0xd8] sm:$0xff] %vm293_vm2, %v4684_v57  ;;  %v5163_v20 = vpop.f32.mrf.mxu2  ;;  %v5172_v18 = vpop.f32.mrf.mxu0 }
 0x14a   : > { %322 = vst.msk [vmem:[#allocation2 + $0xe0] sm:$0xff] %vm293_vm2, %v4684_v57  ;;  %v1332_v27 = vmax.f32 %v1331_v47, %v5163_v20  ;;  %v5168_v23 = vpop.f32.mrf.mxu3  ;;  %v5174_v42 = vpop.f32.mrf.mxu1  ;;  %v5183_v47 = vld [vmem:[#allocation2] sm:$0xff] }
 0x14b   : > { %323 = vst.msk [vmem:[#allocation2 + $0xe8] sm:$0xff] %vm293_vm2, %v4684_v57 }
 0x14c   : > { %7228 = vst [vmem:[#allocation41_spill] sm:$0xff] %v5163_v20  ;;  %v1333_v17 = vmax.f32 %v1332_v27, %v5168_v23 }
 0x14d   : > { %324 = vst.msk [vmem:[#allocation2 + $0xf0] sm:$0xff] %vm293_vm2, %v4684_v57 }
 0x14e   : > { %7229 = vst [vmem:[#allocation42_spill] sm:$0xff] %v5168_v23  ;;  %1334 = vmax.xlane.f32.xlu2 %v1333_v17 }
 0x14f   : > { %325 = vst.msk [vmem:[#allocation2 + $0xf8] sm:$0xff] %vm293_vm2, %v4684_v57  ;;  %v1336_v57 = vmax.f32 %v5172_v18, %v5174_v42 }
 0x150   : > { %7230 = vst [vmem:[#allocation43_spill] sm:$0xff] %v5172_v18 }
 0x151   : > { %7231 = vst [vmem:[#allocation44_spill] sm:$0xff] %v5174_v42  ;;  %v5205_v18 = vpop.f32.mrf.mxu0 }
 0x152   : > { %510 = vst.msk [vmem:[#allocation5 + $0x58] sm:$0xf] %vm487_vm1, %v477_v52  ;;  %v5191_v52 = vpop.f32.mrf.mxu2  ;;  %v5195_v27 = vpop.f32.mrf.mxu3 }
 0x153   : > { %511 = vst.msk [vmem:[#allocation5 + $0x5c] sm:$0xf] %vm487_vm1, %v478_v1  ;;  %v1265_v1 = vpop.xlane.xlu0 %1264  ;;  %v1337_v23 = vmax.f32 %v1336_v57, %v5191_v52  ;;  %v5207_v12 = vpop.f32.mrf.mxu1 }
 0x154   : > { %359 = vst.msk [vmem:[#allocation4] sm:$0xff] %vm358_vm0, %v4686_v21  ;;  %v1421_v17 = vmax.f32 %v5183_v47, %v1265_v1  ;;  %v1341_v57 = vmax.f32 %v5205_v18, %v5207_v12 }
 0x155   : > { %326 = vst.msk [vmem:[#allocation3] sm:$0xff] %vm293_vm2, %v4686_v21  ;;  %v1338_v42 = vmax.f32 %v1337_v23, %v5195_v27  ;;  %v5218_v23 = vld [vmem:[#allocation2 + $0x8] sm:$0xff] }
 0x156   : > { %327 = vst.msk [vmem:[#allocation3 + $0x8] sm:$0xff] %vm293_vm2, %v4686_v21 }
 0x157   : > { %328 = vst.msk [vmem:[#allocation3 + $0x10] sm:$0xff] %vm293_vm2, %v4686_v21  ;;  %1339 = vmax.xlane.f32.xlu0 %v1338_v42 }
 0x158   : > { %7232 = vst [vmem:[#allocation45_spill] sm:$0xff] %v5191_v52 }
 0x159   : > { %329 = vst.msk [vmem:[#allocation3 + $0x18] sm:$0xff] %vm293_vm2, %v4686_v21 }
 0x15a   : > { %7233 = vst [vmem:[#allocation46_spill] sm:$0xff] %v5195_v27  ;;  %v4241_v20 = vld [vmem:[#allocation5 + $0x58] sm:$0xff]  ;;  %v5225_v1 = vpop.f32.mrf.mxu2 }
 0x15b   : > { %330 = vst.msk [vmem:[#allocation3 + $0x20] sm:$0xff] %vm293_vm2, %v4686_v21  ;;  %4203 = vmatmul.msk.bf16.gmra.mxu2 %vm358_vm0, %v4241_v20  ;;  %4219 = vmatmul.msk.bf16.gmra.mxu3 %vm358_vm0, %v4241_v20  ;;  %v1270_v27 = vpop.xlane.xlu0 %1269  ;;  %v1342_v42 = vmax.f32 %v1341_v57, %v5225_v1 }
 0x15c   : > { %331 = vst.msk [vmem:[#allocation3 + $0x28] sm:$0xff] %vm293_vm2, %v4686_v21  ;;  %4171 = vmatmul.msk.bf16.gmra.mxu0 %vm358_vm0, %v4241_v20  ;;  %4187 = vmatmul.msk.bf16.gmra.mxu1 %vm358_vm0, %v4241_v20  ;;  %v5231_v52 = vmax.f32 %v5218_v23, %v1270_v27  ;;  %v5235_v20 = vpop.f32.mrf.mxu3  ;;  %v5248_v27 = vld [vmem:[#allocation2 + $0x10] sm:$0xff] }
 0x15d   : > { %3186 = vst.msk [vmem:[#allocation2] sm:$0xff] %vm293_vm2, %v1421_v17 }
 0x15e   : > { %7234 = vst [vmem:[#allocation47_spill] sm:$0xff] %v5205_v18  ;;  %v1343_v18 = vmax.f32 %v1342_v42, %v5235_v20 }
 0x15f   : > { %7235 = vst [vmem:[#allocation48_spill] sm:$0xff] %v5207_v12 }
 0x160   : > { %332 = vst.msk [vmem:[#allocation3 + $0x30] sm:$0xff] %vm293_vm2, %v4686_v21  ;;  %1344 = vmax.xlane.f32.xlu1 %v1343_v18  ;;  %v5269_v18 = vld [vmem:[#allocation2 + $0x18] sm:$0xff] }
 0x161   : > { %333 = vst.msk [vmem:[#allocation3 + $0x38] sm:$0xff] %vm293_vm2, %v4686_v21  ;;  %v1275_v57 = vpop.xlane.xlu1 %1274 }
 0x162   : > { %334 = vst.msk [vmem:[#allocation3 + $0x40] sm:$0xff] %vm293_vm2, %v4686_v21  ;;  %v5257_v42 = vmax.f32 %v5248_v27, %v1275_v57  ;;  %v1453_v57 = vsub.f32 %v5183_v47, %v1421_v17 }
 0x163   : > { %335 = vst.msk [vmem:[#allocation3 + $0x48] sm:$0xff] %vm293_vm2, %v4686_v21 }
 0x164   : > { %7236 = vst [vmem:[#allocation49_spill] sm:$0xff] %v5225_v1  ;;  %v415_v1 = vld [vmem:[%s4785_s23 + $0xc0] sm:$0xff]  ;;  %v1485_v47 = vmul.f32 1.442695, %v1453_v57  ;;  %v5363_v3 = vpop.f32.mrf.mxu3 }
 0x165   : > { %336 = vst.msk [vmem:[#allocation3 + $0x50] sm:$0xff] %vm293_vm2, %v4686_v21 }
 0x166   : > { %337 = vst.msk [vmem:[#allocation3 + $0x58] sm:$0xff] %vm293_vm2, %v4686_v21  ;;  %1551 = vperm.xlu2 %4273, %v1421_v17   ;;  %v447_v17 = vmul.f32 0.125, %v415_v1  ;;  %4276 = vpow2.f32 %v1485_v47 }
 0x167   : > { %7237 = vst [vmem:[#allocation50_spill] sm:$0xff] %v5235_v20 }
 0x168   : > { %338 = vst.msk [vmem:[#allocation3 + $0x60] sm:$0xff] %vm293_vm2, %v4686_v21 }
 0x169   : > { %3187 = vst.msk [vmem:[#allocation2 + $0x8] sm:$0xff] %vm293_vm2, %v5231_v52  ;;  %v1280_v12 = vpop.xlane.xlu1 %1279 }
 0x16a   : > { %339 = vst.msk [vmem:[#allocation3 + $0x68] sm:$0xff] %vm293_vm2, %v4686_v21  ;;  %v5279_v20 = vmax.f32 %v5269_v18, %v1280_v12  ;;  %v479_v12 = vpack.c.bf16 %v447_v17, %v447_v17 }
 0x16b   : > { %340 = vst.msk [vmem:[#allocation3 + $0x70] sm:$0xff] %vm293_vm2, %v4686_v21  ;;  %1556 = vperm.xlu0 %4274, %v5231_v52  }
 0x16c   : > { %341 = vst.msk [vmem:[#allocation3 + $0x78] sm:$0xff] %vm293_vm2, %v4686_v21  ;;  %v5311_v61 = vpop.eup %4276 }
 0x16d   : > { %342 = vst.msk [vmem:[#allocation3 + $0x80] sm:$0xff] %vm293_vm2, %v4686_v21 }
 0x16e   : > { %343 = vst.msk [vmem:[#allocation3 + $0x88] sm:$0xff] %vm293_vm2, %v4686_v21 }
 0x16f   : > { %344 = vst.msk [vmem:[#allocation3 + $0x90] sm:$0xff] %vm293_vm2, %v4686_v21 }
 0x170   : > { %345 = vst.msk [vmem:[#allocation3 + $0x98] sm:$0xff] %vm293_vm2, %v4686_v21 }
 0x171   : > { %3188 = vst.msk [vmem:[#allocation2 + $0x10] sm:$0xff] %vm293_vm2, %v5257_v42  ;;  %v1285_v57 = vpop.xlane.xlu2 %1284 }
 0x172   : > { %346 = vst.msk [vmem:[#allocation3 + $0xa0] sm:$0xff] %vm293_vm2, %v4686_v21  ;;  %v5301_v16 = vmax.f32 %v5294_v35, %v1285_v57  ;;  %v5339_v57 = vpop.f32.mrf.mxu1 }
 0x173   : > { %347 = vst.msk [vmem:[#allocation3 + $0xa8] sm:$0xff] %vm293_vm2, %v4686_v21 }
 0x174   : > { %348 = vst.msk [vmem:[#allocation3 + $0xb0] sm:$0xff] %vm293_vm2, %v4686_v21 }
 0x175   : > { %349 = vst.msk [vmem:[#allocation3 + $0xb8] sm:$0xff] %vm293_vm2, %v4686_v21 }
 0x176   : > { %350 = vst.msk [vmem:[#allocation3 + $0xc0] sm:$0xff] %vm293_vm2, %v4686_v21 }
 0x177   : > { %351 = vst.msk [vmem:[#allocation3 + $0xc8] sm:$0xff] %vm293_vm2, %v4686_v21 }
 0x178   : > { %352 = vst.msk [vmem:[#allocation3 + $0xd0] sm:$0xff] %vm293_vm2, %v4686_v21 }
 0x179   : > { %3189 = vst.msk [vmem:[#allocation2 + $0x18] sm:$0xff] %vm293_vm2, %v5279_v20  ;;  %2416 = vperm.xlu1 %4275, %v5311_v61   ;;  %v1290_v47 = vpop.xlane.xlu2 %1289 }
 0x17a   : > { %353 = vst.msk [vmem:[#allocation3 + $0xd8] sm:$0xff] %vm293_vm2, %v4686_v21  ;;  %v5369_v50 = vpop.f32.mrf.mxu1 }
 0x17b   : > { %354 = vst.msk [vmem:[#allocation3 + $0xe0] sm:$0xff] %vm293_vm2, %v4686_v21 }
 0x17c   : > { %355 = vst.msk [vmem:[#allocation3 + $0xe8] sm:$0xff] %vm293_vm2, %v4686_v21 }
 0x17d   : > { %512 = vst.msk [vmem:[#allocation5 + $0x60] sm:$0xf] %vm487_vm1, %v479_v12  ;;  %v5337_v12 = vpop.f32.mrf.mxu0 }
 0x17e   : > { %513 = vst.msk [vmem:[#allocation5 + $0x64] sm:$0xf] %vm487_vm1, %v480_v38  ;;  %v5316_v38 = vld [vmem:[#allocation2 + $0x28] sm:$0xff] }
 0x17f   : > { %356 = vst.msk [vmem:[#allocation3 + $0xf0] sm:$0xff] %vm293_vm2, %v4686_v21  ;;  %v5325_v17 = vmax.f32 %v5316_v38, %v1290_v47  ;;  %v5346_v47 = vld [vmem:[#allocation2 + $0x30] sm:$0xff] }
 0x180   : > { %357 = vst.msk [vmem:[#allocation3 + $0xf8] sm:$0xff] %vm293_vm2, %v4686_v21 }
 0x181   : > { %3190 = vst.msk [vmem:[#allocation2 + $0x20] sm:$0xff] %vm293_vm2, %v5301_v16  ;;  %1561 = vperm.xlu1 %4275, %v5257_v42  }
 0x182   : > { %360 = vst.msk [vmem:[#allocation4 + $0x8] sm:$0xff] %vm358_vm0, %v4686_v21 }
 0x183   : > { %7238 = vst [vmem:[#allocation51_spill] sm:$0xff] %v5311_v61  ;;  %v1295_v61 = vpop.xlane.xlu0 %1294 }
 0x184   : > { %361 = vst.msk [vmem:[#allocation4 + $0x10] sm:$0xff] %vm358_vm0, %v4686_v21  ;;  %v5357_v8 = vmax.f32 %v5346_v47, %v1295_v61  ;;  %v1346_v61 = vmax.f32 %v5337_v12, %v5339_v57 }
 0x185   : > { %362 = vst.msk [vmem:[#allocation4 + $0x18] sm:$0xff] %vm358_vm0, %v4686_v21  ;;  %v4242_v1 = vld [vmem:[#allocation5 + $0x60] sm:$0xff]  ;;  %v5367_v56 = vpop.f32.mrf.mxu0 }
 0x186   : > { %363 = vst.msk [vmem:[#allocation4 + $0x20] sm:$0xff] %vm358_vm0, %v4686_v21  ;;  %4204 = vmatmul.msk.bf16.gmra.mxu2 %vm358_vm0, %v4242_v1  ;;  %4220 = vmatmul.msk.bf16.gmra.mxu3 %vm358_vm0, %v4242_v1  ;;  %v1351_v28 = vmax.f32 %v5367_v56, %v5369_v50 }
 0x187   : > { %364 = vst.msk [vmem:[#allocation4 + $0x28] sm:$0xff] %vm358_vm0, %v4686_v21  ;;  %4172 = vmatmul.msk.bf16.gmra.mxu0 %vm358_vm0, %v4242_v1  ;;  %4188 = vmatmul.msk.bf16.gmra.mxu1 %vm358_vm0, %v4242_v1  ;;  %v5352_v1 = vpop.f32.mrf.mxu2 }
 0x188   : > { %365 = vst.msk [vmem:[#allocation4 + $0x30] sm:$0xff] %vm358_vm0, %v4686_v21  ;;  %v1347_v9 = vmax.f32 %v1346_v61, %v5352_v1  ;;  %v5401_v61 = vpop.f32.mrf.mxu3 }
 0x189   : > { %366 = vst.msk [vmem:[#allocation4 + $0x38] sm:$0xff] %vm358_vm0, %v4686_v21  ;;  %v1300_v11 = vpop.xlane.xlu1 %1299 }
 0x18a   : > { %3191 = vst.msk [vmem:[#allocation2 + $0x28] sm:$0xff] %vm293_vm2, %v5325_v17 }
 0x18b   : > { %7239 = vst [vmem:[#allocation52_spill] sm:$0xff] %v5337_v12  ;;  %v418_v12 = vld [vmem:[%s4785_s23 + $0xd8] sm:$0xff] }
 0x18c   : > { %7240 = vst [vmem:[#allocation53_spill] sm:$0xff] %v5339_v57  ;;  %v5391_v57 = vmax.f32 %v5377_v29, %v1300_v11  ;;  %v450_v7 = vmul.f32 0.125, %v418_v12 }
 0x18d   : > { %367 = vst.msk [vmem:[#allocation4 + $0x40] sm:$0xff] %vm358_vm0, %v4686_v21 }
 0x18e   : > { %368 = vst.msk [vmem:[#allocation4 + $0x48] sm:$0xff] %vm358_vm0, %v4686_v21 }
 0x18f   : > { %369 = vst.msk [vmem:[#allocation4 + $0x50] sm:$0xff] %vm358_vm0, %v4686_v21  ;;  %v5385_v10 = vpop.f32.mrf.mxu2 }
 0x190   : > { %370 = vst.msk [vmem:[#allocation4 + $0x58] sm:$0xff] %vm358_vm0, %v4686_v21  ;;  %v5469_v43 = vpop.f32.mrf.mxu3 }
 0x191   : > { %7241 = vst [vmem:[#allocation54_spill] sm:$0xff] %v5352_v1  ;;  %v417_v1 = vld [vmem:[%s4785_s23 + $0xd0] sm:$0xff] }
 0x192   : > { %371 = vst.msk [vmem:[#allocation4 + $0x60] sm:$0xff] %vm358_vm0, %v4686_v21  ;;  %v449_v11 = vmul.f32 0.125, %v417_v1  ;;  %v7249_v1 = vsub.f32 %v5218_v23, %v5231_v52  ;;  %v5457_v23 = vld [vmem:[#allocation2 + $0x50] sm:$0xff] }
 0x193   : > { %372 = vst.msk [vmem:[#allocation4 + $0x68] sm:$0xff] %vm358_vm0, %v4686_v21 }
 0x194   : > { %373 = vst.msk [vmem:[#allocation4 + $0x70] sm:$0xff] %vm358_vm0, %v4686_v21 }
 0x195   : > { %7242 = vst [vmem:[#allocation55_spill] sm:$0xff] %v5363_v3 }
 0x196   : > { %3192 = vst.msk [vmem:[#allocation2 + $0x30] sm:$0xff] %vm293_vm2, %v5357_v8 }
 0x197   : > { %7243 = vst [vmem:[#allocation56_spill] sm:$0xff] %v5367_v56  ;;  %v1348_v56 = vmax.f32 %v1347_v9, %v5363_v3  ;;  %v1305_v3 = vpop.xlane.xlu2 %1304 }
 0x198   : > { %7244 = vst [vmem:[#allocation57_spill] sm:$0xff] %v5369_v50  ;;  %v1352_v50 = vmax.f32 %v1351_v28, %v5385_v10  ;;  %v481_v28 = vpack.c.bf16 %v449_v11, %v449_v11  ;;  %v5419_v12 = vmax.f32 %v5409_v62, %v1305_v3  ;;  %v1487_v11 = vmul.f32 1.442695, %v7249_v1 }
 0x199   : > { %374 = vst.msk [vmem:[#allocation4 + $0x78] sm:$0xff] %vm358_vm0, %v4686_v21  ;;  %1349 = vmax.xlane.f32.xlu2 %v1348_v56 }
 0x19a   : > { %375 = vst.msk [vmem:[#allocation4 + $0x80] sm:$0xff] %vm358_vm0, %v4686_v21  ;;  %v1353_v9 = vmax.f32 %v1352_v50, %v5401_v61  ;;  %v1310_v50 = vpop.xlane.xlu0 %1309  ;;  %4278 = vpow2.f32 %v1487_v11 }
 0x19b   : > { %376 = vst.msk [vmem:[#allocation4 + $0x88] sm:$0xff] %vm358_vm0, %v4686_v21 }
 0x19c   : > { %377 = vst.msk [vmem:[#allocation4 + $0x90] sm:$0xff] %vm358_vm0, %v4686_v21  ;;  %1354 = vmax.xlane.f32.xlu0 %v1353_v9  ;;  %v5447_v9 = vpop.f32.mrf.mxu0 }
 0x19d   : > { %7245 = vst [vmem:[#allocation58_spill] sm:$0xff] %v5385_v10  ;;  %v482_v10 = vpack.c.bf16 %v450_v7, %v450_v7  ;;  %v5429_v7 = vld [vmem:[#allocation2 + $0x48] sm:$0xff] }
 0x19e   : > { %378 = vst.msk [vmem:[#allocation4 + $0x98] sm:$0xff] %vm358_vm0, %v4686_v21  ;;  %v5440_v56 = vmax.f32 %v5429_v7, %v1310_v50  ;;  %v5461_v50 = vpop.f32.mrf.mxu2 }
 0x19f   : > { %379 = vst.msk [vmem:[#allocation4 + $0xa0] sm:$0xff] %vm358_vm0, %v4686_v21 }
 0x1a0   : > { %380 = vst.msk [vmem:[#allocation4 + $0xa8] sm:$0xff] %vm358_vm0, %v4686_v21 }
 0x1a1   : > { %3193 = vst.msk [vmem:[#allocation2 + $0x38] sm:$0xff] %vm293_vm2, %v5391_v57  ;;  %v1315_v60 = vpop.xlane.xlu1 %1314 }
 0x1a2   : > { %7246 = vst [vmem:[#allocation59_spill] sm:$0xff] %v5401_v61 }
 0x1a3   : > { %381 = vst.msk [vmem:[#allocation4 + $0xb0] sm:$0xff] %vm358_vm0, %v4686_v21 }
 0x1a4   : > { %382 = vst.msk [vmem:[#allocation4 + $0xb8] sm:$0xff] %vm358_vm0, %v4686_v21 }
 0x1a5   : > { %383 = vst.msk [vmem:[#allocation4 + $0xc0] sm:$0xff] %vm358_vm0, %v4686_v21 }
 0x1a6   : > { %384 = vst.msk [vmem:[#allocation4 + $0xc8] sm:$0xff] %vm358_vm0, %v4686_v21 }
 0x1a7   : > { %385 = vst.msk [vmem:[#allocation4 + $0xd0] sm:$0xff] %vm358_vm0, %v4686_v21 }
 0x1a8   : > { %514 = vst.msk [vmem:[#allocation5 + $0x68] sm:$0xf] %vm487_vm1, %v481_v28  ;;  %v420_v28 = vld [vmem:[%s4785_s23 + $0xe8] sm:$0xff] }
 0x1a9   : > { %515 = vst.msk [vmem:[#allocation5 + $0x6c] sm:$0xf] %vm487_vm1, %v482_v10  ;;  %v1455_v10 = vsub.f32 %v5248_v27, %v5257_v42  ;;  %v5449_v27 = vpop.f32.mrf.mxu1  ;;  %v419_v42 = vld [vmem:[%s4785_s23 + $0xe0] sm:$0xff]  ;;  %v452_v61 = vmul.f32 0.125, %v420_v28 }
 0x1aa   : > { %3194 = vst.msk [vmem:[#allocation2 + $0x40] sm:$0xff] %vm293_vm2, %v5419_v12  ;;  %v1356_v52 = vmax.f32 %v5447_v9, %v5449_v27  ;;  %v451_v1 = vmul.f32 0.125, %v419_v42  ;;  %v2700_v42 = vld [vmem:[%s5489_s26 + $0xf0] sm:$0xff] }
 0x1ab   : > { %386 = vst.msk [vmem:[#allocation4 + $0xd8] sm:$0xff] %vm358_vm0, %v4686_v21 }
 0x1ac   : > { %387 = vst.msk [vmem:[#allocation4 + $0xe0] sm:$0xff] %vm358_vm0, %v4686_v21  ;;  %v483_v49 = vpack.c.bf16 %v451_v1, %v451_v1  ;;  %v2701_v1 = vld [vmem:[%s5489_s26 + $0xf8] sm:$0xff] }
 0x1ad   : > { %7247 = vst [vmem:[#allocation60_spill] sm:$0xff] %v5429_v7  ;;  %v2696_v7 = vld [vmem:[%s5489_s26 + $0xd0] sm:$0xff] }
 0x1ae   : > { %388 = vst.msk [vmem:[#allocation4 + $0xe8] sm:$0xff] %vm358_vm0, %v4686_v21 }
 0x1af   : > { %389 = vst.msk [vmem:[#allocation4 + $0xf0] sm:$0xff] %vm358_vm0, %v4686_v21 }
 0x1b0   : > { %390 = vst.msk [vmem:[#allocation4 + $0xf8] sm:$0xff] %vm358_vm0, %v4686_v21  ;;  %v4243_v3 = vld [vmem:[#allocation5 + $0x68] sm:$0xff]  ;;  %v1489_v21 = vmul.f32 1.442695, %v1455_v10  ;;  %v1457_v10 = vsub.f32 %v5294_v35, %v5301_v16 }
 0x1b1   : > { %7248 = vst [vmem:[#allocation61_spill] sm:$0xff] %v5440_v56  ;;  %4173 = vmatmul.msk.bf16.gmra.mxu0 %vm358_vm0, %v4243_v3  ;;  %4189 = vmatmul.msk.bf16.gmra.mxu1 %vm358_vm0, %v4243_v3  ;;  %v1325_v53 = vpop.xlane.xlu0 %1324 }
 0x1b2   : > { %3195 = vst.msk [vmem:[#allocation2 + $0x48] sm:$0xff] %vm293_vm2, %v5440_v56  ;;  %4205 = vmatmul.msk.bf16.gmra.mxu2 %vm358_vm0, %v4243_v3  ;;  %4221 = vmatmul.msk.bf16.gmra.mxu3 %vm358_vm0, %v4243_v3  ;;  %4280 = vpow2.f32 %v1489_v21  ;;  %v5466_v3 = vmax.f32 %v5457_v23, %v1315_v60  ;;  %v1493_v11 = vmul.f32 1.442695, %v1457_v10  ;;  %v5474_v21 = vpop.eup %4278  ;;  %v5480_v60 = vld [vmem:[#allocation2 + $0x58] sm:$0xff]  ;;  %v2716_v10 = vld [vmem:[%s5489_s26 + $0x170] sm:$0xff]  ;;  %v2718_v56 = vld [vmem:[%s5489_s26 + $0x180] sm:$0xff] }
 0x1b3   : > { %7250 = vst [vmem:[#allocation62_spill] sm:$0xff] %v5447_v9  ;;  %v1357_v9 = vmax.f32 %v1356_v52, %v5461_v50  ;;  %2421 = vperm.xlu2 %4273, %v5474_v21   ;;  %v2685_v52 = vld [vmem:[%s5489_s26 + $0x78] sm:$0xff] }
 0x1b4   : > { %7251 = vst [vmem:[#allocation63_spill] sm:$0xff] %v5449_v27  ;;  %v484_v27 = vpack.c.bf16 %v452_v61, %v452_v61  ;;  %4282 = vpow2.f32 %v1493_v11  ;;  %v2717_v11 = vld [vmem:[%s5489_s26 + $0x178] sm:$0xff] }
 0x1b5   : > { %7252 = vst [vmem:[#allocation64_spill] sm:$0xff] %v5461_v50  ;;  %v1358_v61 = vmax.f32 %v1357_v9, %v5469_v43  ;;  %v2732_v50 = vld [vmem:[%s5489_s26 + $0x1f0] sm:$0xff] }
 0x1b6   : > { %7253 = vst [vmem:[#allocation65_spill] sm:$0xff] %v5469_v43 }
 0x1b7   : > { %3196 = vst.msk [vmem:[#allocation2 + $0x50] sm:$0xff] %vm293_vm2, %v5466_v3  ;;  %1359 = vmax.xlane.f32.xlu1 %v1358_v61  ;;  %v5503_v61 = vld [vmem:[#allocation2 + $0x60] sm:$0xff] }
 0x1b8   : > { %516 = vst.msk [vmem:[#allocation5 + $0x70] sm:$0xf] %vm487_vm1, %v483_v49  ;;  %v5477_v35 = vpop.eup %4280  ;;  %v1320_v49 = vpop.xlane.xlu2 %1319 }
 0x1b9   : > { %7254 = vst [vmem:[#allocation66_spill] sm:$0xff] %v5474_v21  ;;  %2426 = vperm.xlu0 %4274, %v5477_v35   ;;  %v5492_v9 = vmax.f32 %v5480_v60, %v1320_v49  ;;  %v2749_v49 = vpack.c.bf16 %v2701_v1, %v2700_v42  ;;  %v2733_v21 = vld [vmem:[%s5489_s26 + $0x1f8] sm:$0xff]  ;;  %v2714_v1 = vld [vmem:[%s5489_s26 + $0x160] sm:$0xff] }
 0x1ba   : > { %517 = vst.msk [vmem:[#allocation5 + $0x74] sm:$0xf] %vm487_vm1, %v484_v27  ;;  %v2684_v27 = vld [vmem:[%s5489_s26 + $0x70] sm:$0xff]  ;;  %v5506_v36 = vpop.eup %4282 }
 0x1bb   : > { %7255 = vst [vmem:[#allocation67_spill] sm:$0xff] %v5477_v35  ;;  %v2741_v28 = vpack.c.bf16 %v2685_v52, %v2684_v27  ;;  %v2757_v35 = vpack.c.bf16 %v2717_v11, %v2716_v10  ;;  %1566 = vperm.xlu2 %4273, %v5279_v20   ;;  %v2765_v27 = vpack.c.bf16 %v2733_v21, %v2732_v50  ;;  %v2682_v52 = vld [vmem:[%s5489_s26 + $0x60] sm:$0xff]  ;;  %v2715_v10 = vld [vmem:[%s5489_s26 + $0x168] sm:$0xff] }
 0x1bc   : > { %7256 = vst [vmem:[#allocation68_spill] sm:$0xff] %v5480_v60  ;;  %v2698_v60 = vld [vmem:[%s5489_s26 + $0xe0] sm:$0xff]  ;;  %v2740_v42 = vpack.c.bf16 %v2683_v33, %v2682_v52  ;;  %v1456_v11 = vsub.f32 %v5269_v18, %v5279_v20  ;;  %v2731_v21 = vld [vmem:[%s5489_s26 + $0x1e8] sm:$0xff]  ;;  %v5526_v33 = vmax.f32 %v5503_v61, %v1325_v53  ;;  %2855 = vmatpush.bf16.msrb.mxu1 %v2749_v49  ;;  %v422_v52 = vld [vmem:[%s4785_s23 + $0xf8] sm:$0xff] }
 0x1bd   : > { %3197 = vst.msk [vmem:[#allocation2 + $0x58] sm:$0xff] %vm293_vm2, %v5492_v9  ;;  %2766 = vmatpush.bf16.msrb.mxu0 %v2741_v28  ;;  %v2699_v28 = vld [vmem:[%s5489_s26 + $0xe8] sm:$0xff]  ;;  %v2730_v50 = vld [vmem:[%s5489_s26 + $0x1e0] sm:$0xff]  ;;  %2944 = vmatpush.bf16.msrb.mxu2 %v2757_v35  ;;  %v2756_v18 = vpack.c.bf16 %v2715_v10, %v2714_v1  ;;  %v454_v59 = vmul.f32 0.125, %v422_v52  ;;  %v2739_v53 = vpack.c.bf16 %v2681_v46, %v2680_v48  ;;  %v2697_v49 = vld [vmem:[%s5489_s26 + $0xd8] sm:$0xff]  ;;  %v1330_v52 = vpop.xlane.xlu1 %1329 }
 0x1be   : > { %7257 = vst [vmem:[#allocation69_spill] sm:$0xff] %v5503_v61  ;;  %v2748_v20 = vpack.c.bf16 %v2699_v28, %v2698_v60  ;;  %3033 = vmatpush.bf16.msrb.mxu3 %v2765_v27  ;;  %v2712_v35 = vld [vmem:[%s5489_s26 + $0x150] sm:$0xff]  ;;  %v2713_v60 = vld [vmem:[%s5489_s26 + $0x158] sm:$0xff]  ;;  %v5539_v10 = vld [vmem:[#allocation2 + $0x68] sm:$0xff] }
 0x1bf   : > { %7258 = vst [vmem:[#allocation70_spill] sm:$0xff] %v5506_v36  ;;  %v2728_v1 = vld [vmem:[%s5489_s26 + $0x1d0] sm:$0xff]  ;;  %v486_v27 = vpack.c.bf16 %v454_v59, %v454_v59  ;;  %v2755_v46 = vpack.c.bf16 %v2713_v60, %v2712_v35  ;;  %v2679_v59 = vld [vmem:[%s5489_s26 + $0x48] sm:$0xff]  ;;  %v2706_v61 = vld [vmem:[%s5489_s26 + $0x120] sm:$0xff] }
 0x1c0   : > { %7259 = vst [vmem:[#allocation71_spill] sm:$0xff] %v5526_v33  ;;  %2856 = vmatpush.bf16.msrb.mxu1 %v2748_v20  ;;  %v2695_v20 = vld [vmem:[%s5489_s26 + $0xc8] sm:$0xff] }
 0x1c1   : > { %v4244_v43 = vld [vmem:[#allocation5 + $0x70] sm:$0xff]  ;;  %2436 = vperm.xlu0 %4274, %v5506_v36   ;;  %2767 = vmatpush.bf16.msrb.mxu0 %v2740_v42  ;;  %3198 = vst.msk [vmem:[#allocation2 + $0x60] sm:$0xff] %vm293_vm2, %v5526_v33  ;;  %v1491_v42 = vmul.f32 1.442695, %v1456_v11  ;;  %v2694_v11 = vld [vmem:[%s5489_s26 + $0xc0] sm:$0xff]  ;;  %v2673_v33 = vld [vmem:[%s5489_s26 + $0x18] sm:$0xff] }
 0x1c2   : > { %4174 = vmatmul.msk.bf16.gmra.mxu0 %vm358_vm0, %v4244_v43  ;;  %4190 = vmatmul.msk.bf16.gmra.mxu1 %vm358_vm0, %v4244_v43  ;;  %v421_v36 = vld [vmem:[%s4785_s23 + $0xf0] sm:$0xff]  ;;  %7260 = vst [vmem:[#allocation72_spill] sm:$0xff] %v5539_v10 }
 0x1c3   : > { %4206 = vmatmul.msk.bf16.gmra.mxu2 %vm358_vm0, %v4244_v43  ;;  %4222 = vmatmul.msk.bf16.gmra.mxu3 %vm358_vm0, %v4244_v43  ;;  %v453_v51 = vmul.f32 0.125, %v421_v36  ;;  %v2764_v43 = vpack.c.bf16 %v2731_v21, %v2730_v50  ;;  %v2729_v36 = vld [vmem:[%s5489_s26 + $0x1d8] sm:$0xff]  ;;  %v2747_v50 = vpack.c.bf16 %v2697_v49, %v2696_v7  ;;  %519 = vst.msk [vmem:[#allocation5 + $0x7c] sm:$0xf] %vm487_vm1, %v486_v27  ;;  %v2710_v7 = vld [vmem:[%s5489_s26 + $0x140] sm:$0xff]  ;;  %4284 = vpow2.f32 %v1491_v42 }
 0x1c4   : > { %2945 = vmatpush.bf16.msrb.mxu2 %v2756_v18  ;;  %1571 = vperm.xlu2 %4273, %v5301_v16   ;;  %v2763_v48 = vpack.c.bf16 %v2729_v36, %v2728_v1  ;;  %v2711_v18 = vld [vmem:[%s5489_s26 + $0x148] sm:$0xff]  ;;  %v2726_v49 = vld [vmem:[%s5489_s26 + $0x1c0] sm:$0xff]  ;;  %v2677_v1 = vld [vmem:[%s5489_s26 + $0x38] sm:$0xff] }
 0x1c5   : > { %v485_v28 = vpack.c.bf16 %v453_v51, %v453_v51  ;;  %3034 = vmatpush.bf16.msrb.mxu3 %v2764_v43  ;;  %v2678_v51 = vld [vmem:[%s5489_s26 + $0x40] sm:$0xff]  ;;  %2768 = vmatpush.bf16.msrb.mxu0 %v2739_v53  ;;  %v2727_v16 = vld [vmem:[%s5489_s26 + $0x1c8] sm:$0xff]  ;;  %v5553_v43 = vmax.f32 %v5539_v10, %v1330_v52  ;;  %v2746_v53 = vpack.c.bf16 %v2695_v20, %v2694_v11  ;;  %v2692_v36 = vld [vmem:[%s5489_s26 + $0xb0] sm:$0xff] }
 0x1c6   : > { %v2738_v21 = vpack.c.bf16 %v2679_v59, %v2678_v51  ;;  %2857 = vmatpush.bf16.msrb.mxu1 %v2747_v50  ;;  %v2754_v35 = vpack.c.bf16 %v2711_v18, %v2710_v7  ;;  %v2762_v60 = vpack.c.bf16 %v2727_v16, %v2726_v49  ;;  %v2693_v27 = vld [vmem:[%s5489_s26 + $0xb8] sm:$0xff]  ;;  %v2708_v51 = vld [vmem:[%s5489_s26 + $0x130] sm:$0xff]  ;;  %v2675_v18 = vld [vmem:[%s5489_s26 + $0x28] sm:$0xff]  ;;  %v5570_v49 = vpop.f32.mrf.mxu0 }
 0x1c7   : > { %518 = vst.msk [vmem:[#allocation5 + $0x78] sm:$0xf] %vm487_vm1, %v485_v28  ;;  %v2676_v28 = vld [vmem:[%s5489_s26 + $0x30] sm:$0xff]  ;;  %v2709_v50 = vld [vmem:[%s5489_s26 + $0x138] sm:$0xff]  ;;  %v2745_v20 = vpack.c.bf16 %v2693_v27, %v2692_v36  ;;  %v2690_v52 = vld [vmem:[%s5489_s26 + $0xa0] sm:$0xff] }
 0x1c8   : > { %7261 = vst [vmem:[#allocation73_spill] sm:$0xff] %v5553_v43  ;;  %2946 = vmatpush.bf16.msrb.mxu2 %v2755_v46  ;;  %v2724_v59 = vld [vmem:[%s5489_s26 + $0x1b0] sm:$0xff]  ;;  %v2725_v46 = vld [vmem:[%s5489_s26 + $0x1b8] sm:$0xff]  ;;  %v2753_v7 = vpack.c.bf16 %v2709_v50, %v2708_v51  ;;  %v2722_v36 = vld [vmem:[%s5489_s26 + $0x1a0] sm:$0xff] }
 0x1c9   : > { %3035 = vmatpush.bf16.msrb.mxu3 %v2763_v48  ;;  %3199 = vst.msk [vmem:[#allocation2 + $0x68] sm:$0xff] %vm293_vm2, %v5553_v43  ;;  %2769 = vmatpush.bf16.msrb.mxu0 %v2738_v21  ;;  %v5565_v11 = vld [vmem:[#allocation2 + $0x70] sm:$0xff]  ;;  %v2737_v48 = vpack.c.bf16 %v2677_v1, %v2676_v28  ;;  %v2674_v21 = vld [vmem:[%s5489_s26 + $0x20] sm:$0xff]  ;;  %v2761_v16 = vpack.c.bf16 %v2725_v46, %v2724_v59  ;;  %v5577_v28 = vpop.eup %4284  ;;  %v5579_v1 = vpop.f32.mrf.mxu1  ;;  %v2723_v27 = vld [vmem:[%s5489_s26 + $0x1a8] sm:$0xff] }
 0x1ca   : > { %7262 = vst [vmem:[#allocation74_spill] sm:$0xff] %v5565_v11  ;;  %2858 = vmatpush.bf16.msrb.mxu1 %v2746_v53  ;;  %v2691_v53 = vld [vmem:[%s5489_s26 + $0xa8] sm:$0xff]  ;;  %v2736_v50 = vpack.c.bf16 %v2675_v18, %v2674_v21  ;;  %v2704_v10 = vld [vmem:[%s5489_s26 + $0x110] sm:$0xff]  ;;  %v2705_v21 = vld [vmem:[%s5489_s26 + $0x118] sm:$0xff]  ;;  %v1340_v55 = vpop.xlane.xlu0 %1339 }
 0x1cb   : > { %7263 = vst [vmem:[#allocation75_spill] sm:$0xff] %v5570_v49  ;;  %v2744_v59 = vpack.c.bf16 %v2691_v53, %v2690_v52  ;;  %v2671_v53 = vld [vmem:[%s5489_s26 + $0x8] sm:$0xff] }
 0x1cc   : > { %2947 = vmatpush.bf16.msrb.mxu2 %v2754_v35  ;;  %v2707_v35 = vld [vmem:[%s5489_s26 + $0x128] sm:$0xff]  ;;  %7264 = vst [vmem:[#allocation76_spill] sm:$0xff] %v5577_v28 }
 0x1cd   : > { %3036 = vmatpush.bf16.msrb.mxu3 %v2762_v60  ;;  %v1335_v60 = vpop.xlane.xlu2 %1334  ;;  %7265 = vst [vmem:[#allocation77_spill] sm:$0xff] %v5579_v1  ;;  %2770 = vmatpush.bf16.msrb.mxu0 %v2737_v48  ;;  %v2752_v46 = vpack.c.bf16 %v2707_v35, %v2706_v61  ;;  %v5596_v48 = vpop.f32.mrf.mxu2  ;;  %v2721_v61 = vld [vmem:[%s5489_s26 + $0x198] sm:$0xff]  ;;  %v2687_v43 = vld [vmem:[%s5489_s26 + $0x88] sm:$0xff] }
 0x1ce   : > { %v4245_v42 = vld [vmem:[#allocation5 + $0x78] sm:$0xff]  ;;  %v5586_v51 = vmax.f32 %v5565_v11, %v1335_v60  ;;  %2859 = vmatpush.bf16.msrb.mxu1 %v2745_v20  ;;  %v2760_v60 = vpack.c.bf16 %v2723_v27, %v2722_v36  ;;  %v2688_v11 = vld [vmem:[%s5489_s26 + $0x90] sm:$0xff]  ;;  %7267 = vst [vmem:[#allocation79_spill] sm:$0xff] %v5596_v48  ;;  %v5605_v35 = vpop.f32.mrf.mxu3  ;;  %v2751_v36 = vpack.c.bf16 %v2705_v21, %v2704_v10 }
 0x1cf   : > { %v2720_v20 = vld [vmem:[%s5489_s26 + $0x190] sm:$0xff]  ;;  %7268 = vst [vmem:[#allocation80_spill] sm:$0xff] %v5605_v35 }
 0x1d0   : > { %7266 = vst [vmem:[#allocation78_spill] sm:$0xff] %v5586_v51  ;;  %2431 = vperm.xlu1 %4275, %v5577_v28   ;;  %2948 = vmatpush.bf16.msrb.mxu2 %v2753_v7  ;;  %v2689_v28 = vld [vmem:[%s5489_s26 + $0x98] sm:$0xff]  ;;  %v2759_v27 = vpack.c.bf16 %v2721_v61, %v2720_v20 }
 0x1d1   : > { %3200 = vst.msk [vmem:[#allocation2 + $0x70] sm:$0xff] %vm293_vm2, %v5586_v51  ;;  %3037 = vmatpush.bf16.msrb.mxu3 %v2761_v16  ;;  %2771 = vmatpush.bf16.msrb.mxu0 %v2736_v50  ;;  %v5601_v7 = vld [vmem:[#allocation2 + $0x78] sm:$0xff]  ;;  %v2743_v52 = vpack.c.bf16 %v2689_v28, %v2688_v11  ;;  %v2670_v16 = vld [vmem:[%s5489_s26] sm:$0xff]  ;;  %v5623_v21 = vpop.f32.mrf.mxu1 }
 0x1d2   : > { %4175 = vmatmul.msk.bf16.gmra.mxu0 %vm358_vm0, %v4245_v42  ;;  %4191 = vmatmul.msk.bf16.gmra.mxu1 %vm358_vm0, %v4245_v42  ;;  %v2686_v51 = vld [vmem:[%s5489_s26 + $0x80] sm:$0xff]  ;;  %v2734_v28 = vpack.c.bf16 %v2671_v53, %v2670_v16  ;;  %7270 = vst [vmem:[#allocation82_spill] sm:$0xff] %v5623_v21 }
 0x1d3   : > { %4207 = vmatmul.msk.bf16.gmra.mxu2 %vm358_vm0, %v4245_v42  ;;  %4223 = vmatmul.msk.bf16.gmra.mxu3 %vm358_vm0, %v4245_v42  ;;  %v2672_v42 = vld [vmem:[%s5489_s26 + $0x10] sm:$0xff]  ;;  %v2742_v20 = vpack.c.bf16 %v2687_v43, %v2686_v51  ;;  %v5629_v16 = vld [vmem:[#allocation2 + $0x80] sm:$0xff] }
 0x1d4   : > { %2860 = vmatpush.bf16.msrb.mxu1 %v2744_v59  ;;  %2949 = vmatpush.bf16.msrb.mxu2 %v2752_v46  ;;  %v2735_v18 = vpack.c.bf16 %v2673_v33, %v2672_v42  ;;  %v2719_v59 = vld [vmem:[%s5489_s26 + $0x188] sm:$0xff]  ;;  %v5619_v42 = vmax.f32 %v5601_v7, %v1340_v55 }
 0x1d5   : > { %3038 = vmatpush.bf16.msrb.mxu3 %v2760_v60  ;;  %v1552_v50 = vpop.permute.xlu2 %1551  ;;  %v5621_v60 = vpop.f32.mrf.mxu0 }
 0x1d6   : > { %v1709_v46 = vsub.f32 %v4907_v63, %v1552_v50  ;;  %v1710_v33 = vsub.f32 %v4909_v0, %v1552_v50  ;;  %v1711_v11 = vsub.f32 %v4917_v2, %v1552_v50  ;;  %v1712_v10 = vsub.f32 %v4920_v4, %v1552_v50  ;;  %7269 = vst [vmem:[#allocation81_spill] sm:$0xff] %v5621_v60  ;;  %v5638_v43 = vpop.f32.mrf.mxu3 }
 0x1d7   : > { %2772 = vmatpush.bf16.msrb.mxu0 %v2735_v18  ;;  %v2750_v0 = vpack.c.bf16 %v2703_v54, %v2702_v58  ;;  %v2758_v2 = vpack.c.bf16 %v2719_v59, %v2718_v56  ;;  %3201 = vst.msk [vmem:[#allocation2 + $0x78] sm:$0xff] %vm293_vm2, %v5619_v42  ;;  %v1366_v4 = vmax.f32 %v5621_v60, %v5623_v21  ;;  %v5631_v18 = vpop.f32.mrf.mxu2  ;;  %v1345_v54 = vpop.xlane.xlu1 %1344  ;;  %v7323_v21 = vld [vmem:[#allocation8_spill] sm:$0xff]  ;;  %v7324_v60 = vld [vmem:[#allocation9_spill] sm:$0xff] }
 0x1d8   : > { %1576 = vperm.xlu1 %4275, %v5325_v17   ;;  %2861 = vmatpush.bf16.msrb.mxu1 %v2743_v52  ;;  %v1837_v63 = vmul.f32 1.442695, %v1709_v46  ;;  %v1839_v61 = vmul.f32 1.442695, %v1710_v33  ;;  %v1841_v45 = vmul.f32 1.442695, %v1711_v11  ;;  %v5634_v58 = vmax.f32 %v5629_v16, %v1345_v54 }
 0x1d9   : > { %2950 = vmatpush.bf16.msrb.mxu2 %v2751_v36  ;;  %3039 = vmatpush.bf16.msrb.mxu3 %v2759_v27  ;;  %v1843_v55 = vmul.f32 1.442695, %v1712_v10  ;;  %7271 = vst [vmem:[#allocation83_spill] sm:$0xff] %v5631_v18  ;;  %v1367_v56 = vmax.f32 %v1366_v4, %v5631_v18  ;;  %v1361_v52 = vmax.f32 %v5570_v49, %v5579_v1  ;;  %v7322_v18 = vld [vmem:[#allocation7_spill] sm:$0xff] }
 0x1da   : > { %4286 = vpow2.f32 %v1837_v63  ;;  %7272 = vst [vmem:[#allocation84_spill] sm:$0xff] %v5638_v43 }
 0x1db   : > { %4288 = vpow2.f32 %v1839_v61  ;;  %2773 = vmatpush.bf16.msrb.mxu0 %v2734_v28  ;;  %3202 = vst.msk [vmem:[#allocation2 + $0x80] sm:$0xff] %vm293_vm2, %v5634_v58  ;;  %v1362_v50 = vmax.f32 %v1361_v52, %v5596_v48  ;;  %v7325_v48 = vld [vmem:[#allocation10_spill] sm:$0xff] }
 0x1dc   : > { %2862 = vmatpush.bf16.msrb.mxu1 %v2742_v20  ;;  %4290 = vpow2.f32 %v1841_v45  ;;  %v1368_v45 = vmax.f32 %v1367_v56, %v5638_v43  ;;  %v1460_v56 = vsub.f32 %v5377_v29, %v5391_v57 }
 0x1dd   : > { %2951 = vmatpush.bf16.msrb.mxu2 %v2750_v0  ;;  %3040 = vmatpush.bf16.msrb.mxu3 %v2758_v2  ;;  %4292 = vpow2.f32 %v1843_v55  ;;  %v1557_v11 = vpop.permute.xlu0 %1556  ;;  %v1363_v28 = vmax.f32 %v1362_v50, %v5605_v35  ;;  %v5660_v29 = vpop.f32.mrf.mxu0 }
 0x1de   : > { %v1713_v10 = vsub.f32 %v4922_v5, %v1557_v11  ;;  %v1714_v20 = vsub.f32 %v4924_v6, %v1557_v11  ;;  %v1715_v63 = vsub.f32 %v4931_v13, %v1557_v11  ;;  %v1716_v61 = vsub.f32 %v4933_v14, %v1557_v11  ;;  %7273 = vst [vmem:[#allocation85_spill] sm:$0xff] %v5660_v29 }
 0x1e0   : > { %1586 = vperm.xlu1 %4275, %v5391_v57   ;;  %v4287_v51 = vpop.eup %4286  ;;  %v1845_v0 = vmul.f32 1.442695, %v1713_v10  ;;  %v1847_v2 = vmul.f32 1.442695, %v1714_v20  ;;  %v1849_v4 = vmul.f32 1.442695, %v1715_v63  ;;  %v5662_v57 = vpop.f32.mrf.mxu1 }
 0x1e1   : > { %v4289_v53 = vpop.eup %4288  ;;  %v1851_v55 = vmul.f32 1.442695, %v1716_v61  ;;  %7274 = vst [vmem:[#allocation86_spill] sm:$0xff] %v5662_v57  ;;  %v5671_v61 = vpop.f32.mrf.mxu2 }
 0x1e2   : > { %v2157_v36 = vadd.f32 %v4289_v53, %v4287_v51  ;;  %v4291_v27 = vpop.eup %4290  ;;  %4294 = vpow2.f32 %v1845_v0  ;;  %7275 = vst [vmem:[#allocation87_spill] sm:$0xff] %v5671_v61 }
 0x1e3   : > { %v4293_v46 = vpop.eup %4292  ;;  %4296 = vpow2.f32 %v1847_v2 }
 0x1e4   : > { %v2158_v59 = vadd.f32 %v4291_v27, %v2157_v36  ;;  %4298 = vpow2.f32 %v1849_v4 }
 0x1e5   : > { %4300 = vpow2.f32 %v1851_v55 }
 0x1e6   : > { %v5646_v33 = vadd.f32 %v4293_v46, %v2158_v59  ;;  %v1499_v59 = vmul.f32 1.442695, %v1460_v56 }
 0x1e8   : > { %v4295_v54 = vpop.eup %4294  ;;  %4302 = vpow2.f32 %v1499_v59 }
 0x1e9   : > { %v4297_v5 = vpop.eup %4296  ;;  %v2606_v52 = vpack.c.bf16 %v4295_v54, %v4287_v51  ;;  %v1458_v51 = vsub.f32 %v5316_v38, %v5325_v17 }
 0x1ea   : > { %v4299_v6 = vpop.eup %4298  ;;  %v2607_v13 = vpack.c.bf16 %v4297_v5, %v4289_v53  ;;  %v2162_v14 = vadd.f32 %v4297_v5, %v4295_v54  ;;  %v1371_v53 = vmax.f32 %v5660_v29, %v5662_v57 }
 0x1eb   : > { %1369 = vmax.xlane.f32.xlu0 %v1368_v45  ;;  %v5655_v45 = vpop.permute.xlu1 %2416  ;;  %v4301_v36 = vpop.eup %4300  ;;  %2774 = vmatmul.bf16.vlgmr.msrb.gmra.mxu0 %v2606_v52  ;;  %v2608_v50 = vpack.c.bf16 %v4299_v6, %v4291_v27  ;;  %v1495_v2 = vmul.f32 1.442695, %v1458_v51  ;;  %v1459_v51 = vsub.f32 %v5346_v47, %v5357_v8 }
 0x1ec   : > { %2863 = vmatmul.bf16.vlgmr.msrb.gmra.mxu1 %v2607_v13  ;;  %v2609_v11 = vpack.c.bf16 %v4301_v36, %v4293_v46  ;;  %v1372_v4 = vmax.f32 %v1371_v53, %v5671_v61  ;;  %v5693_v13 = vld [vmem:[#allocation2 + $0x88] sm:$0xff]  ;;  %v7299_v61 = vld [vmem:[#allocation6_spill] sm:$0xff] }
 0x1ed   : > { %1364 = vmax.xlane.f32.xlu2 %v1363_v28  ;;  %v2163_v28 = vadd.f32 %v4299_v6, %v2162_v14  ;;  %2952 = vmatmul.bf16.vlgmr.msrb.gmra.mxu2 %v2608_v50 }
 0x1ee   : > { %3041 = vmatmul.bf16.vlgmr.msrb.gmra.mxu3 %v2609_v11  ;;  %v5675_v38 = vpop.eup %4302 }
 0x1ef   : > { %v5657_v10 = vadd.f32 %v4301_v36, %v2163_v28  ;;  %7276 = vst [vmem:[#allocation88_spill] sm:$0xff] %v5675_v38  ;;  %v5706_v28 = vld [vmem:[#allocation2 + $0x90] sm:$0xff] }
 0x1f3   : > { %v1562_v27 = vpop.permute.xlu1 %1561 }
 0x1f4   : > { %v1717_v46 = vsub.f32 %v4935_v15, %v1562_v27  ;;  %v1718_v20 = vsub.f32 %v4938_v19, %v1562_v27  ;;  %v1719_v63 = vsub.f32 %v4945_v22, %v1562_v27  ;;  %v1720_v0 = vsub.f32 %v4948_v24, %v1562_v27  ;;  %v5678_v15 = vpop.f32.mrf.mxu3 }
 0x1f5   : > { %7277 = vst [vmem:[#allocation89_spill] sm:$0xff] %v5678_v15  ;;  %v1373_v22 = vmax.f32 %v1372_v4, %v5678_v15 }
 0x1f6   : > { %v1853_v55 = vmul.f32 1.442695, %v1717_v46  ;;  %v1855_v54 = vmul.f32 1.442695, %v1718_v20  ;;  %v1857_v17 = vmul.f32 1.442695, %v1719_v63  ;;  %v5713_v46 = vpop.f32.mrf.mxu0  ;;  %v5715_v20 = vpop.f32.mrf.mxu1 }
 0x1f7   : > { %v1859_v19 = vmul.f32 1.442695, %v1720_v0  ;;  %7279 = vst [vmem:[#allocation91_spill] sm:$0xff] %v5713_v46  ;;  %v1497_v63 = vmul.f32 1.442695, %v1459_v51 }
 0x1f8   : > { %4304 = vpow2.f32 %v1853_v55  ;;  %7280 = vst [vmem:[#allocation92_spill] sm:$0xff] %v5715_v20 }
 0x1f9   : > { %4306 = vpow2.f32 %v1855_v54 }
 0x1fa   : > { %4308 = vpow2.f32 %v1495_v2  ;;  %v5721_v2 = vpop.f32.mrf.mxu2 }
 0x1fb   : > { %4310 = vpow2.f32 %v1857_v17  ;;  %7281 = vst [vmem:[#allocation93_spill] sm:$0xff] %v5721_v2 }
 0x1fc   : > { %4312 = vpow2.f32 %v1859_v19  ;;  %v5723_v4 = vpop.f32.mrf.mxu3 }
 0x1fd   : > { %4314 = vpow2.f32 %v1497_v63  ;;  %7282 = vst [vmem:[#allocation94_spill] sm:$0xff] %v5723_v4 }
 0x1fe   : > { %v5682_v24 = vpop.eup %4304 }
 0x1ff   : > { %1591 = vperm.xlu0 %4274, %v5419_v12   ;;  %v5684_v56 = vpop.eup %4306 }
 0x200   : > { %v5686_v5 = vpop.eup %4308  ;;  %v2167_v52 = vadd.f32 %v5684_v56, %v5682_v24 }
 0x201   : > { %7278 = vst [vmem:[#allocation90_spill] sm:$0xff] %v5686_v5  ;;  %v5690_v6 = vpop.eup %4310 }
 0x202   : > { %v2168_v14 = vadd.f32 %v5690_v6, %v2167_v52  ;;  %v5696_v36 = vpop.eup %4312 }
 0x203   : > { %v5733_v52 = vpop.eup %4314 }
 0x204   : > { %v5699_v59 = vadd.f32 %v5696_v36, %v2168_v14  ;;  %v5727_v47 = vpop.f32.mrf.mxu1  ;;  %7285 = vst [vmem:[#allocation97_spill] sm:$0xff] %v5733_v52 }
 0x205   : > { %1581 = vperm.xlu2 %4273, %v5357_v8   ;;  %v5725_v8 = vpop.f32.mrf.mxu0  ;;  %7284 = vst [vmem:[#allocation96_spill] sm:$0xff] %v5727_v47 }
 0x206   : > { %7283 = vst [vmem:[#allocation95_spill] sm:$0xff] %v5725_v8  ;;  %v1381_v14 = vmax.f32 %v5725_v8, %v5727_v47 }
 0x207   : > { %2451 = vperm.xlu0 %4274, %v5675_v38  }
 0x209   : > { %v5738_v63 = vpop.f32.mrf.mxu2 }
 0x20a   : > { %1374 = vmax.xlane.f32.xlu1 %v1373_v22  ;;  %7286 = vst [vmem:[#allocation98_spill] sm:$0xff] %v5738_v63 }
 0x20c   : > { %v1350_v50 = vpop.xlane.xlu2 %1349 }
 0x20d   : > { %2441 = vperm.xlu2 %4273, %v5686_v5   ;;  %v5702_v11 = vmax.f32 %v5693_v13, %v1350_v50 }
 0x20f   : > { %3203 = vst.msk [vmem:[#allocation2 + $0x88] sm:$0xff] %vm293_vm2, %v5702_v11  ;;  %v1355_v53 = vpop.xlane.xlu0 %1354 }
 0x210   : > { %v5711_v27 = vmax.f32 %v5706_v28, %v1355_v53 }
 0x212   : > { %3204 = vst.msk [vmem:[#allocation2 + $0x90] sm:$0xff] %vm293_vm2, %v5711_v27 }
 0x214   : > { %v5717_v0 = vpop.permute.xlu2 %2421 }
 0x21c   : > { %v1567_v55 = vpop.permute.xlu2 %1566 }
 0x21d   : > { %v1721_v54 = vsub.f32 %v4950_v25, %v1567_v55  ;;  %v1722_v17 = vsub.f32 %v4952_v26, %v1567_v55  ;;  %v1723_v19 = vsub.f32 %v4961_v30, %v1567_v55  ;;  %v1724_v22 = vsub.f32 %v4963_v31, %v1567_v55  ;;  %v5741_v26 = vpop.f32.mrf.mxu3  ;;  %v5743_v31 = vld [vmem:[#allocation2 + $0x98] sm:$0xff] }
 0x21e   : > { %v1382_v25 = vmax.f32 %v1381_v14, %v5738_v63  ;;  %7287 = vst [vmem:[#allocation99_spill] sm:$0xff] %v5741_v26 }
 0x21f   : > { %v1861_v50 = vmul.f32 1.442695, %v1721_v54  ;;  %v1863_v51 = vmul.f32 1.442695, %v1722_v17  ;;  %v1865_v53 = vmul.f32 1.442695, %v1723_v19 }
 0x220   : > { %v1867_v15 = vmul.f32 1.442695, %v1724_v22 }
 0x221   : > { %4316 = vpow2.f32 %v1861_v50  ;;  %v1383_v50 = vmax.f32 %v1382_v25, %v5741_v26 }
 0x222   : > { %4318 = vpow2.f32 %v1863_v51 }
 0x223   : > { %2446 = vperm.xlu1 %4275, %v5733_v52   ;;  %4320 = vpow2.f32 %v1865_v53 }
 0x224   : > { %4322 = vpow2.f32 %v1867_v15  ;;  %v1572_v30 = vpop.permute.xlu2 %1571 }
 0x225   : > { %v1725_v55 = vsub.f32 %v4965_v32, %v1572_v30  ;;  %v1726_v54 = vsub.f32 %v4968_v34, %v1572_v30  ;;  %v1727_v17 = vsub.f32 %v4973_v37, %v1572_v30  ;;  %v1728_v19 = vsub.f32 %v4976_v39, %v1572_v30 }
 0x226   : > { %v1376_v37 = vmax.f32 %v5713_v46, %v5715_v20  ;;  %v7309_v20 = vld [vmem:[#allocation14_spill] sm:$0xff] }
 0x227   : > { %v4317_v51 = vpop.eup %4316  ;;  %v1869_v14 = vmul.f32 1.442695, %v1725_v55  ;;  %v1871_v53 = vmul.f32 1.442695, %v1726_v54  ;;  %v1873_v47 = vmul.f32 1.442695, %v1727_v17 }
 0x228   : > { %v4319_v15 = vpop.eup %4318  ;;  %v2610_v32 = vpack.c.bf16 %v4317_v51, %v5682_v24  ;;  %v1875_v55 = vmul.f32 1.442695, %v1728_v19 }
 0x229   : > { %v4321_v34 = vpop.eup %4320  ;;  %4324 = vpow2.f32 %v1869_v14  ;;  %v2611_v39 = vpack.c.bf16 %v4319_v15, %v5684_v56  ;;  %v2172_v25 = vadd.f32 %v4319_v15, %v4317_v51  ;;  %v5763_v14 = vpop.f32.mrf.mxu0 }
 0x22a   : > { %v1360_v22 = vpop.xlane.xlu1 %1359  ;;  %v4323_v30 = vpop.eup %4322  ;;  %4326 = vpow2.f32 %v1871_v53  ;;  %2779 = vmatmul.bf16.gmra.mxu0 %v2610_v32  ;;  %v2612_v54 = vpack.c.bf16 %v4321_v34, %v5690_v6  ;;  %7288 = vst [vmem:[#allocation100_spill] sm:$0xff] %v5763_v14 }
 0x22b   : > { %v5751_v63 = vmax.f32 %v5743_v31, %v1360_v22  ;;  %1601 = vperm.xlu1 %4275, %v5466_v3   ;;  %2868 = vmatmul.bf16.gmra.mxu1 %v2611_v39  ;;  %v2613_v24 = vpack.c.bf16 %v4323_v30, %v5696_v36  ;;  %v2173_v17 = vadd.f32 %v4321_v34, %v2172_v25  ;;  %4328 = vpow2.f32 %v1873_v47  ;;  %v5765_v56 = vpop.f32.mrf.mxu1  ;;  %v5778_v53 = vpop.f32.mrf.mxu2 }
 0x22c   : > { %2957 = vmatmul.bf16.gmra.mxu2 %v2612_v54  ;;  %v1377_v22 = vmax.f32 %v1376_v37, %v5721_v2  ;;  %7289 = vst [vmem:[#allocation101_spill] sm:$0xff] %v5765_v56  ;;  %4330 = vpow2.f32 %v1875_v55  ;;  %v5783_v34 = vpop.f32.mrf.mxu3  ;;  %v1463_v39 = vsub.f32 %v5457_v23, %v5466_v3  ;;  %v1461_v23 = vsub.f32 %v5409_v62, %v5419_v12 }
 0x22d   : > { %3205 = vst.msk [vmem:[#allocation2 + $0x98] sm:$0xff] %vm293_vm2, %v5751_v63  ;;  %3046 = vmatmul.bf16.gmra.mxu3 %v2613_v24  ;;  %v5767_v51 = vadd.f32 %v4323_v30, %v2173_v17 }
 0x22e   : > { %7290 = vst [vmem:[#allocation102_spill] sm:$0xff] %v5778_v53  ;;  %v1505_v55 = vmul.f32 1.442695, %v1463_v39  ;;  %v1386_v39 = vmax.f32 %v5763_v14, %v5765_v56  ;;  %v7302_v14 = vld [vmem:[#allocation61_spill] sm:$0xff] }
 0x22f   : > { %v5769_v19 = vpop.eup %4324  ;;  %7291 = vst [vmem:[#allocation103_spill] sm:$0xff] %v5783_v34 }
 0x230   : > { %v5771_v6 = vpop.eup %4326  ;;  %4332 = vpow2.f32 %v1505_v55 }
 0x231   : > { %1384 = vmax.xlane.f32.xlu0 %v1383_v50  ;;  %v1378_v50 = vmax.f32 %v1377_v22, %v5723_v4  ;;  %v2177_v36 = vadd.f32 %v5771_v6, %v5769_v19  ;;  %v5776_v47 = vpop.eup %4328  ;;  %v5790_v25 = vpop.f32.mrf.mxu0 }
 0x232   : > { %v5781_v32 = vpop.eup %4330  ;;  %7292 = vst [vmem:[#allocation104_spill] sm:$0xff] %v5790_v25 }
 0x233   : > { %v2178_v15 = vadd.f32 %v5776_v47, %v2177_v36  ;;  %v5792_v30 = vpop.f32.mrf.mxu1  ;;  %v5809_v36 = vpop.permute.xlu0 %2426 }
 0x234   : > { %7293 = vst [vmem:[#allocation105_spill] sm:$0xff] %v5792_v30 }
 0x235   : > { %v5786_v37 = vadd.f32 %v5781_v32, %v2178_v15  ;;  %v5794_v54 = vpop.f32.mrf.mxu2  ;;  %v5799_v17 = vpop.f32.mrf.mxu3  ;;  %v1501_v15 = vmul.f32 1.442695, %v1461_v23 }
 0x236   : > { %1379 = vmax.xlane.f32.xlu2 %v1378_v50  ;;  %7294 = vst [vmem:[#allocation106_spill] sm:$0xff] %v5794_v54  ;;  %v5807_v3 = vpop.eup %4332 }
 0x237   : > { %7295 = vst [vmem:[#allocation107_spill] sm:$0xff] %v5799_v17  ;;  %4334 = vpow2.f32 %v1501_v15 }
 0x238   : > { %7298 = vst [vmem:[#allocation110_spill] sm:$0xff] %v5807_v3 }
 0x239   : > { %v5801_v22 = vpop.f32.mrf.mxu0 }
 0x23a   : > { %7296 = vst [vmem:[#allocation108_spill] sm:$0xff] %v5801_v22 }
 0x23b   : > { %v5803_v50 = vpop.f32.mrf.mxu1 }
 0x23c   : > { %7297 = vst [vmem:[#allocation109_spill] sm:$0xff] %v5803_v50 }
 0x23d   : > { %v5818_v62 = vpop.f32.mrf.mxu2  ;;  %v5820_v12 = vpop.f32.mrf.mxu3 }
 0x23e   : > { %7300 = vst [vmem:[#allocation6_spill] sm:$0xff] %v5818_v62  ;;  %v5834_v2 = vpop.eup %4334 }
 0x23f   : > { %7301 = vst [vmem:[#allocation111_spill] sm:$0xff] %v5820_v12 }
 0x242   : > { %v5796_v24 = vpop.permute.xlu1 %2431 }
 0x245   : > { %1606 = vperm.xlu0 %4274, %v5492_v9  }
 0x246   : > { %v5840_v43 = vpop.f32.mrf.mxu3 }
 0x24a   : > { %v1577_v26 = vpop.permute.xlu1 %1576 }
 0x24b   : > { %v1729_v55 = vsub.f32 %v4978_v40, %v1577_v26  ;;  %v1730_v8 = vsub.f32 %v4980_v41, %v1577_v26  ;;  %v1731_v52 = vsub.f32 %v4985_v44, %v1577_v26  ;;  %v1732_v57 = vsub.f32 %v7299_v61, %v1577_v26  ;;  %v5826_v41 = vpop.f32.mrf.mxu0  ;;  %v5828_v61 = vpop.permute.xlu0 %2436  ;;  %v7305_v26 = vld [vmem:[#allocation11_spill] sm:$0xff] }
 0x24c   : > { %v1387_v40 = vmax.f32 %v1386_v39, %v5778_v53  ;;  %7304 = vst [vmem:[#allocation112_spill] sm:$0xff] %v5826_v41 }
 0x24d   : > { %2466 = vperm.xlu0 %4274, %v5807_v3   ;;  %v1877_v29 = vmul.f32 1.442695, %v1729_v55  ;;  %v1879_v23 = vmul.f32 1.442695, %v1730_v8  ;;  %v1881_v4 = vmul.f32 1.442695, %v1731_v52  ;;  %v5823_v3 = vpop.f32.mrf.mxu1 }
 0x24e   : > { %v1883_v56 = vmul.f32 1.442695, %v1732_v57  ;;  %1596 = vperm.xlu2 %4273, %v7302_v14   ;;  %7303 = vst [vmem:[#allocation61_spill] sm:$0xff] %v5823_v3  ;;  %v7306_v52 = vld [vmem:[#allocation12_spill] sm:$0xff]  ;;  %v7307_v57 = vld [vmem:[#allocation13_spill] sm:$0xff]  ;;  %v1388_v55 = vmax.f32 %v1387_v40, %v5783_v34 }
 0x24f   : > { %4336 = vpow2.f32 %v1877_v29  ;;  %7308 = vst [vmem:[#allocation11_spill] sm:$0xff] %v5834_v2 }
 0x250   : > { %4338 = vpow2.f32 %v1879_v23  ;;  %7311 = vst [vmem:[#allocation13_spill] sm:$0xff] %v5840_v43 }
 0x251   : > { %4340 = vpow2.f32 %v1881_v4  ;;  %v5837_v4 = vpop.f32.mrf.mxu2 }
 0x252   : > { %4342 = vpow2.f32 %v1883_v56  ;;  %v1587_v44 = vpop.permute.xlu1 %1586  ;;  %7310 = vst [vmem:[#allocation12_spill] sm:$0xff] %v5837_v4 }
 0x253   : > { %v1737_v8 = vsub.f32 %v7305_v26, %v1587_v44  ;;  %v1738_v15 = vsub.f32 %v7306_v52, %v1587_v44  ;;  %v1739_v29 = vsub.f32 %v7307_v57, %v1587_v44  ;;  %v1740_v39 = vsub.f32 %v7309_v20, %v1587_v44 }
 0x255   : > { %v4337_v53 = vpop.eup %4336  ;;  %v1893_v46 = vmul.f32 1.442695, %v1737_v8  ;;  %v1895_v23 = vmul.f32 1.442695, %v1738_v15  ;;  %1389 = vmax.xlane.f32.xlu1 %v1388_v55  ;;  %v1897_v5 = vmul.f32 1.442695, %v1739_v29  ;;  %v5846_v29 = vpop.f32.mrf.mxu0 }
 0x256   : > { %v4339_v56 = vpop.eup %4338  ;;  %v2614_v26 = vpack.c.bf16 %v4337_v53, %v5769_v19  ;;  %2456 = vperm.xlu2 %4273, %v5834_v2   ;;  %v1899_v44 = vmul.f32 1.442695, %v1740_v39  ;;  %v5848_v19 = vpop.f32.mrf.mxu1  ;;  %v5850_v55 = vld [vmem:[#allocation2 + $0xa8] sm:$0xff] }
 0x257   : > { %v4341_v52 = vpop.eup %4340  ;;  %4344 = vpow2.f32 %v1893_v46  ;;  %v2615_v40 = vpack.c.bf16 %v4339_v56, %v5771_v6  ;;  %v2182_v57 = vadd.f32 %v4339_v56, %v4337_v53  ;;  %7312 = vst [vmem:[#allocation14_spill] sm:$0xff] %v5850_v55 }
 0x258   : > { %v4343_v20 = vpop.eup %4342  ;;  %4346 = vpow2.f32 %v1895_v23  ;;  %2784 = vmatmul.bf16.gmra.mxu0 %v2614_v26  ;;  %v2616_v8 = vpack.c.bf16 %v4341_v52, %v5776_v47  ;;  %v5861_v26 = vld [vmem:[#allocation2 + $0xa0] sm:$0xff] }
 0x259   : > { %2873 = vmatmul.bf16.gmra.mxu1 %v2615_v40  ;;  %v2617_v15 = vpack.c.bf16 %v4343_v20, %v5781_v32  ;;  %v2183_v46 = vadd.f32 %v4341_v52, %v2182_v57  ;;  %4348 = vpow2.f32 %v1897_v5  ;;  %v7315_v32 = vld [vmem:[#allocation60_spill] sm:$0xff]  ;;  %v5863_v5 = vpop.f32.mrf.mxu2  ;;  %v5865_v57 = vpop.f32.mrf.mxu3 }
 0x25a   : > { %2962 = vmatmul.bf16.gmra.mxu2 %v2616_v8  ;;  %4350 = vpow2.f32 %v1899_v44  ;;  %v1462_v56 = vsub.f32 %v7315_v32, %v7302_v14  ;;  %7316 = vst [vmem:[#allocation60_spill] sm:$0xff] %v5861_v26  ;;  %v1396_v32 = vmax.f32 %v5801_v22, %v5803_v50 }
 0x25b   : > { %3051 = vmatmul.bf16.gmra.mxu3 %v2617_v15  ;;  %v5852_v53 = vadd.f32 %v4343_v20, %v2183_v46  ;;  %7317 = vst [vmem:[#allocation115_spill] sm:$0xff] %v5865_v57 }
 0x25c   : > { %v1503_v46 = vmul.f32 1.442695, %v1462_v56 }
 0x25d   : > { %7313 = vst [vmem:[#allocation113_spill] sm:$0xff] %v5852_v53  ;;  %v4345_v47 = vpop.eup %4344 }
 0x25e   : > { %v1370_v6 = vpop.xlane.xlu0 %1369  ;;  %v4347_v23 = vpop.eup %4346  ;;  %4352 = vpow2.f32 %v1503_v46  ;;  %v1397_v46 = vmax.f32 %v1396_v32, %v5818_v62 }
 0x25f   : > { %v5855_v39 = vmax.f32 %v5850_v55, %v1370_v6  ;;  %v2192_v52 = vadd.f32 %v4347_v23, %v4345_v47  ;;  %v4349_v40 = vpop.eup %4348  ;;  %v5870_v6 = vpop.f32.mrf.mxu0 }
 0x260   : > { %v1365_v20 = vpop.xlane.xlu2 %1364  ;;  %v4351_v8 = vpop.eup %4350  ;;  %7318 = vst [vmem:[#allocation116_spill] sm:$0xff] %v5870_v6 }
 0x261   : > { %7314 = vst [vmem:[#allocation114_spill] sm:$0xff] %v5855_v39  ;;  %v2193_v44 = vadd.f32 %v4349_v40, %v2192_v52  ;;  %v5868_v15 = vmax.f32 %v5861_v26, %v1365_v20  ;;  %v5872_v34 = vpop.f32.mrf.mxu1  ;;  %v5880_v52 = vpop.f32.mrf.mxu2 }
 0x262   : > { %3207 = vst.msk [vmem:[#allocation2 + $0xa8] sm:$0xff] %vm293_vm2, %v5855_v39 }
 0x263   : > { %7319 = vst [vmem:[#allocation117_spill] sm:$0xff] %v5872_v34  ;;  %v5874_v14 = vadd.f32 %v4351_v8, %v2193_v44  ;;  %v5886_v44 = vpop.f32.mrf.mxu3 }
 0x264   : > { %3206 = vst.msk [vmem:[#allocation2 + $0xa0] sm:$0xff] %vm293_vm2, %v5868_v15  ;;  %v5889_v53 = vpop.eup %4352 }
 0x265   : > { %7320 = vst [vmem:[#allocation118_spill] sm:$0xff] %v5874_v14 }
 0x266   : > { %7321 = vst [vmem:[#allocation119_spill] sm:$0xff] %v5880_v52 }
 0x267   : > { %7326 = vst [vmem:[#allocation7_spill] sm:$0xff] %v5886_v44  ;;  %v5891_v22 = vpop.f32.mrf.mxu0 }
 0x268   : > { %v1582_v2 = vpop.permute.xlu2 %1581  ;;  %7327 = vst [vmem:[#allocation8_spill] sm:$0xff] %v5889_v53 }
 0x269   : > { %v1733_v20 = vsub.f32 %v7322_v18, %v1582_v2  ;;  %v1734_v56 = vsub.f32 %v7323_v21, %v1582_v2  ;;  %v1735_v35 = vsub.f32 %v7324_v60, %v1582_v2  ;;  %v1736_v1 = vsub.f32 %v7325_v48, %v1582_v2  ;;  %7328 = vst [vmem:[#allocation9_spill] sm:$0xff] %v5891_v22  ;;  %v5893_v39 = vpop.f32.mrf.mxu1  ;;  %v5897_v60 = vpop.f32.mrf.mxu2 }
 0x26a   : > { %7329 = vst [vmem:[#allocation10_spill] sm:$0xff] %v5893_v39  ;;  %v1398_v48 = vmax.f32 %v1397_v46, %v5820_v12  ;;  %v1391_v21 = vmax.f32 %v5790_v25, %v5792_v30 }
 0x26b   : > { %v1885_v38 = vmul.f32 1.442695, %v1733_v20  ;;  %v1887_v49 = vmul.f32 1.442695, %v1734_v56  ;;  %v1889_v55 = vmul.f32 1.442695, %v1735_v35  ;;  %v5901_v18 = vpop.f32.mrf.mxu3 }
 0x26c   : > { %v1891_v50 = vmul.f32 1.442695, %v1736_v1  ;;  %7330 = vst [vmem:[#allocation120_spill] sm:$0xff] %v5897_v60  ;;  %v1392_v12 = vmax.f32 %v1391_v21, %v5794_v54 }
 0x26d   : > { %4354 = vpow2.f32 %v1885_v38  ;;  %7331 = vst [vmem:[#allocation121_spill] sm:$0xff] %v5901_v18  ;;  %v7332_v38 = vld [vmem:[#allocation73_spill] sm:$0xff] }
 0x26e   : > { %2461 = vperm.xlu1 %4275, %v5889_v53   ;;  %4356 = vpow2.f32 %v1887_v49 }
 0x26f   : > { %4358 = vpow2.f32 %v1889_v55  ;;  %v2775_v56 = vpop.f32.mrf.mxu0 }
 0x270   : > { %4360 = vpow2.f32 %v1891_v50 }
 0x271   : > { %v2864_v46 = vpop.f32.mrf.mxu1 }
 0x272   : > { %v2865_v25 = vadd.f32 %v2864_v46, %v2775_v56 }
 0x273   : > { %v4355_v35 = vpop.eup %4354 }
 0x274   : > { %v4357_v1 = vpop.eup %4356  ;;  %v2618_v2 = vpack.c.bf16 %v4345_v47, %v4355_v35  ;;  %v5907_v47 = vld [vmem:[#allocation2 + $0xb0] sm:$0xff] }
 0x275   : > { %v4359_v32 = vpop.eup %4358  ;;  %v2619_v20 = vpack.c.bf16 %v4347_v23, %v4357_v1  ;;  %v2187_v49 = vadd.f32 %v4357_v1, %v4355_v35  ;;  %v1393_v23 = vmax.f32 %v1392_v12, %v5799_v17  ;;  %v2382_v35 = vld [vmem:[#allocation4] sm:$0xff]  ;;  %v2953_v1 = vpop.f32.mrf.mxu2 }
 0x276   : > { %1616 = vperm.xlu1 %4275, %v7332_v38   ;;  %v4361_v55 = vpop.eup %4360  ;;  %2789 = vmatmul.bf16.gmra.mxu0 %v2618_v2  ;;  %v2620_v50 = vpack.c.bf16 %v4349_v40, %v4359_v32  ;;  %v2954_v26 = vadd.f32 %v2953_v1, %v2865_v25  ;;  %v3042_v2 = vpop.f32.mrf.mxu3  ;;  %v7337_v1 = vld [vmem:[#allocation68_spill] sm:$0xff] }
 0x277   : > { %1399 = vmax.xlane.f32.xlu0 %v1398_v48  ;;  %2878 = vmatmul.bf16.gmra.mxu1 %v2619_v20  ;;  %v2621_v62 = vpack.c.bf16 %v4351_v8, %v4361_v55  ;;  %v2188_v30 = vadd.f32 %v4359_v32, %v2187_v49  ;;  %v2574_v8 = vmul.f32 %v5655_v45, %v2382_v35  ;;  %v2777_v12 = vpop.f32.mrf.mxu0  ;;  %v1592_v35 = vpop.permute.xlu0 %1591 }
 0x278   : > { %2967 = vmatmul.bf16.gmra.mxu2 %v2620_v50  ;;  %v3043_v21 = vadd.f32 %v3042_v2, %v2954_v26  ;;  %v7335_v50 = vld [vmem:[#allocation78_spill] sm:$0xff]  ;;  %v1464_v2 = vsub.f32 %v7337_v1, %v5492_v9 }
 0x279   : > { %3056 = vmatmul.bf16.gmra.mxu3 %v2621_v62  ;;  %v5905_v48 = vadd.f32 %v4361_v55, %v2188_v30  ;;  %v7334_v30 = vld [vmem:[#allocation72_spill] sm:$0xff]  ;;  %v2866_v32 = vpop.f32.mrf.mxu1  ;;  %v2383_v55 = vld [vmem:[#allocation4 + $0x8] sm:$0xff] }
 0x27a   : > { %v1466_v62 = vsub.f32 %v7334_v30, %v7332_v38  ;;  %v3122_v20 = vadd.f32 %v3043_v21, %v2574_v8  ;;  %v2867_v25 = vadd.f32 %v2866_v32, %v2777_v12  ;;  %v2575_v45 = vmul.f32 %v5717_v0, %v2383_v55  ;;  %v7340_v55 = vld [vmem:[#allocation24_spill] sm:$0xff] }
 0x27b   : > { %7333 = vst [vmem:[#allocation73_spill] sm:$0xff] %v5905_v48  ;;  %v1401_v8 = vmax.f32 %v5826_v41, %v5823_v3  ;;  %v1507_v21 = vmul.f32 1.442695, %v1464_v2  ;;  %v7356_v48 = vld [vmem:[#allocation22_spill] sm:$0xff] }
 0x27c   : > { %3154 = vst.msk [vmem:[#allocation4] sm:$0xff] %vm358_vm0, %v3122_v20  ;;  %v1511_v49 = vmul.f32 1.442695, %v1466_v62  ;;  %v7338_v62 = vld [vmem:[#allocation71_spill] sm:$0xff] }
 0x27d   : > { %v1375_v53 = vpop.xlane.xlu1 %1374  ;;  %v1402_v30 = vmax.f32 %v1401_v8, %v5837_v4 }
 0x27e   : > { %v5911_v40 = vmax.f32 %v5907_v47, %v1375_v53  ;;  %v2955_v53 = vpop.f32.mrf.mxu2  ;;  %v3044_v46 = vpop.f32.mrf.mxu3  ;;  %4362 = vpow2.f32 %v1511_v49 }
 0x27f   : > { %1394 = vmax.xlane.f32.xlu2 %v1393_v23  ;;  %v2956_v56 = vadd.f32 %v2955_v53, %v2867_v25  ;;  %4364 = vpow2.f32 %v1507_v21  ;;  %v5933_v32 = vpop.permute.xlu0 %2451  ;;  %v1403_v12 = vmax.f32 %v1402_v30, %v5840_v43  ;;  %v7339_v25 = vld [vmem:[#allocation23_spill] sm:$0xff]  ;;  %v7341_v53 = vld [vmem:[#allocation25_spill] sm:$0xff]  ;;  %v5945_v30 = vpop.permute.xlu2 %2441 }
 0x280   : > { %3208 = vst.msk [vmem:[#allocation2 + $0xb0] sm:$0xff] %vm293_vm2, %v5911_v40 }
 0x281   : > { %v3045_v26 = vadd.f32 %v3044_v46, %v2956_v56 }
 0x283   : > { %v3123_v23 = vadd.f32 %v3045_v26, %v2575_v45  ;;  %v7343_v45 = vld [vmem:[#allocation26_spill] sm:$0xff] }
 0x284   : > { %v5922_v38 = vpop.eup %4362 }
 0x285   : > { %3155 = vst.msk [vmem:[#allocation4 + $0x8] sm:$0xff] %vm358_vm0, %v3123_v23  ;;  %v5939_v46 = vpop.eup %4364  ;;  %v5942_v23 = vld [vmem:[#allocation2 + $0xc0] sm:$0xff] }
 0x286   : > { %7336 = vst [vmem:[#allocation72_spill] sm:$0xff] %v5922_v38 }
 0x287   : > { %7342 = vst [vmem:[#allocation78_spill] sm:$0xff] %v5939_v46 }
 0x288   : > { %7344 = vst [vmem:[#allocation68_spill] sm:$0xff] %v5942_v23 }
 0x28b   : > { %1621 = vperm.xlu0 %4274, %v7335_v50  }
 0x293   : > { %2481 = vperm.xlu0 %4274, %v5922_v38  }
 0x295   : > { %v5929_v0 = vpop.permute.xlu1 %2446 }
 0x297   : > { %1611 = vperm.xlu2 %4273, %v7338_v62  }
 0x29d   : > { %v1602_v20 = vpop.permute.xlu1 %1601 }
 0x29e   : > { %v1749_v49 = vsub.f32 %v7339_v25, %v1602_v20  ;;  %v1750_v9 = vsub.f32 %v7340_v55, %v1602_v20  ;;  %v1751_v56 = vsub.f32 %v7341_v53, %v1602_v20  ;;  %v1752_v26 = vsub.f32 %v7343_v45, %v1602_v20  ;;  %v7346_v20 = vld [vmem:[#allocation69_spill] sm:$0xff] }
 0x29f   : > { %2471 = vperm.xlu2 %4273, %v5939_v46  }
 0x2a0   : > { %v1917_v1 = vmul.f32 1.442695, %v1749_v49  ;;  %v1919_v2 = vmul.f32 1.442695, %v1750_v9  ;;  %1404 = vmax.xlane.f32.xlu1 %v1403_v12  ;;  %v1921_v8 = vmul.f32 1.442695, %v1751_v56  ;;  %v1465_v49 = vsub.f32 %v7346_v20, %v7338_v62 }
 0x2a1   : > { %v1923_v55 = vmul.f32 1.442695, %v1752_v26  ;;  %v7347_v12 = vld [vmem:[#allocation15_spill] sm:$0xff]  ;;  %v5957_v56 = vld [vmem:[#allocation2 + $0xb8] sm:$0xff]  ;;  %v7351_v20 = vld [vmem:[#allocation18_spill] sm:$0xff] }
 0x2a2   : > { %4366 = vpow2.f32 %v1917_v1  ;;  %v1741_v53 = vsub.f32 %v7347_v12, %v1592_v35  ;;  %7348 = vst [vmem:[#allocation23_spill] sm:$0xff] %v5957_v56  ;;  %v7349_v1 = vld [vmem:[#allocation16_spill] sm:$0xff]  ;;  %v1509_v62 = vmul.f32 1.442695, %v1465_v49  ;;  %v1744_v12 = vsub.f32 %v7351_v20, %v1592_v35 }
 0x2a3   : > { %4368 = vpow2.f32 %v1919_v2  ;;  %v7350_v2 = vld [vmem:[#allocation17_spill] sm:$0xff] }
 0x2a4   : > { %v1385_v21 = vpop.xlane.xlu0 %1384  ;;  %4370 = vpow2.f32 %v1921_v8  ;;  %v1743_v26 = vsub.f32 %v7350_v2, %v1592_v35  ;;  %v1901_v3 = vmul.f32 1.442695, %v1741_v53  ;;  %v2384_v53 = vld [vmem:[#allocation4 + $0x10] sm:$0xff] }
 0x2a5   : > { %v5948_v25 = vmax.f32 %v5942_v23, %v1385_v21  ;;  %4372 = vpow2.f32 %v1923_v55  ;;  %v1742_v21 = vsub.f32 %v7349_v1, %v1592_v35  ;;  %v1411_v1 = vmax.f32 %v5870_v6, %v5872_v34  ;;  %v7353_v6 = vld [vmem:[#allocation19_spill] sm:$0xff]  ;;  %v7354_v23 = vld [vmem:[#allocation20_spill] sm:$0xff] }
 0x2a6   : > { %v1905_v49 = vmul.f32 1.442695, %v1743_v26  ;;  %4374 = vpow2.f32 %v1509_v62  ;;  %v1907_v35 = vmul.f32 1.442695, %v1744_v12  ;;  %v2576_v62 = vmul.f32 %v5809_v36, %v2384_v53 }
 0x2a7   : > { %7345 = vst [vmem:[#allocation71_spill] sm:$0xff] %v5948_v25  ;;  %v1903_v2 = vmul.f32 1.442695, %v1742_v21  ;;  %v2780_v17 = vpop.f32.mrf.mxu0  ;;  %4376 = vpow2.f32 %v1901_v3 }
 0x2a8   : > { %3210 = vst.msk [vmem:[#allocation2 + $0xc0] sm:$0xff] %vm293_vm2, %v5948_v25  ;;  %v5954_v9 = vpop.eup %4366  ;;  %v2869_v54 = vpop.f32.mrf.mxu1 }
 0x2a9   : > { %v5959_v45 = vpop.eup %4368  ;;  %v1380_v43 = vpop.xlane.xlu2 %1379  ;;  %4378 = vpow2.f32 %v1903_v2  ;;  %v2870_v20 = vadd.f32 %v2869_v54, %v2780_v17 }
 0x2aa   : > { %v2207_v8 = vadd.f32 %v5959_v45, %v5954_v9  ;;  %v5965_v4 = vpop.eup %4370  ;;  %v5968_v55 = vmax.f32 %v5957_v56, %v1380_v43  ;;  %4380 = vpow2.f32 %v1905_v49  ;;  %v7355_v56 = vld [vmem:[#allocation21_spill] sm:$0xff] }
 0x2ab   : > { %v5972_v46 = vpop.eup %4372  ;;  %4382 = vpow2.f32 %v1907_v35 }
 0x2ac   : > { %v2208_v41 = vadd.f32 %v5965_v4, %v2207_v8  ;;  %3209 = vst.msk [vmem:[#allocation2 + $0xb8] sm:$0xff] %vm293_vm2, %v5968_v55  ;;  %v1412_v8 = vmax.f32 %v1411_v1, %v5880_v52 }
 0x2ae   : > { %v5979_v43 = vadd.f32 %v5972_v46, %v2208_v41  ;;  %v1413_v49 = vmax.f32 %v1412_v8, %v5886_v44 }
 0x2af   : > { %v2958_v21 = vpop.f32.mrf.mxu2  ;;  %v2782_v35 = vpop.f32.mrf.mxu0 }
 0x2b0   : > { %7352 = vst [vmem:[#allocation24_spill] sm:$0xff] %v5979_v43  ;;  %v2959_v3 = vadd.f32 %v2958_v21, %v2870_v20  ;;  %v3047_v12 = vpop.f32.mrf.mxu3  ;;  %v5987_v43 = vpop.eup %4374  ;;  %v7360_v20 = vld [vmem:[#allocation29_spill] sm:$0xff] }
 0x2b1   : > { %v1597_v34 = vpop.permute.xlu2 %1596  ;;  %7357 = vst [vmem:[#allocation25_spill] sm:$0xff] %v5987_v43  ;;  %v2871_v53 = vpop.f32.mrf.mxu1 }
 0x2b2   : > { %v1745_v38 = vsub.f32 %v7353_v6, %v1597_v34  ;;  %v1746_v25 = vsub.f32 %v7354_v23, %v1597_v34  ;;  %v1747_v26 = vsub.f32 %v7355_v56, %v1597_v34  ;;  %v1748_v41 = vsub.f32 %v7356_v48, %v1597_v34  ;;  %v5990_v6 = vpop.eup %4376  ;;  %v7358_v56 = vld [vmem:[#allocation27_spill] sm:$0xff]  ;;  %v7359_v34 = vld [vmem:[#allocation28_spill] sm:$0xff] }
 0x2b3   : > { %v3048_v23 = vadd.f32 %v3047_v12, %v2959_v3  ;;  %v5994_v36 = vpop.eup %4378  ;;  %v2872_v12 = vadd.f32 %v2871_v53, %v2782_v35 }
 0x2b4   : > { %v1909_v1 = vmul.f32 1.442695, %v1745_v38  ;;  %v1911_v2 = vmul.f32 1.442695, %v1746_v25  ;;  %v1913_v54 = vmul.f32 1.442695, %v1747_v26  ;;  %v5998_v26 = vpop.eup %4380 }
 0x2b5   : > { %v1915_v52 = vmul.f32 1.442695, %v1748_v41  ;;  %v7361_v25 = vld [vmem:[#allocation30_spill] sm:$0xff]  ;;  %v3124_v8 = vadd.f32 %v3048_v23, %v2576_v62  ;;  %v6001_v41 = vpop.eup %4382 }
 0x2b6   : > { %4384 = vpow2.f32 %v1909_v1 }
 0x2b7   : > { %v1607_v17 = vpop.permute.xlu0 %1606  ;;  %4386 = vpow2.f32 %v1911_v2  ;;  %3156 = vst.msk [vmem:[#allocation4 + $0x10] sm:$0xff] %vm358_vm0, %v3124_v8 }
 0x2b8   : > { %v1753_v14 = vsub.f32 %v7358_v56, %v1607_v17  ;;  %v1754_v48 = vsub.f32 %v7359_v34, %v1607_v17  ;;  %v1755_v38 = vsub.f32 %v7360_v20, %v1607_v17  ;;  %v1756_v21 = vsub.f32 %v7361_v25, %v1607_v17  ;;  %v2385_v56 = vld [vmem:[#allocation4 + $0x18] sm:$0xff]  ;;  %v2960_v17 = vpop.f32.mrf.mxu2 }
 0x2b9   : > { %4388 = vpow2.f32 %v1913_v54  ;;  %2476 = vperm.xlu1 %4275, %v5987_v43   ;;  %v2961_v62 = vadd.f32 %v2960_v17, %v2872_v12  ;;  %v2577_v54 = vmul.f32 %v5796_v24, %v2385_v56 }
 0x2ba   : > { %v1925_v44 = vmul.f32 1.442695, %v1753_v14  ;;  %v1927_v3 = vmul.f32 1.442695, %v1754_v48  ;;  %4390 = vpow2.f32 %v1915_v52  ;;  %v1929_v1 = vmul.f32 1.442695, %v1755_v38  ;;  %v3049_v14 = vpop.f32.mrf.mxu3 }
 0x2bb   : > { %v1931_v34 = vmul.f32 1.442695, %v1756_v21  ;;  %v3050_v48 = vadd.f32 %v3049_v14, %v2961_v62  ;;  %v1406_v52 = vmax.f32 %v5846_v29, %v5848_v19 }
 0x2bc   : > { %4392 = vpow2.f32 %v1925_v44  ;;  %v4385_v2 = vpop.eup %4384 }
 0x2bd   : > { %1414 = vmax.xlane.f32.xlu0 %v1413_v49  ;;  %4394 = vpow2.f32 %v1927_v3  ;;  %v4387_v23 = vpop.eup %4386  ;;  %v2622_v20 = vpack.c.bf16 %v4385_v2, %v5990_v6  ;;  %v3125_v53 = vadd.f32 %v3050_v48, %v2577_v54  ;;  %v1407_v12 = vmax.f32 %v1406_v52, %v5863_v5 }
 0x2be   : > { %4396 = vpow2.f32 %v1929_v1  ;;  %v2623_v49 = vpack.c.bf16 %v4387_v23, %v5994_v36  ;;  %v2202_v44 = vadd.f32 %v4387_v23, %v4385_v2  ;;  %v6017_v2 = vld [vmem:[#allocation2 + $0xc8] sm:$0xff] }
 0x2bf   : > { %v4389_v25 = vpop.eup %4388  ;;  %4398 = vpow2.f32 %v1931_v34  ;;  %2794 = vmatmul.bf16.gmra.mxu0 %v2622_v20  ;;  %3157 = vst.msk [vmem:[#allocation4 + $0x18] sm:$0xff] %vm358_vm0, %v3125_v53  ;;  %v1408_v14 = vmax.f32 %v1407_v12, %v5865_v57  ;;  %v1469_v20 = vsub.f32 %v5629_v16, %v5634_v58 }
 0x2c0   : > { %v4391_v35 = vpop.eup %4390  ;;  %v2624_v38 = vpack.c.bf16 %v4389_v25, %v5998_v26  ;;  %2883 = vmatmul.bf16.gmra.mxu1 %v2623_v49  ;;  %v2203_v8 = vadd.f32 %v4389_v25, %v2202_v44 }
 0x2c1   : > { %v2625_v24 = vpack.c.bf16 %v4391_v35, %v6001_v41  ;;  %1631 = vperm.xlu1 %4275, %v5634_v58   ;;  %v1517_v44 = vmul.f32 1.442695, %v1469_v20 }
 0x2c2   : > { %v4393_v21 = vpop.eup %4392  ;;  %2972 = vmatmul.bf16.gmra.mxu2 %v2624_v38  ;;  %v6015_v1 = vadd.f32 %v4391_v35, %v2203_v8 }
 0x2c3   : > { %v4395_v3 = vpop.eup %4394  ;;  %3061 = vmatmul.bf16.gmra.mxu3 %v2625_v24  ;;  %4400 = vpow2.f32 %v1517_v44 }
 0x2c4   : > { %v2212_v56 = vadd.f32 %v4395_v3, %v4393_v21  ;;  %v4397_v17 = vpop.eup %4396  ;;  %v2627_v25 = vpack.c.bf16 %v4395_v3, %v5959_v45  ;;  %v2386_v45 = vld [vmem:[#allocation4 + $0x20] sm:$0xff]  ;;  %v6041_v3 = vpop.permute.xlu0 %2466 }
 0x2c5   : > { %2160 = vadd.xlane.f32.xlu0 %v5646_v33  ;;  %v4399_v62 = vpop.eup %4398  ;;  %v2626_v33 = vpack.c.bf16 %v4393_v21, %v5954_v9  ;;  %v2628_v52 = vpack.c.bf16 %v4397_v17, %v5965_v4  ;;  %v7362_v9 = vld [vmem:[#allocation74_spill] sm:$0xff]  ;;  %v2578_v12 = vmul.f32 %v5828_v61, %v2386_v45  ;;  %v7365_v45 = vld [vmem:[#allocation35_spill] sm:$0xff] }
 0x2c6   : > { %v2213_v34 = vadd.f32 %v4397_v17, %v2212_v56  ;;  %v2629_v49 = vpack.c.bf16 %v4399_v62, %v5972_v46  ;;  %v1467_v38 = vsub.f32 %v7362_v9, %v7335_v50  ;;  %v1472_v46 = vsub.f32 %v5743_v31, %v5751_v63 }
 0x2c7   : > { %v1416_v50 = vmax.f32 %v5891_v22, %v5893_v39 }
 0x2c8   : > { %v6020_v23 = vadd.f32 %v4399_v62, %v2213_v34  ;;  %v1390_v54 = vpop.xlane.xlu1 %1389  ;;  %1409 = vmax.xlane.f32.xlu2 %v1408_v14  ;;  %v1513_v4 = vmul.f32 1.442695, %v1467_v38 }
 0x2c9   : > { %v6023_v48 = vmax.f32 %v6017_v2, %v1390_v54  ;;  %v6036_v58 = vpop.eup %4400  ;;  %v1523_v54 = vmul.f32 1.442695, %v1472_v46  ;;  %v1417_v61 = vmax.f32 %v1416_v50, %v5897_v60  ;;  %v7368_v50 = vld [vmem:[#allocation38_spill] sm:$0xff] }
 0x2ca   : > { %7363 = vst [vmem:[#allocation26_spill] sm:$0xff] %v6036_v58  ;;  %4402 = vpow2.f32 %v1513_v4  ;;  %v7366_v4 = vld [vmem:[#allocation36_spill] sm:$0xff]  ;;  %v7373_v60 = vld [vmem:[#allocation34_spill] sm:$0xff] }
 0x2cb   : > { %3211 = vst.msk [vmem:[#allocation2 + $0xc8] sm:$0xff] %vm293_vm2, %v6023_v48  ;;  %4404 = vpow2.f32 %v1523_v54 }
 0x2cf   : > { %2799 = vmatmul.bf16.gmra.mxu0 %v2626_v33  ;;  %v2387_v33 = vld [vmem:[#allocation4 + $0x28] sm:$0xff] }
 0x2d0   : > { %2888 = vmatmul.bf16.gmra.mxu1 %v2627_v25  ;;  %v6051_v25 = vld [vmem:[#allocation2 + $0xd8] sm:$0xff] }
 0x2d2   : > { %2977 = vmatmul.bf16.gmra.mxu2 %v2628_v52 }
 0x2d3   : > { %3066 = vmatmul.bf16.gmra.mxu3 %v2629_v49 }
 0x2d5   : > { %v2785_v35 = vpop.f32.mrf.mxu0 }
 0x2d6   : > { %v2874_v53 = vpop.f32.mrf.mxu1 }
 0x2d7   : > { %v2875_v16 = vadd.f32 %v2874_v53, %v2785_v35  ;;  %v6054_v35 = vpop.eup %4402  ;;  %v2579_v53 = vmul.f32 %v5945_v30, %v2387_v33  ;;  %v6068_v30 = vpop.permute.xlu2 %2456 }
 0x2d8   : > { %7364 = vst [vmem:[#allocation69_spill] sm:$0xff] %v6054_v35 }
 0x2d9   : > { %1636 = vperm.xlu0 %4274, %v5702_v11  }
 0x2dd   : > { %v2963_v21 = vpop.f32.mrf.mxu2  ;;  %v2787_v34 = vpop.f32.mrf.mxu0 }
 0x2de   : > { %v2964_v24 = vadd.f32 %v2963_v21, %v2875_v16  ;;  %v3052_v8 = vpop.f32.mrf.mxu3  ;;  %v2876_v62 = vpop.f32.mrf.mxu1 }
 0x2df   : > { %v2877_v31 = vadd.f32 %v2876_v62, %v2787_v34 }
 0x2e0   : > { %v3053_v56 = vadd.f32 %v3052_v8, %v2964_v24  ;;  %v6044_v17 = vpop.permute.xlu1 %2461  ;;  %1626 = vperm.xlu2 %4273, %v5619_v42   ;;  %v7367_v8 = vld [vmem:[#allocation37_spill] sm:$0xff] }
 0x2e1   : > { %2496 = vperm.xlu0 %4274, %v6036_v58  }
 0x2e2   : > { %v3126_v14 = vadd.f32 %v3053_v56, %v2578_v12  ;;  %v1418_v12 = vmax.f32 %v1417_v61, %v5901_v18 }
 0x2e4   : > { %3158 = vst.msk [vmem:[#allocation4 + $0x20] sm:$0xff] %vm358_vm0, %v3126_v14 }
 0x2e5   : > { %v2965_v20 = vpop.f32.mrf.mxu2 }
 0x2e6   : > { %v2966_v52 = vadd.f32 %v2965_v20, %v2877_v31  ;;  %v3054_v49 = vpop.f32.mrf.mxu3  ;;  %v6071_v31 = vpop.eup %4404  ;;  %v6074_v20 = vld [vmem:[#allocation2 + $0xd0] sm:$0xff] }
 0x2e7   : > { %7369 = vst [vmem:[#allocation15_spill] sm:$0xff] %v6071_v31 }
 0x2e8   : > { %v3055_v9 = vadd.f32 %v3054_v49, %v2966_v52  ;;  %v1617_v38 = vpop.permute.xlu1 %1616  ;;  %2486 = vperm.xlu2 %4273, %v6054_v35  }
 0x2e9   : > { %1651 = vperm.xlu0 %4274, %v5868_v15   ;;  %v1761_v21 = vsub.f32 %v7365_v45, %v1617_v38  ;;  %v1762_v24 = vsub.f32 %v7366_v4, %v1617_v38  ;;  %v1763_v46 = vsub.f32 %v7367_v8, %v1617_v38  ;;  %v1764_v34 = vsub.f32 %v7368_v50, %v1617_v38  ;;  %v2388_v50 = vld [vmem:[#allocation4 + $0x30] sm:$0xff] }
 0x2ea   : > { %v1400_v44 = vpop.xlane.xlu0 %1399  ;;  %v3127_v56 = vadd.f32 %v3055_v9, %v2579_v53  ;;  %v1468_v53 = vsub.f32 %v5601_v7, %v5619_v42 }
 0x2eb   : > { %v6058_v16 = vmax.f32 %v6051_v25, %v1400_v44  ;;  %v1941_v62 = vmul.f32 1.442695, %v1761_v21  ;;  %v1943_v14 = vmul.f32 1.442695, %v1762_v24  ;;  %1419 = vmax.xlane.f32.xlu1 %v1418_v12  ;;  %v1945_v54 = vmul.f32 1.442695, %v1763_v46 }
 0x2ec   : > { %3159 = vst.msk [vmem:[#allocation4 + $0x28] sm:$0xff] %vm358_vm0, %v3127_v56  ;;  %v1947_v33 = vmul.f32 1.442695, %v1764_v34  ;;  %v1515_v8 = vmul.f32 1.442695, %v1468_v53 }
 0x2ed   : > { %3213 = vst.msk [vmem:[#allocation2 + $0xd8] sm:$0xff] %vm293_vm2, %v6058_v16  ;;  %4406 = vpow2.f32 %v1941_v62  ;;  %v7370_v62 = vld [vmem:[#allocation31_spill] sm:$0xff] }
 0x2ee   : > { %4408 = vpow2.f32 %v1943_v14 }
 0x2ef   : > { %4410 = vpow2.f32 %v1945_v54  ;;  %v7371_v54 = vld [vmem:[#allocation32_spill] sm:$0xff] }
 0x2f0   : > { %4412 = vpow2.f32 %v1947_v33 }
 0x2f1   : > { %2511 = vperm.xlu0 %4274, %v6071_v31   ;;  %4414 = vpow2.f32 %v1515_v8 }
 0x2f2   : > { %v1395_v52 = vpop.xlane.xlu2 %1394 }
 0x2f3   : > { %v4407_v61 = vpop.eup %4406  ;;  %v6077_v44 = vmax.f32 %v6074_v20, %v1395_v52  ;;  %v2790_v45 = vpop.f32.mrf.mxu0  ;;  %v7372_v52 = vld [vmem:[#allocation33_spill] sm:$0xff] }
 0x2f4   : > { %v4409_v49 = vpop.eup %4408  ;;  %v2879_v21 = vpop.f32.mrf.mxu1 }
 0x2f5   : > { %v2222_v9 = vadd.f32 %v4409_v49, %v4407_v61  ;;  %v4411_v38 = vpop.eup %4410  ;;  %3212 = vst.msk [vmem:[#allocation2 + $0xd0] sm:$0xff] %vm293_vm2, %v6077_v44  ;;  %v2880_v12 = vadd.f32 %v2879_v21, %v2790_v45 }
 0x2f6   : > { %v4413_v24 = vpop.eup %4412 }
 0x2f7   : > { %v2223_v4 = vadd.f32 %v4411_v38, %v2222_v9  ;;  %v2580_v9 = vmul.f32 %v5929_v0, %v2388_v50 }
 0x2f9   : > { %v6083_v46 = vadd.f32 %v4413_v24, %v2223_v4 }
 0x2fa   : > { %v1612_v56 = vpop.permute.xlu2 %1611 }
 0x2fb   : > { %v2968_v34 = vpop.f32.mrf.mxu2  ;;  %v1757_v14 = vsub.f32 %v7370_v62, %v1612_v56  ;;  %v1758_v7 = vsub.f32 %v7371_v54, %v1612_v56  ;;  %v1759_v18 = vsub.f32 %v7372_v52, %v1612_v56  ;;  %v1760_v39 = vsub.f32 %v7373_v60, %v1612_v56  ;;  %v2792_v45 = vpop.f32.mrf.mxu0 }
 0x2fc   : > { %v2969_v42 = vadd.f32 %v2968_v34, %v2880_v12  ;;  %v3057_v33 = vpop.f32.mrf.mxu3  ;;  %v2881_v21 = vpop.f32.mrf.mxu1  ;;  %v2389_v12 = vld [vmem:[#allocation4 + $0x38] sm:$0xff] }
 0x2fd   : > { %v1933_v4 = vmul.f32 1.442695, %v1757_v14  ;;  %v1935_v22 = vmul.f32 1.442695, %v1758_v7  ;;  %v1937_v43 = vmul.f32 1.442695, %v1759_v18  ;;  %v6090_v62 = vpop.eup %4414  ;;  %v2882_v8 = vadd.f32 %v2881_v21, %v2792_v45 }
 0x2fe   : > { %v3058_v53 = vadd.f32 %v3057_v33, %v2969_v42  ;;  %v1939_v31 = vmul.f32 1.442695, %v1760_v39  ;;  %7374 = vst [vmem:[#allocation16_spill] sm:$0xff] %v6090_v62  ;;  %v2581_v56 = vmul.f32 %v5933_v32, %v2389_v12  ;;  %v6098_v32 = vld [vmem:[#allocation2 + $0xe0] sm:$0xff]  ;;  %v6116_v21 = vld [vmem:[#allocation2 + $0xf0] sm:$0xff] }
 0x2ff   : > { %4416 = vpow2.f32 %v1933_v4 }
 0x300   : > { %v3128_v35 = vadd.f32 %v3058_v53, %v2580_v9  ;;  %4418 = vpow2.f32 %v1935_v22 }
 0x301   : > { %4420 = vpow2.f32 %v1937_v43 }
 0x302   : > { %3160 = vst.msk [vmem:[#allocation4 + $0x30] sm:$0xff] %vm358_vm0, %v3128_v35  ;;  %4422 = vpow2.f32 %v1939_v31 }
 0x303   : > { %v2970_v34 = vpop.f32.mrf.mxu2 }
 0x304   : > { %2491 = vperm.xlu1 %4275, %v6090_v62   ;;  %v2971_v60 = vadd.f32 %v2970_v34, %v2882_v8  ;;  %v3059_v0 = vpop.f32.mrf.mxu3  ;;  %v6130_v34 = vpop.permute.xlu2 %2471 }
 0x305   : > { %v4417_v18 = vpop.eup %4416 }
 0x306   : > { %v3060_v50 = vadd.f32 %v3059_v0, %v2971_v60  ;;  %v4419_v14 = vpop.eup %4418  ;;  %v2630_v54 = vpack.c.bf16 %v4407_v61, %v4417_v18  ;;  %v7377_v60 = vld [vmem:[#allocation47_spill] sm:$0xff] }
 0x307   : > { %v4421_v7 = vpop.eup %4420  ;;  %v2631_v35 = vpack.c.bf16 %v4409_v49, %v4419_v14  ;;  %v2217_v42 = vadd.f32 %v4419_v14, %v4417_v18  ;;  %v1622_v49 = vpop.permute.xlu0 %1621  ;;  %v7379_v18 = vld [vmem:[#allocation49_spill] sm:$0xff] }
 0x308   : > { %v3129_v39 = vadd.f32 %v3060_v50, %v2581_v56  ;;  %v4423_v22 = vpop.eup %4422  ;;  %2804 = vmatmul.bf16.gmra.mxu0 %v2630_v54  ;;  %v2632_v33 = vpack.c.bf16 %v4411_v38, %v4421_v7  ;;  %v1470_v38 = vsub.f32 %v5693_v13, %v5702_v11  ;;  %v7378_v56 = vld [vmem:[#allocation48_spill] sm:$0xff]  ;;  %v7381_v54 = vld [vmem:[#allocation50_spill] sm:$0xff] }
 0x309   : > { %2893 = vmatmul.bf16.gmra.mxu1 %v2631_v35  ;;  %v2633_v43 = vpack.c.bf16 %v4413_v24, %v4423_v22  ;;  %v2218_v52 = vadd.f32 %v4421_v7, %v2217_v42  ;;  %v1475_v24 = vsub.f32 %v5907_v47, %v5911_v40  ;;  %v2093_v47 = vld [vmem:[#allocation3] sm:$0xff] }
 0x30a   : > { %3161 = vst.msk [vmem:[#allocation4 + $0x38] sm:$0xff] %vm358_vm0, %v3129_v39  ;;  %2982 = vmatmul.bf16.gmra.mxu2 %v2632_v33  ;;  %v1519_v4 = vmul.f32 1.442695, %v1470_v38  ;;  %v1471_v38 = vsub.f32 %v5706_v28, %v5711_v27  ;;  %v7385_v28 = vld [vmem:[#allocation42_spill] sm:$0xff] }
 0x30b   : > { %3071 = vmatmul.bf16.gmra.mxu3 %v2633_v43  ;;  %v6096_v31 = vadd.f32 %v4423_v22, %v2218_v52 }
 0x30c   : > { %4424 = vpow2.f32 %v1519_v4 }
 0x30f   : > { %v6111_v53 = vpop.permute.xlu0 %2481 }
 0x311   : > { %2165 = vadd.xlane.f32.xlu2 %v5657_v10  ;;  %v1529_v10 = vmul.f32 1.442695, %v1475_v24  ;;  %v7382_v24 = vld [vmem:[#allocation39_spill] sm:$0xff] }
 0x312   : > { %v6125_v11 = vpop.eup %4424  ;;  %v1765_v4 = vsub.f32 %v7382_v24, %v1622_v49 }
 0x313   : > { %v1405_v61 = vpop.xlane.xlu1 %1404  ;;  %4426 = vpow2.f32 %v1529_v10  ;;  %7375 = vst [vmem:[#allocation17_spill] sm:$0xff] %v6125_v11 }
 0x314   : > { %v6102_v9 = vmax.f32 %v6098_v32, %v1405_v61  ;;  %v6139_v61 = vld [vmem:[#allocation2 + $0xe8] sm:$0xff] }
 0x316   : > { %3214 = vst.msk [vmem:[#allocation2 + $0xe0] sm:$0xff] %vm293_vm2, %v6102_v9 }
 0x319   : > { %v6128_v8 = vpop.eup %4426 }
 0x31a   : > { %7376 = vst [vmem:[#allocation18_spill] sm:$0xff] %v6128_v8 }
 0x31b   : > { %2180 = vadd.xlane.f32.xlu0 %v5786_v37 }
 0x329   : > { %1641 = vperm.xlu2 %4273, %v5711_v27   ;;  %v1768_v27 = vsub.f32 %v7385_v28, %v1622_v49 }
 0x32b   : > { %v6114_v45 = vpop.permute.xlu1 %2476 }
 0x32e   : > { %2170 = vadd.xlane.f32.xlu1 %v5699_v59  ;;  %v7380_v59 = vld [vmem:[#allocation51_spill] sm:$0xff] }
 0x32f   : > { %1666 = vperm.xlu0 %4274, %v5968_v55   ;;  %v2125_v14 = vmul.f32 %v7380_v59, %v2093_v47 }
 0x330   : > { %v1415_v37 = vpop.xlane.xlu0 %1414 }
 0x331   : > { %v6120_v13 = vmax.f32 %v6116_v21, %v1415_v37  ;;  %2501 = vperm.xlu2 %4273, %v6125_v11  }
 0x333   : > { %3216 = vst.msk [vmem:[#allocation2 + $0xf0] sm:$0xff] %vm293_vm2, %v6120_v13  ;;  %v1632_v12 = vpop.permute.xlu1 %1631 }
 0x334   : > { %v1773_v0 = vsub.f32 %v7377_v60, %v1632_v12  ;;  %v1774_v50 = vsub.f32 %v7378_v56, %v1632_v12  ;;  %v1775_v39 = vsub.f32 %v7379_v18, %v1632_v12  ;;  %v1776_v7 = vsub.f32 %v7381_v54, %v1632_v12  ;;  %v7383_v60 = vld [vmem:[#allocation40_spill] sm:$0xff] }
 0x335   : > { %v1521_v18 = vmul.f32 1.442695, %v1471_v38 }
 0x336   : > { %v1965_v42 = vmul.f32 1.442695, %v1773_v0  ;;  %v1967_v22 = vmul.f32 1.442695, %v1774_v50  ;;  %v1969_v43 = vmul.f32 1.442695, %v1775_v39  ;;  %v1766_v0 = vsub.f32 %v7383_v60, %v1622_v49 }
 0x337   : > { %2526 = vperm.xlu0 %4274, %v6128_v8   ;;  %v1971_v52 = vmul.f32 1.442695, %v1776_v7  ;;  %v7384_v39 = vld [vmem:[#allocation41_spill] sm:$0xff] }
 0x338   : > { %v2161_v35 = vpop.xlane.xlu0 %2160  ;;  %4428 = vpow2.f32 %v1965_v42  ;;  %v1767_v59 = vsub.f32 %v7384_v39, %v1622_v49  ;;  %v2390_v49 = vld [vmem:[#allocation4 + $0x40] sm:$0xff]  ;;  %v7387_v39 = vld [vmem:[#allocation44_spill] sm:$0xff] }
 0x339   : > { %v2317_v33 = vadd.f32 %v2161_v35, %v2125_v14  ;;  %4430 = vpow2.f32 %v1967_v22  ;;  %v1949_v14 = vmul.f32 1.442695, %v1765_v4  ;;  %v1951_v35 = vmul.f32 1.442695, %v1766_v0  ;;  %v7388_v0 = vld [vmem:[#allocation45_spill] sm:$0xff] }
 0x33a   : > { %4432 = vpow2.f32 %v1969_v43  ;;  %v1955_v43 = vmul.f32 1.442695, %v1768_v27 }
 0x33b   : > { %2350 = vst.msk [vmem:[#allocation3] sm:$0xff] %vm293_vm2, %v2317_v33  ;;  %v1410_v10 = vpop.xlane.xlu2 %1409  ;;  %4434 = vpow2.f32 %v1971_v52  ;;  %v1953_v33 = vmul.f32 1.442695, %v1767_v59 }
 0x33c   : > { %v6145_v37 = vmax.f32 %v6139_v61, %v1410_v10  ;;  %v2795_v47 = vpop.f32.mrf.mxu0  ;;  %4436 = vpow2.f32 %v1521_v18  ;;  %v7386_v10 = vld [vmem:[#allocation43_spill] sm:$0xff] }
 0x33d   : > { %v2884_v56 = vpop.f32.mrf.mxu1  ;;  %4438 = vpow2.f32 %v1949_v14 }
 0x33e   : > { %v6147_v12 = vpop.eup %4428  ;;  %3215 = vst.msk [vmem:[#allocation2 + $0xe8] sm:$0xff] %vm293_vm2, %v6145_v37  ;;  %v2885_v52 = vadd.f32 %v2884_v56, %v2795_v47  ;;  %4440 = vpow2.f32 %v1951_v35 }
 0x33f   : > { %v6150_v50 = vpop.eup %4430  ;;  %4442 = vpow2.f32 %v1953_v33 }
 0x340   : > { %v2237_v54 = vadd.f32 %v6150_v50, %v6147_v12  ;;  %v6158_v7 = vpop.eup %4432  ;;  %4444 = vpow2.f32 %v1955_v43 }
 0x341   : > { %v6161_v22 = vpop.eup %4434 }
 0x342   : > { %v2238_v42 = vadd.f32 %v6158_v7, %v2237_v54  ;;  %v7389_v54 = vld [vmem:[#allocation46_spill] sm:$0xff] }
 0x343   : > { %v1627_v38 = vpop.permute.xlu2 %1626 }
 0x344   : > { %v6164_v24 = vadd.f32 %v6161_v22, %v2238_v42  ;;  %v1769_v60 = vsub.f32 %v7386_v10, %v1627_v38  ;;  %v1770_v28 = vsub.f32 %v7387_v39, %v1627_v38  ;;  %v1771_v11 = vsub.f32 %v7388_v0, %v1627_v38  ;;  %v2797_v8 = vpop.f32.mrf.mxu0  ;;  %v6172_v0 = vpop.eup %4436 }
 0x345   : > { %v2973_v4 = vpop.f32.mrf.mxu2  ;;  %v1772_v62 = vsub.f32 %v7389_v54, %v1627_v38  ;;  %v2886_v27 = vpop.f32.mrf.mxu1  ;;  %v2582_v42 = vmul.f32 %v6068_v30, %v2390_v49  ;;  %7390 = vst [vmem:[#allocation19_spill] sm:$0xff] %v6172_v0  ;;  %v7391_v38 = vld [vmem:[#allocation52_spill] sm:$0xff]  ;;  %v7393_v54 = vld [vmem:[#allocation54_spill] sm:$0xff] }
 0x346   : > { %v2974_v18 = vadd.f32 %v2973_v4, %v2885_v52  ;;  %v3062_v59 = vpop.f32.mrf.mxu3  ;;  %v1957_v47 = vmul.f32 1.442695, %v1769_v60  ;;  %v1959_v56 = vmul.f32 1.442695, %v1770_v28  ;;  %v1961_v14 = vmul.f32 1.442695, %v1771_v11  ;;  %v6177_v60 = vpop.eup %4438 }
 0x347   : > { %1646 = vperm.xlu1 %4275, %v5751_v63   ;;  %v1963_v39 = vmul.f32 1.442695, %v1772_v62  ;;  %v7392_v52 = vld [vmem:[#allocation53_spill] sm:$0xff]  ;;  %v7394_v63 = vld [vmem:[#allocation55_spill] sm:$0xff]  ;;  %v6180_v62 = vpop.eup %4440  ;;  %v2887_v28 = vadd.f32 %v2886_v27, %v2797_v8 }
 0x348   : > { %v3063_v10 = vadd.f32 %v3062_v59, %v2974_v18  ;;  %4446 = vpow2.f32 %v1957_v47  ;;  %v6183_v59 = vpop.eup %4442  ;;  %v2391_v47 = vld [vmem:[#allocation4 + $0x48] sm:$0xff] }
 0x349   : > { %4448 = vpow2.f32 %v1959_v56  ;;  %v2583_v8 = vmul.f32 %v6044_v17, %v2391_v47  ;;  %v2392_v47 = vld [vmem:[#allocation4 + $0x50] sm:$0xff] }
 0x34a   : > { %v3130_v11 = vadd.f32 %v3063_v10, %v2582_v42  ;;  %4450 = vpow2.f32 %v1961_v14 }
 0x34b   : > { %v1637_v58 = vpop.permute.xlu0 %1636  ;;  %4452 = vpow2.f32 %v1963_v39 }
 0x34c   : > { %v1777_v35 = vsub.f32 %v7391_v38, %v1637_v58  ;;  %v1778_v4 = vsub.f32 %v7392_v52, %v1637_v58  ;;  %v1779_v33 = vsub.f32 %v7393_v54, %v1637_v58  ;;  %v1780_v30 = vsub.f32 %v7394_v63, %v1637_v58  ;;  %3162 = vst.msk [vmem:[#allocation4 + $0x40] sm:$0xff] %vm358_vm0, %v3130_v11  ;;  %v6185_v52 = vpop.eup %4444  ;;  %v2800_v10 = vpop.f32.mrf.mxu0 }
 0x34d   : > { %v2975_v38 = vpop.f32.mrf.mxu2 }
 0x34e   : > { %v1973_v43 = vmul.f32 1.442695, %v1777_v35  ;;  %v1975_v49 = vmul.f32 1.442695, %v1778_v4  ;;  %v1977_v18 = vmul.f32 1.442695, %v1779_v33  ;;  %v2976_v56 = vadd.f32 %v2975_v38, %v2887_v28  ;;  %v3064_v14 = vpop.f32.mrf.mxu3  ;;  %v4447_v58 = vpop.eup %4446 }
 0x34f   : > { %v1979_v42 = vmul.f32 1.442695, %v1780_v30  ;;  %v2889_v35 = vpop.f32.mrf.mxu1  ;;  %2506 = vperm.xlu1 %4275, %v6172_v0   ;;  %v4449_v4 = vpop.eup %4448  ;;  %v2634_v39 = vpack.c.bf16 %v4447_v58, %v6177_v60 }
 0x350   : > { %4454 = vpow2.f32 %v1973_v43  ;;  %v3065_v27 = vadd.f32 %v3064_v14, %v2976_v56  ;;  %v4451_v54 = vpop.eup %4450  ;;  %v2635_v33 = vpack.c.bf16 %v4449_v4, %v6180_v62  ;;  %v2232_v11 = vadd.f32 %v4449_v4, %v4447_v58 }
 0x351   : > { %4456 = vpow2.f32 %v1975_v49  ;;  %v4453_v63 = vpop.eup %4452  ;;  %2809 = vmatmul.bf16.gmra.mxu0 %v2634_v39  ;;  %v2636_v30 = vpack.c.bf16 %v4451_v54, %v6183_v59 }
 0x352   : > { %4458 = vpow2.f32 %v1977_v18  ;;  %v3131_v43 = vadd.f32 %v3065_v27, %v2583_v8  ;;  %2898 = vmatmul.bf16.gmra.mxu1 %v2635_v33  ;;  %v2637_v28 = vpack.c.bf16 %v4453_v63, %v6185_v52  ;;  %v2233_v38 = vadd.f32 %v4451_v54, %v2232_v11 }
 0x353   : > { %4460 = vpow2.f32 %v1979_v42  ;;  %v2890_v18 = vadd.f32 %v2889_v35, %v2800_v10  ;;  %2987 = vmatmul.bf16.gmra.mxu2 %v2636_v30  ;;  %v2584_v42 = vmul.f32 %v6041_v3, %v2392_v47  ;;  %v6201_v35 = vld [vmem:[#allocation2 + $0xf8] sm:$0xff] }
 0x354   : > { %3163 = vst.msk [vmem:[#allocation4 + $0x48] sm:$0xff] %vm358_vm0, %v3131_v43  ;;  %3076 = vmatmul.bf16.gmra.mxu3 %v2637_v28  ;;  %v6194_v14 = vadd.f32 %v4453_v63, %v2233_v38  ;;  %v2802_v54 = vpop.f32.mrf.mxu0  ;;  %v2393_v63 = vld [vmem:[#allocation4 + $0x58] sm:$0xff]  ;;  %v7395_v38 = vld [vmem:[#allocation118_spill] sm:$0xff] }
 0x355   : > { %v2978_v56 = vpop.f32.mrf.mxu2 }
 0x356   : > { %v4455_v49 = vpop.eup %4454  ;;  %v2979_v8 = vadd.f32 %v2978_v56, %v2890_v18  ;;  %v3067_v27 = vpop.f32.mrf.mxu3  ;;  %v2585_v56 = vmul.f32 %v6130_v34, %v2393_v63  ;;  %v1478_v34 = vsub.f32 %v6017_v2, %v6023_v48 }
 0x357   : > { %v4457_v17 = vpop.eup %4456  ;;  %v2891_v11 = vpop.f32.mrf.mxu1 }
 0x358   : > { %v2242_v58 = vadd.f32 %v4457_v17, %v4455_v49  ;;  %v4459_v4 = vpop.eup %4458  ;;  %v3068_v33 = vadd.f32 %v3067_v27, %v2979_v8  ;;  %v2892_v10 = vadd.f32 %v2891_v11, %v2802_v54  ;;  %v7399_v11 = vld [vmem:[#allocation66_spill] sm:$0xff] }
 0x359   : > { %v4461_v0 = vpop.eup %4460  ;;  %v2640_v27 = vpack.c.bf16 %v4459_v4, %v6158_v7  ;;  %v7397_v7 = vld [vmem:[#allocation114_spill] sm:$0xff] }
 0x35a   : > { %v2243_v39 = vadd.f32 %v4459_v4, %v2242_v58  ;;  %v3132_v57 = vadd.f32 %v3068_v33, %v2584_v42  ;;  %2175 = vadd.xlane.f32.xlu2 %v5767_v51  ;;  %v2638_v51 = vpack.c.bf16 %v4455_v49, %v6147_v12  ;;  %v7396_v12 = vld [vmem:[#allocation60_spill] sm:$0xff]  ;;  %v1535_v42 = vmul.f32 1.442695, %v1478_v34  ;;  %v6219_v33 = vpop.permute.xlu0 %2496  ;;  %v2094_v4 = vld [vmem:[#allocation3 + $0x8] sm:$0xff] }
 0x35b   : > { %v1473_v49 = vsub.f32 %v7396_v12, %v5868_v15  ;;  %v6232_v15 = vpop.permute.xlu2 %2486  ;;  %v7402_v34 = vld [vmem:[#allocation56_spill] sm:$0xff] }
 0x35c   : > { %v6197_v43 = vadd.f32 %v4461_v0, %v2243_v39  ;;  %3164 = vst.msk [vmem:[#allocation4 + $0x50] sm:$0xff] %vm358_vm0, %v3132_v57  ;;  %v2639_v57 = vpack.c.bf16 %v4457_v17, %v6150_v50  ;;  %v2641_v39 = vpack.c.bf16 %v4461_v0, %v6161_v22  ;;  %4462 = vpow2.f32 %v1535_v42  ;;  %v7398_v17 = vld [vmem:[#allocation113_spill] sm:$0xff] }
 0x35d   : > { %v2980_v30 = vpop.f32.mrf.mxu2  ;;  %v1525_v50 = vmul.f32 1.442695, %v1473_v49  ;;  %v7403_v49 = vld [vmem:[#allocation57_spill] sm:$0xff] }
 0x35e   : > { %v2981_v28 = vadd.f32 %v2980_v30, %v2892_v10  ;;  %v1420_v3 = vpop.xlane.xlu1 %1419  ;;  %v3069_v18 = vpop.f32.mrf.mxu3  ;;  %v2126_v10 = vmul.f32 %v7399_v11, %v2094_v4  ;;  %v7405_v4 = vld [vmem:[#allocation59_spill] sm:$0xff] }
 0x35f   : > { %v6205_v47 = vmax.f32 %v6201_v35, %v1420_v3  ;;  %4464 = vpow2.f32 %v1525_v50  ;;  %v7404_v50 = vld [vmem:[#allocation58_spill] sm:$0xff] }
 0x360   : > { %v3070_v58 = vadd.f32 %v3069_v18, %v2981_v28  ;;  %v2097_v28 = vld [vmem:[#allocation3 + $0x20] sm:$0xff] }
 0x361   : > { %2195 = vadd.xlane.f32.xlu0 %v7395_v38  ;;  %3217 = vst.msk [vmem:[#allocation2 + $0xf8] sm:$0xff] %vm293_vm2, %v6205_v47  ;;  %2814 = vmatmul.bf16.gmra.mxu0 %v2638_v51  ;;  %v7400_v38 = vld [vmem:[#allocation14_spill] sm:$0xff] }
 0x362   : > { %v3133_v8 = vadd.f32 %v3070_v58, %v2585_v56  ;;  %2903 = vmatmul.bf16.gmra.mxu1 %v2639_v57  ;;  %v6223_v22 = vpop.eup %4462  ;;  %v6225_v0 = vpop.permute.xlu0 %1651  ;;  %v1474_v3 = vsub.f32 %v7400_v38, %v7397_v7  ;;  %v7401_v56 = vld [vmem:[#allocation70_spill] sm:$0xff] }
 0x363   : > { %2992 = vmatmul.bf16.gmra.mxu2 %v2640_v27  ;;  %v2129_v58 = vmul.f32 %v7401_v56, %v2097_v28 }
 0x364   : > { %3165 = vst.msk [vmem:[#allocation4 + $0x58] sm:$0xff] %vm358_vm0, %v3133_v8  ;;  %3081 = vmatmul.bf16.gmra.mxu3 %v2641_v39  ;;  %v1527_v27 = vmul.f32 1.442695, %v1474_v3 }
 0x365   : > { %v6228_v2 = vpop.eup %4464 }
 0x366   : > { %4466 = vpow2.f32 %v1527_v27 }
 0x36a   : > { %v6234_v54 = vpop.permute.xlu0 %2511 }
 0x372   : > { %1656 = vperm.xlu2 %4273, %v7397_v7  }
 0x375   : > { %1681 = vperm.xlu0 %4274, %v6077_v44  }
 0x379   : > { %2185 = vadd.xlane.f32.xlu1 %v7398_v17 }
 0x37a   : > { %2516 = vperm.xlu2 %4273, %v6228_v2  }
 0x37d   : > { %2541 = vperm.xlu0 %4274, %v6223_v22  }
 0x384   : > { %v2166_v63 = vpop.xlane.xlu2 %2165 }
 0x385   : > { %v2318_v30 = vadd.f32 %v2166_v63, %v2126_v10  ;;  %v2805_v18 = vpop.f32.mrf.mxu0 }
 0x386   : > { %v2894_v51 = vpop.f32.mrf.mxu1 }
 0x387   : > { %2351 = vst.msk [vmem:[#allocation3 + $0x8] sm:$0xff] %vm293_vm2, %v2318_v30  ;;  %v2895_v10 = vadd.f32 %v2894_v51, %v2805_v18  ;;  %v2394_v30 = vld [vmem:[#allocation4 + $0x60] sm:$0xff]  ;;  %v6248_v51 = vpop.eup %4466 }
 0x388   : > { %7406 = vst [vmem:[#allocation20_spill] sm:$0xff] %v6248_v51 }
 0x38c   : > { %v1642_v39 = vpop.permute.xlu2 %1641 }
 0x38d   : > { %v1781_v12 = vsub.f32 %v7402_v34, %v1642_v39  ;;  %v1782_v42 = vsub.f32 %v7403_v49, %v1642_v39  ;;  %v1783_v17 = vsub.f32 %v7404_v50, %v1642_v39  ;;  %v1784_v11 = vsub.f32 %v7405_v4, %v1642_v39  ;;  %v2983_v28 = vpop.f32.mrf.mxu2  ;;  %v2807_v34 = vpop.f32.mrf.mxu0 }
 0x38e   : > { %v2181_v57 = vpop.xlane.xlu0 %2180  ;;  %v2984_v56 = vadd.f32 %v2983_v28, %v2895_v10  ;;  %v3072_v3 = vpop.f32.mrf.mxu3  ;;  %v2095_v28 = vld [vmem:[#allocation3 + $0x10] sm:$0xff] }
 0x38f   : > { %v2321_v8 = vadd.f32 %v2181_v57, %v2129_v58  ;;  %v1981_v7 = vmul.f32 1.442695, %v1781_v12  ;;  %v1983_v63 = vmul.f32 1.442695, %v1782_v42  ;;  %v1985_v38 = vmul.f32 1.442695, %v1783_v17  ;;  %v2896_v39 = vpop.f32.mrf.mxu1  ;;  %v6255_v42 = vpop.permute.xlu1 %2491 }
 0x390   : > { %v1987_v58 = vmul.f32 1.442695, %v1784_v11  ;;  %v2586_v57 = vmul.f32 %v6114_v45, %v2394_v30  ;;  %v2897_v12 = vadd.f32 %v2896_v39, %v2807_v34  ;;  %v7408_v34 = vld [vmem:[#allocation73_spill] sm:$0xff]  ;;  %v7409_v39 = vld [vmem:[#allocation24_spill] sm:$0xff] }
 0x391   : > { %2354 = vst.msk [vmem:[#allocation3 + $0x20] sm:$0xff] %vm293_vm2, %v2321_v8  ;;  %4468 = vpow2.f32 %v1981_v7  ;;  %v3073_v8 = vadd.f32 %v3072_v3, %v2984_v56  ;;  %v7407_v3 = vld [vmem:[#allocation67_spill] sm:$0xff] }
 0x392   : > { %1661 = vperm.xlu1 %4275, %v5911_v40   ;;  %4470 = vpow2.f32 %v1983_v63  ;;  %v2395_v40 = vld [vmem:[#allocation4 + $0x68] sm:$0xff] }
 0x393   : > { %4472 = vpow2.f32 %v1985_v38  ;;  %v3134_v18 = vadd.f32 %v3073_v8, %v2586_v57  ;;  %v2587_v10 = vmul.f32 %v6111_v53, %v2395_v40  ;;  %v1481_v53 = vsub.f32 %v6098_v32, %v6102_v9 }
 0x394   : > { %4474 = vpow2.f32 %v1987_v58  ;;  %v2127_v58 = vmul.f32 %v7407_v3, %v2095_v28  ;;  %v7413_v28 = vld [vmem:[#allocation64_spill] sm:$0xff]  ;;  %v7414_v3 = vld [vmem:[#allocation65_spill] sm:$0xff] }
 0x395   : > { %3166 = vst.msk [vmem:[#allocation4 + $0x60] sm:$0xff] %vm358_vm0, %v3134_v18  ;;  %v2985_v50 = vpop.f32.mrf.mxu2  ;;  %v7410_v18 = vld [vmem:[#allocation23_spill] sm:$0xff]  ;;  %v1541_v40 = vmul.f32 1.442695, %v1481_v53 }
 0x396   : > { %v2986_v45 = vadd.f32 %v2985_v50, %v2897_v12  ;;  %v3074_v11 = vpop.f32.mrf.mxu3  ;;  %v1476_v12 = vsub.f32 %v7410_v18, %v5968_v55 }
 0x397   : > { %v6250_v27 = vpop.eup %4468  ;;  %4476 = vpow2.f32 %v1541_v40 }
 0x398   : > { %v6253_v49 = vpop.eup %4470  ;;  %v3075_v7 = vadd.f32 %v3074_v11, %v2986_v45  ;;  %v1531_v50 = vmul.f32 1.442695, %v1476_v12  ;;  %v7411_v11 = vld [vmem:[#allocation62_spill] sm:$0xff] }
 0x399   : > { %v2247_v17 = vadd.f32 %v6253_v49, %v6250_v27  ;;  %v4473_v4 = vpop.eup %4472 }
 0x39a   : > { %2521 = vperm.xlu1 %4275, %v6248_v51   ;;  %v4475_v30 = vpop.eup %4474  ;;  %v3135_v38 = vadd.f32 %v3075_v7, %v2587_v10  ;;  %v7412_v7 = vld [vmem:[#allocation63_spill] sm:$0xff]  ;;  %4478 = vpow2.f32 %v1531_v50 }
 0x39b   : > { %v2248_v63 = vadd.f32 %v4473_v4, %v2247_v17  ;;  %v2197_v17 = vadd.f32 %v5994_v36, %v5990_v6 }
 0x39c   : > { %3167 = vst.msk [vmem:[#allocation4 + $0x68] sm:$0xff] %vm358_vm0, %v3135_v38 }
 0x39d   : > { %v6261_v56 = vadd.f32 %v4475_v30, %v2248_v63  ;;  %v6281_v53 = vpop.eup %4476 }
 0x3a0   : > { %v6287_v18 = vpop.eup %4478 }
 0x3a1   : > { %v2171_v57 = vpop.xlane.xlu1 %2170  ;;  %v6283_v6 = vpop.permute.xlu0 %1666  ;;  %7416 = vst [vmem:[#allocation21_spill] sm:$0xff] %v6287_v18 }
 0x3a2   : > { %v2319_v8 = vadd.f32 %v2171_v57, %v2127_v58 }
 0x3a3   : > { %2190 = vadd.xlane.f32.xlu2 %v7408_v34 }
 0x3a4   : > { %2352 = vst.msk [vmem:[#allocation3 + $0x10] sm:$0xff] %vm293_vm2, %v2319_v8  ;;  %v7415_v8 = vld [vmem:[#allocation71_spill] sm:$0xff] }
 0x3a7   : > { %2210 = vadd.xlane.f32.xlu0 %v7409_v39  ;;  %v2198_v39 = vadd.f32 %v5998_v26, %v2197_v17 }
 0x3a9   : > { %v2199_v36 = vadd.f32 %v6001_v41, %v2198_v39 }
 0x3b9   : > { %v1647_v45 = vpop.permute.xlu1 %1646 }
 0x3ba   : > { %v1785_v10 = vsub.f32 %v7411_v11, %v1647_v45  ;;  %v1786_v63 = vsub.f32 %v7412_v7, %v1647_v45  ;;  %v1787_v38 = vsub.f32 %v7413_v28, %v1647_v45  ;;  %v1788_v32 = vsub.f32 %v7414_v3, %v1647_v45  ;;  %v6291_v45 = vpop.permute.xlu2 %2501  ;;  %v6294_v28 = vpop.permute.xlu0 %2526 }
 0x3bb   : > { %1696 = vperm.xlu0 %4274, %v6145_v37   ;;  %1671 = vperm.xlu2 %4273, %v7415_v8  }
 0x3bc   : > { %v1989_v58 = vmul.f32 1.442695, %v1785_v10  ;;  %v1991_v57 = vmul.f32 1.442695, %v1786_v63  ;;  %v1993_v55 = vmul.f32 1.442695, %v1787_v38 }
 0x3bd   : > { %v1995_v34 = vmul.f32 1.442695, %v1788_v32  ;;  %v2096_v38 = vld [vmem:[#allocation3 + $0x18] sm:$0xff] }
 0x3be   : > { %4480 = vpow2.f32 %v1989_v58  ;;  %v2100_v58 = vld [vmem:[#allocation3 + $0x38] sm:$0xff] }
 0x3bf   : > { %4482 = vpow2.f32 %v1991_v57  ;;  %v7418_v57 = vld [vmem:[#allocation68_spill] sm:$0xff] }
 0x3c0   : > { %4484 = vpow2.f32 %v1993_v55 }
 0x3c1   : > { %4486 = vpow2.f32 %v1995_v34 }
 0x3c3   : > { %2556 = vperm.xlu0 %4274, %v6281_v53   ;;  %2531 = vperm.xlu2 %4273, %v6287_v18   ;;  %v7426_v18 = vld [vmem:[#allocation83_spill] sm:$0xff] }
 0x3c4   : > { %v4481_v12 = vpop.eup %4480  ;;  %2200 = vadd.xlane.f32.xlu1 %v2199_v36 }
 0x3c5   : > { %v4483_v40 = vpop.eup %4482  ;;  %v2642_v26 = vpack.c.bf16 %v4481_v12, %v6250_v27  ;;  %v7417_v27 = vld [vmem:[#allocation76_spill] sm:$0xff] }
 0x3c6   : > { %v4485_v50 = vpop.eup %4484  ;;  %v2643_v17 = vpack.c.bf16 %v4483_v40, %v6253_v49  ;;  %v2252_v11 = vadd.f32 %v4483_v40, %v4481_v12  ;;  %v2128_v32 = vmul.f32 %v7417_v27, %v2096_v38  ;;  %v1477_v49 = vsub.f32 %v7418_v57, %v7415_v8  ;;  %v7420_v12 = vld [vmem:[#allocation88_spill] sm:$0xff] }
 0x3c7   : > { %v4487_v10 = vpop.eup %4486  ;;  %2819 = vmatmul.bf16.gmra.mxu0 %v2642_v26  ;;  %v2644_v7 = vpack.c.bf16 %v4485_v50, %v4473_v4  ;;  %v7419_v4 = vld [vmem:[#allocation75_spill] sm:$0xff]  ;;  %v2132_v40 = vmul.f32 %v7420_v12, %v2100_v58  ;;  %v7421_v26 = vld [vmem:[#allocation77_spill] sm:$0xff]  ;;  %v7423_v38 = vld [vmem:[#allocation80_spill] sm:$0xff] }
 0x3c8   : > { %2908 = vmatmul.bf16.gmra.mxu1 %v2643_v17  ;;  %v2645_v41 = vpack.c.bf16 %v4487_v10, %v4475_v30  ;;  %v2253_v63 = vadd.f32 %v4485_v50, %v2252_v11  ;;  %v1789_v30 = vsub.f32 %v7419_v4, %v6225_v0  ;;  %v1790_v50 = vsub.f32 %v7421_v26, %v6225_v0 }
 0x3c9   : > { %2997 = vmatmul.bf16.gmra.mxu2 %v2644_v7  ;;  %v1533_v11 = vmul.f32 1.442695, %v1477_v49  ;;  %v1792_v27 = vsub.f32 %v7423_v38, %v6225_v0  ;;  %v7425_v49 = vld [vmem:[#allocation82_spill] sm:$0xff] }
 0x3ca   : > { %3086 = vmatmul.bf16.gmra.mxu3 %v2645_v41  ;;  %v6296_v3 = vadd.f32 %v4487_v10, %v2253_v63  ;;  %v7422_v10 = vld [vmem:[#allocation79_spill] sm:$0xff]  ;;  %v1997_v41 = vmul.f32 1.442695, %v1789_v30  ;;  %v1999_v63 = vmul.f32 1.442695, %v1790_v50 }
 0x3cb   : > { %v1791_v7 = vsub.f32 %v7422_v10, %v6225_v0  ;;  %4488 = vpow2.f32 %v1533_v11  ;;  %v2003_v51 = vmul.f32 1.442695, %v1792_v27 }
 0x3cc   : > { %4490 = vpow2.f32 %v1997_v41 }
 0x3cd   : > { %v2176_v55 = vpop.xlane.xlu2 %2175  ;;  %4492 = vpow2.f32 %v1999_v63 }
 0x3ce   : > { %v2320_v34 = vadd.f32 %v2176_v55, %v2128_v32  ;;  %v2810_v39 = vpop.f32.mrf.mxu0  ;;  %v2001_v32 = vmul.f32 1.442695, %v1791_v7  ;;  %v2396_v55 = vld [vmem:[#allocation4 + $0x70] sm:$0xff] }
 0x3cf   : > { %v2899_v36 = vpop.f32.mrf.mxu1 }
 0x3d0   : > { %2353 = vst.msk [vmem:[#allocation3 + $0x18] sm:$0xff] %vm293_vm2, %v2320_v34  ;;  %v2900_v58 = vadd.f32 %v2899_v36, %v2810_v39  ;;  %v7424_v34 = vld [vmem:[#allocation81_spill] sm:$0xff]  ;;  %v2588_v36 = vmul.f32 %v6232_v15, %v2396_v55  ;;  %4494 = vpow2.f32 %v2001_v32 }
 0x3d1   : > { %v2397_v15 = vld [vmem:[#allocation4 + $0x78] sm:$0xff] }
 0x3d4   : > { %v2196_v17 = vpop.xlane.xlu0 %2195 }
 0x3d5   : > { %v2324_v8 = vadd.f32 %v2196_v17, %v2132_v40  ;;  %v1657_v57 = vpop.permute.xlu2 %1656  ;;  %v7427_v40 = vld [vmem:[#allocation84_spill] sm:$0xff] }
 0x3d6   : > { %v2988_v4 = vpop.f32.mrf.mxu2  ;;  %v1793_v12 = vsub.f32 %v7424_v34, %v1657_v57  ;;  %v1794_v26 = vsub.f32 %v7425_v49, %v1657_v57  ;;  %v1795_v10 = vsub.f32 %v7426_v18, %v1657_v57  ;;  %v1796_v30 = vsub.f32 %v7427_v40, %v1657_v57  ;;  %v2812_v17 = vpop.f32.mrf.mxu0 }
 0x3d7   : > { %2357 = vst.msk [vmem:[#allocation3 + $0x38] sm:$0xff] %vm293_vm2, %v2324_v8  ;;  %v2989_v50 = vadd.f32 %v2988_v4, %v2900_v58  ;;  %v3077_v11 = vpop.f32.mrf.mxu3  ;;  %v2901_v8 = vpop.f32.mrf.mxu1 }
 0x3d8   : > { %v2005_v0 = vmul.f32 1.442695, %v1793_v12  ;;  %v2007_v7 = vmul.f32 1.442695, %v1794_v26  ;;  %v2009_v39 = vmul.f32 1.442695, %v1795_v10  ;;  %v6317_v49 = vpop.eup %4488  ;;  %v2902_v63 = vadd.f32 %v2901_v8, %v2812_v17  ;;  %v6330_v8 = vpop.permute.xlu1 %2506 }
 0x3d9   : > { %v3078_v38 = vadd.f32 %v3077_v11, %v2989_v50  ;;  %v2011_v34 = vmul.f32 1.442695, %v1796_v30  ;;  %v6320_v41 = vpop.eup %4490 }
 0x3da   : > { %4496 = vpow2.f32 %v2005_v0  ;;  %v6323_v58 = vpop.eup %4492 }
 0x3db   : > { %v3136_v18 = vadd.f32 %v3078_v38, %v2588_v36  ;;  %4498 = vpow2.f32 %v2007_v7  ;;  %v6325_v27 = vpop.eup %4494 }
 0x3dc   : > { %4500 = vpow2.f32 %v2009_v39 }
 0x3dd   : > { %1676 = vperm.xlu1 %4275, %v6023_v48   ;;  %3168 = vst.msk [vmem:[#allocation4 + $0x70] sm:$0xff] %vm358_vm0, %v3136_v18  ;;  %4502 = vpow2.f32 %v2011_v34  ;;  %v2589_v48 = vmul.f32 %v6255_v42, %v2397_v15  ;;  %v2398_v34 = vld [vmem:[#allocation4 + $0x80] sm:$0xff] }
 0x3de   : > { %4504 = vpow2.f32 %v2003_v51  ;;  %v2990_v32 = vpop.f32.mrf.mxu2  ;;  %v2815_v12 = vpop.f32.mrf.mxu0 }
 0x3df   : > { %v2991_v57 = vadd.f32 %v2990_v32, %v2902_v63  ;;  %v3079_v55 = vpop.f32.mrf.mxu3  ;;  %v2904_v26 = vpop.f32.mrf.mxu1  ;;  %v2098_v32 = vld [vmem:[#allocation3 + $0x28] sm:$0xff] }
 0x3e0   : > { %v4497_v4 = vpop.eup %4496  ;;  %v2905_v42 = vadd.f32 %v2904_v26, %v2815_v12 }
 0x3e1   : > { %v4499_v10 = vpop.eup %4498  ;;  %v3080_v40 = vadd.f32 %v3079_v55, %v2991_v57  ;;  %v2646_v30 = vpack.c.bf16 %v4497_v4, %v6320_v41  ;;  %v2590_v55 = vmul.f32 %v6219_v33, %v2398_v34  ;;  %v7429_v34 = vld [vmem:[#allocation91_spill] sm:$0xff] }
 0x3e2   : > { %v4501_v50 = vpop.eup %4500  ;;  %v2647_v17 = vpack.c.bf16 %v4499_v10, %v6323_v58  ;;  %v2262_v11 = vadd.f32 %v4499_v10, %v4497_v4  ;;  %v7428_v10 = vld [vmem:[#allocation90_spill] sm:$0xff] }
 0x3e3   : > { %v4503_v51 = vpop.eup %4502  ;;  %v3137_v0 = vadd.f32 %v3080_v40, %v2589_v48  ;;  %2824 = vmatmul.bf16.gmra.mxu0 %v2646_v30  ;;  %v2648_v7 = vpack.c.bf16 %v4501_v50, %v6325_v27  ;;  %v2130_v48 = vmul.f32 %v7428_v10, %v2098_v32  ;;  %v7431_v32 = vld [vmem:[#allocation93_spill] sm:$0xff] }
 0x3e4   : > { %v6333_v39 = vpop.eup %4504  ;;  %2913 = vmatmul.bf16.gmra.mxu1 %v2647_v17  ;;  %v2263_v38 = vadd.f32 %v4501_v50, %v2262_v11  ;;  %v1484_v11 = vsub.f32 %v6201_v35, %v6205_v47  ;;  %v1801_v35 = vsub.f32 %v7429_v34, %v6283_v6 }
 0x3e5   : > { %3169 = vst.msk [vmem:[#allocation4 + $0x78] sm:$0xff] %vm358_vm0, %v3137_v0  ;;  %3002 = vmatmul.bf16.gmra.mxu2 %v2648_v7  ;;  %v2649_v36 = vpack.c.bf16 %v4503_v51, %v6333_v39  ;;  %2536 = vperm.xlu1 %4275, %v6317_v49  }
 0x3e6   : > { %v2993_v18 = vpop.f32.mrf.mxu2  ;;  %v6338_v57 = vadd.f32 %v4503_v51, %v2263_v38  ;;  %v2817_v12 = vpop.f32.mrf.mxu0  ;;  %v2399_v51 = vld [vmem:[#allocation4 + $0x88] sm:$0xff] }
 0x3e7   : > { %3091 = vmatmul.bf16.gmra.mxu3 %v2649_v36  ;;  %v2994_v63 = vadd.f32 %v2993_v18, %v2905_v42  ;;  %v3082_v15 = vpop.f32.mrf.mxu3  ;;  %v2906_v26 = vpop.f32.mrf.mxu1  ;;  %v2591_v7 = vmul.f32 %v6291_v45, %v2399_v51  ;;  %v1547_v36 = vmul.f32 1.442695, %v1484_v11  ;;  %v7435_v51 = vld [vmem:[#allocation87_spill] sm:$0xff] }
 0x3e8   : > { %v2907_v17 = vadd.f32 %v2906_v26, %v2817_v12  ;;  %v2021_v26 = vmul.f32 1.442695, %v1801_v35 }
 0x3e9   : > { %v3083_v4 = vadd.f32 %v3082_v15, %v2994_v63  ;;  %4506 = vpow2.f32 %v1547_v36  ;;  %v7430_v63 = vld [vmem:[#allocation92_spill] sm:$0xff] }
 0x3ea   : > { %v1802_v15 = vsub.f32 %v7430_v63, %v6283_v6 }
 0x3eb   : > { %v3138_v40 = vadd.f32 %v3083_v4, %v2590_v55  ;;  %v1803_v55 = vsub.f32 %v7431_v32, %v6283_v6  ;;  %v7432_v4 = vld [vmem:[#allocation94_spill] sm:$0xff] }
 0x3ec   : > { %v2186_v30 = vpop.xlane.xlu1 %2185  ;;  %2205 = vadd.xlane.f32.xlu2 %v6015_v1  ;;  %v1479_v1 = vsub.f32 %v6074_v20, %v6077_v44  ;;  %v1804_v12 = vsub.f32 %v7432_v4, %v6283_v6  ;;  %v2023_v10 = vmul.f32 1.442695, %v1802_v15 }
 0x3ed   : > { %2225 = vadd.xlane.f32.xlu0 %v6083_v46  ;;  %v2322_v50 = vadd.f32 %v2186_v30, %v2130_v48  ;;  %3170 = vst.msk [vmem:[#allocation4 + $0x80] sm:$0xff] %vm358_vm0, %v3138_v40  ;;  %v2025_v20 = vmul.f32 1.442695, %v1803_v55  ;;  %v6363_v40 = vpop.permute.xlu0 %1681  ;;  %v7433_v30 = vld [vmem:[#allocation85_spill] sm:$0xff] }
 0x3ee   : > { %v2995_v33 = vpop.f32.mrf.mxu2  ;;  %v1537_v45 = vmul.f32 1.442695, %v1479_v1  ;;  %v2027_v44 = vmul.f32 1.442695, %v1804_v12 }
 0x3ef   : > { %2355 = vst.msk [vmem:[#allocation3 + $0x28] sm:$0xff] %vm293_vm2, %v2322_v50  ;;  %v2996_v46 = vadd.f32 %v2995_v33, %v2907_v17  ;;  %v3084_v0 = vpop.f32.mrf.mxu3  ;;  %v6354_v18 = vpop.eup %4506  ;;  %v7434_v17 = vld [vmem:[#allocation86_spill] sm:$0xff] }
 0x3f0   : > { %4508 = vpow2.f32 %v1537_v45  ;;  %v6381_v45 = vpop.permute.xlu2 %2516 }
 0x3f1   : > { %v3085_v42 = vadd.f32 %v3084_v0, %v2996_v46  ;;  %4510 = vpow2.f32 %v2021_v26  ;;  %v7436_v46 = vld [vmem:[#allocation89_spill] sm:$0xff] }
 0x3f2   : > { %4512 = vpow2.f32 %v2023_v10 }
 0x3f3   : > { %v3139_v38 = vadd.f32 %v3085_v42, %v2591_v7  ;;  %4514 = vpow2.f32 %v2025_v20 }
 0x3f4   : > { %4516 = vpow2.f32 %v2027_v44 }
 0x3f5   : > { %3171 = vst.msk [vmem:[#allocation4 + $0x88] sm:$0xff] %vm358_vm0, %v3139_v38  ;;  %v6383_v32 = vpop.permute.xlu0 %2541 }
 0x3f6   : > { %v6370_v38 = vpop.eup %4508 }
 0x3f7   : > { %v6372_v1 = vpop.eup %4510 }
 0x3f8   : > { %v6374_v34 = vpop.eup %4512 }
 0x3f9   : > { %v6376_v35 = vpop.eup %4514 }
 0x3fa   : > { %v6379_v63 = vpop.eup %4516 }
 0x401   : > { %2571 = vperm.xlu0 %4274, %v6354_v18  }
 0x404   : > { %v1662_v48 = vpop.permute.xlu1 %1661  ;;  %1686 = vperm.xlu2 %4273, %v6058_v16  }
 0x405   : > { %v1797_v50 = vsub.f32 %v7433_v30, %v1662_v48  ;;  %v1798_v11 = vsub.f32 %v7434_v17, %v1662_v48  ;;  %v1799_v33 = vsub.f32 %v7435_v51, %v1662_v48  ;;  %v1800_v0 = vsub.f32 %v7436_v46, %v1662_v48  ;;  %v2099_v30 = vld [vmem:[#allocation3 + $0x30] sm:$0xff] }
 0x407   : > { %v2013_v6 = vmul.f32 1.442695, %v1797_v50  ;;  %v2015_v7 = vmul.f32 1.442695, %v1798_v11  ;;  %v2017_v42 = vmul.f32 1.442695, %v1799_v33 }
 0x408   : > { %v2019_v36 = vmul.f32 1.442695, %v1800_v0  ;;  %v2103_v50 = vld [vmem:[#allocation3 + $0x50] sm:$0xff]  ;;  %v7438_v33 = vld [vmem:[#allocation110_spill] sm:$0xff] }
 0x409   : > { %4518 = vpow2.f32 %v2013_v6  ;;  %v2135_v46 = vmul.f32 %v7438_v33, %v2103_v50 }
 0x40a   : > { %4520 = vpow2.f32 %v2015_v7 }
 0x40b   : > { %4522 = vpow2.f32 %v2017_v42 }
 0x40c   : > { %4524 = vpow2.f32 %v2019_v36  ;;  %2546 = vperm.xlu2 %4273, %v6370_v38  }
 0x40f   : > { %v4519_v15 = vpop.eup %4518  ;;  %2215 = vadd.xlane.f32.xlu1 %v6020_v23  ;;  %v7437_v23 = vld [vmem:[#allocation97_spill] sm:$0xff] }
 0x410   : > { %v4521_v55 = vpop.eup %4520  ;;  %v2650_v4 = vpack.c.bf16 %v6372_v1, %v4519_v15  ;;  %v2131_v51 = vmul.f32 %v7437_v23, %v2099_v30  ;;  %v3223_v23 = vld [vmem:[#allocation3 + $0x10] sm:$0xff] }
 0x411   : > { %v4523_v12 = vpop.eup %4522  ;;  %v2651_v26 = vpack.c.bf16 %v6374_v34, %v4521_v55  ;;  %v2267_v10 = vadd.f32 %v4521_v55, %v4519_v15  ;;  %v7439_v15 = vld [vmem:[#allocation95_spill] sm:$0xff]  ;;  %vm3286_vm4 = vweird.f32 %v3223_v23 }
 0x412   : > { %v4525_v20 = vpop.eup %4524  ;;  %2829 = vmatmul.bf16.gmra.mxu0 %v2650_v4  ;;  %v2652_v44 = vpack.c.bf16 %v6376_v35, %v4523_v12  ;;  %v7440_v4 = vld [vmem:[#allocation96_spill] sm:$0xff] }
 0x413   : > { %2918 = vmatmul.bf16.gmra.mxu1 %v2651_v26  ;;  %v2653_v48 = vpack.c.bf16 %v6379_v63, %v4525_v20  ;;  %v2268_v17 = vadd.f32 %v4523_v12, %v2267_v10  ;;  %v7441_v26 = vld [vmem:[#allocation98_spill] sm:$0xff] }
 0x414   : > { %3007 = vmatmul.bf16.gmra.mxu2 %v2652_v44 }
 0x415   : > { %3096 = vmatmul.bf16.gmra.mxu3 %v2653_v48  ;;  %v6390_v11 = vadd.f32 %v4525_v20, %v2268_v17  ;;  %v7442_v20 = vld [vmem:[#allocation99_spill] sm:$0xff]  ;;  %v1480_v48 = vsub.f32 %v6051_v25, %v6058_v16 }
 0x416   : > { %v2191_v0 = vpop.xlane.xlu2 %2190 }
 0x417   : > { %v2323_v7 = vadd.f32 %v2191_v0, %v2131_v51  ;;  %v1539_v33 = vmul.f32 1.442695, %v1480_v48 }
 0x419   : > { %2356 = vst.msk [vmem:[#allocation3 + $0x30] sm:$0xff] %vm293_vm2, %v2323_v7 }
 0x41a   : > { %v2211_v6 = vpop.xlane.xlu0 %2210 }
 0x41b   : > { %v2327_v42 = vadd.f32 %v2211_v6, %v2135_v46 }
 0x41d   : > { %2360 = vst.msk [vmem:[#allocation3 + $0x50] sm:$0xff] %vm293_vm2, %v2327_v42 }
 0x41e   : > { %v1672_v36 = vpop.permute.xlu2 %1671 }
 0x41f   : > { %v1805_v55 = vsub.f32 %v7439_v15, %v1672_v36  ;;  %v1806_v12 = vsub.f32 %v7440_v4, %v1672_v36  ;;  %v1807_v10 = vsub.f32 %v7441_v26, %v1672_v36  ;;  %v1808_v44 = vsub.f32 %v7442_v20, %v1672_v36  ;;  %v6415_v36 = vpop.permute.xlu1 %2521 }
 0x421   : > { %v2029_v30 = vmul.f32 1.442695, %v1805_v55  ;;  %v2031_v50 = vmul.f32 1.442695, %v1806_v12  ;;  %v2033_v17 = vmul.f32 1.442695, %v1807_v10 }
 0x422   : > { %v2035_v51 = vmul.f32 1.442695, %v1808_v44  ;;  %v2101_v55 = vld [vmem:[#allocation3 + $0x40] sm:$0xff]  ;;  %v7443_v12 = vld [vmem:[#allocation11_spill] sm:$0xff] }
 0x423   : > { %4526 = vpow2.f32 %v2029_v30  ;;  %v2133_v26 = vmul.f32 %v7443_v12, %v2101_v55  ;;  %v3290_v30 = vand.u32 2147483647, %v3223_v23 }
 0x424   : > { %4528 = vpow2.f32 %v2031_v50 }
 0x425   : > { %4530 = vrcp.f32 %v3223_v23  ;;  %vm3291_vm6 = vcmp.eq.f32.partialorder %v3290_v30, 8.507059e+37 }
 0x426   : > { %4532 = vpow2.f32 %v2033_v17 }
 0x427   : > { %4534 = vpow2.f32 %v2035_v51 }
 0x428   : > { %1691 = vperm.xlu1 %4275, %v6102_v9   ;;  %4536 = vpow2.f32 %v1539_v33 }
 0x429   : > { %v6404_v46 = vpop.eup %4526 }
 0x42a   : > { %v6406_v0 = vpop.eup %4528 }
 0x42b   : > { %2240 = vadd.xlane.f32.xlu0 %v6164_v24  ;;  %v4531_v25 = vpop.eup %4530  ;;  %v2277_v16 = vadd.f32 %v6406_v0, %v6404_v46 }
 0x42c   : > { %v6410_v6 = vpop.eup %4532  ;;  %v3282_v9 = vmul.f32 %v4531_v25, %v3223_v23  ;;  %vm3287_vm3 = vweird.f32 %v4531_v25 }
 0x42d   : > { %v2278_v7 = vadd.f32 %v6410_v6, %v2277_v16  ;;  %v6413_v42 = vpop.eup %4534  ;;  %vm3288_vm5 = vmor %vm3286_vm4, %vm3287_vm3  ;;  %v1482_v16 = vsub.f32 %v6139_v61, %v6145_v37  ;;  %v7445_v61 = vld [vmem:[#allocation101_spill] sm:$0xff] }
 0x42e   : > { %v6417_v24 = vpop.eup %4536  ;;  %v3283_v4 = vsub.f32 1.0, %v3282_v9  ;;  %v6429_v9 = vpop.permute.xlu0 %1696 }
 0x42f   : > { %v6421_v15 = vadd.f32 %v6413_v42, %v2278_v7  ;;  %v1543_v7 = vmul.f32 1.442695, %v1482_v16  ;;  %v2227_v16 = vadd.f32 %v6180_v62, %v6177_v60 }
 0x430   : > { %2551 = vperm.xlu1 %4275, %v6417_v24   ;;  %v3284_v44 = vmul.f32 %v4531_v25, %v3283_v4  ;;  %v2400_v4 = vld [vmem:[#allocation4 + $0x90] sm:$0xff] }
 0x431   : > { %4538 = vpow2.f32 %v1543_v7 }
 0x432   : > { %v3285_v48 = vadd.f32 %v4531_v25, %v3284_v44 }
 0x433   : > { %2255 = vadd.xlane.f32.xlu0 %v6296_v3  ;;  %v3292_v3 = vand.u32 2147483648, %v3223_v23  ;;  %v2592_v23 = vmul.f32 %v6330_v8, %v2400_v4 }
 0x434   : > { %v3289_v50 = vsel %vm3288_vm5, %v4531_v25, %v3285_v48 }
 0x435   : > { %2220 = vadd.xlane.f32.xlu2 %v6096_v31  ;;  %v3293_v17 = vor.u32 1.1754944e-38, %v3292_v3  ;;  %v7444_v3 = vld [vmem:[#allocation100_spill] sm:$0xff] }
 0x437   : > { %v2201_v10 = vpop.xlane.xlu1 %2200  ;;  %v3294_v51 = vsel %vm3291_vm6, %v3293_v17, %v3289_v50  ;;  %v7446_v50 = vld [vmem:[#allocation102_spill] sm:$0xff] }
 0x438   : > { %v2325_v20 = vadd.f32 %v2201_v10, %v2133_v26 }
 0x43a   : > { %2358 = vst.msk [vmem:[#allocation3 + $0x40] sm:$0xff] %vm293_vm2, %v2325_v20 }
 0x444   : > { %v2820_v33 = vpop.f32.mrf.mxu0 }
 0x445   : > { %v2909_v31 = vpop.f32.mrf.mxu1 }
 0x446   : > { %v2910_v55 = vadd.f32 %v2909_v31, %v2820_v33 }
 0x447   : > { %3745 = vperm.xlu0 %4274, %v3294_v51   ;;  %v7447_v51 = vld [vmem:[#allocation103_spill] sm:$0xff] }
 0x44c   : > { %v2998_v12 = vpop.f32.mrf.mxu2  ;;  %v2822_v44 = vpop.f32.mrf.mxu0 }
 0x44d   : > { %v2999_v26 = vadd.f32 %v2998_v12, %v2910_v55  ;;  %v3087_v10 = vpop.f32.mrf.mxu3  ;;  %1701 = vperm.xlu2 %4273, %v6120_v13   ;;  %v2911_v48 = vpop.f32.mrf.mxu1 }
 0x44e   : > { %v2912_v8 = vadd.f32 %v2911_v48, %v2822_v44  ;;  %v6447_v44 = vpop.permute.xlu2 %2531 }
 0x44f   : > { %v3088_v25 = vadd.f32 %v3087_v10, %v2999_v26  ;;  %v1677_v20 = vpop.permute.xlu1 %1676  ;;  %v2401_v26 = vld [vmem:[#allocation4 + $0x98] sm:$0xff] }
 0x450   : > { %v1809_v30 = vsub.f32 %v7444_v3, %v1677_v20  ;;  %v1810_v37 = vsub.f32 %v7445_v61, %v1677_v20  ;;  %v1811_v17 = vsub.f32 %v7446_v50, %v1677_v20  ;;  %v1812_v33 = vsub.f32 %v7447_v51, %v1677_v20  ;;  %v6440_v3 = vpop.eup %4538  ;;  %v6442_v61 = vpop.permute.xlu0 %2556 }
 0x451   : > { %v3140_v31 = vadd.f32 %v3088_v25, %v2592_v23  ;;  %v2228_v23 = vadd.f32 %v6183_v59, %v2227_v16  ;;  %v2593_v62 = vmul.f32 %v6234_v54, %v2401_v26  ;;  %v2102_v16 = vld [vmem:[#allocation3 + $0x48] sm:$0xff] }
 0x452   : > { %v2037_v55 = vmul.f32 1.442695, %v1809_v30  ;;  %v2039_v7 = vmul.f32 1.442695, %v1810_v37  ;;  %v2041_v12 = vmul.f32 1.442695, %v1811_v17 }
 0x453   : > { %3172 = vst.msk [vmem:[#allocation4 + $0x90] sm:$0xff] %vm358_vm0, %v3140_v31  ;;  %v2043_v4 = vmul.f32 1.442695, %v1812_v33  ;;  %v2229_v30 = vadd.f32 %v6185_v52, %v2228_v23  ;;  %v2106_v37 = vld [vmem:[#allocation3 + $0x68] sm:$0xff]  ;;  %v7448_v33 = vld [vmem:[#allocation72_spill] sm:$0xff] }
 0x454   : > { %4540 = vpow2.f32 %v2037_v55  ;;  %v3000_v10 = vpop.f32.mrf.mxu2  ;;  %v2138_v31 = vmul.f32 %v7448_v33, %v2106_v37 }
 0x455   : > { %4542 = vpow2.f32 %v2039_v7  ;;  %v3001_v20 = vadd.f32 %v3000_v10, %v2912_v8  ;;  %v3089_v60 = vpop.f32.mrf.mxu3  ;;  %2561 = vperm.xlu2 %4273, %v6440_v3   ;;  %v7449_v10 = vld [vmem:[#allocation8_spill] sm:$0xff] }
 0x456   : > { %4544 = vpow2.f32 %v2041_v12 }
 0x457   : > { %4546 = vpow2.f32 %v2043_v4  ;;  %v3090_v25 = vadd.f32 %v3089_v60, %v3001_v20  ;;  %v7450_v20 = vld [vmem:[#allocation104_spill] sm:$0xff] }
 0x458   : > { %v1813_v23 = vsub.f32 %v7450_v20, %v6363_v40  ;;  %v7457_v20 = vld [vmem:[#allocation111_spill] sm:$0xff] }
 0x459   : > { %v3141_v48 = vadd.f32 %v3090_v25, %v2593_v62 }
 0x45a   : > { %v4541_v50 = vpop.eup %4540  ;;  %2230 = vadd.xlane.f32.xlu1 %v2229_v30 }
 0x45b   : > { %v4543_v17 = vpop.eup %4542  ;;  %3173 = vst.msk [vmem:[#allocation4 + $0x98] sm:$0xff] %vm358_vm0, %v3141_v48  ;;  %v2654_v59 = vpack.c.bf16 %v4541_v50, %v6404_v46  ;;  %v2134_v46 = vmul.f32 %v7449_v10, %v2102_v16  ;;  %v6464_v48 = vld [vmem:[#allocation3 + $0x28] sm:$0xff]  ;;  %v7456_v10 = vld [vmem:[#allocation6_spill] sm:$0xff] }
 0x45c   : > { %v4545_v51 = vpop.eup %4544  ;;  %v2655_v54 = vpack.c.bf16 %v4543_v17, %v6406_v0  ;;  %v2282_v55 = vadd.f32 %v4543_v17, %v4541_v50  ;;  %v7453_v17 = vld [vmem:[#allocation107_spill] sm:$0xff]  ;;  %4548 = vrcp.f32 %v6464_v48  ;;  %vm3328_vm8 = vweird.f32 %v6464_v48 }
 0x45d   : > { %v4547_v7 = vpop.eup %4546  ;;  %2834 = vmatmul.bf16.gmra.mxu0 %v2654_v59  ;;  %v2656_v52 = vpack.c.bf16 %v4545_v51, %v6410_v6  ;;  %v7451_v6 = vld [vmem:[#allocation105_spill] sm:$0xff]  ;;  %v1816_v59 = vsub.f32 %v7453_v17, %v6363_v40  ;;  %v1483_v17 = vsub.f32 %v6116_v21, %v6120_v13 }
 0x45e   : > { %2923 = vmatmul.bf16.gmra.mxu1 %v2655_v54  ;;  %v2657_v4 = vpack.c.bf16 %v4547_v7, %v6413_v42  ;;  %v2283_v26 = vadd.f32 %v4545_v51, %v2282_v55  ;;  %v1814_v25 = vsub.f32 %v7451_v6, %v6363_v40  ;;  %v7452_v42 = vld [vmem:[#allocation106_spill] sm:$0xff]  ;;  %v2045_v51 = vmul.f32 1.442695, %v1813_v23 }
 0x45f   : > { %3012 = vmatmul.bf16.gmra.mxu2 %v2656_v52  ;;  %v2206_v0 = vpop.xlane.xlu2 %2205  ;;  %v1815_v30 = vsub.f32 %v7452_v42, %v6363_v40  ;;  %v2051_v54 = vmul.f32 1.442695, %v1816_v59  ;;  %v7454_v52 = vld [vmem:[#allocation108_spill] sm:$0xff]  ;;  %v1545_v13 = vmul.f32 1.442695, %v1483_v17 }
 0x460   : > { %v2226_v12 = vpop.xlane.xlu0 %2225  ;;  %3101 = vmatmul.bf16.gmra.mxu3 %v2657_v4  ;;  %v6460_v60 = vadd.f32 %v4547_v7, %v2283_v26  ;;  %v2326_v62 = vadd.f32 %v2206_v0, %v2134_v46  ;;  %v2825_v37 = vpop.f32.mrf.mxu0  ;;  %v2047_v33 = vmul.f32 1.442695, %v1814_v25  ;;  %4550 = vpow2.f32 %v2045_v51  ;;  %v2402_v7 = vld [vmem:[#allocation4 + $0xa0] sm:$0xff]  ;;  %v7455_v4 = vld [vmem:[#allocation109_spill] sm:$0xff] }
 0x461   : > { %v2330_v8 = vadd.f32 %v2226_v12, %v2138_v31  ;;  %v2914_v50 = vpop.f32.mrf.mxu1  ;;  %v2049_v31 = vmul.f32 1.442695, %v1815_v30  ;;  %v2594_v30 = vmul.f32 %v6381_v45, %v2402_v7 }
 0x462   : > { %2359 = vst.msk [vmem:[#allocation3 + $0x48] sm:$0xff] %vm293_vm2, %v2326_v62  ;;  %v2915_v16 = vadd.f32 %v2914_v50, %v2825_v37  ;;  %4552 = vpow2.f32 %v2047_v33  ;;  %v6476_v23 = vpop.eup %4548 }
 0x463   : > { %2363 = vst.msk [vmem:[#allocation3 + $0x68] sm:$0xff] %vm293_vm2, %v2330_v8  ;;  %4554 = vpow2.f32 %v2049_v31  ;;  %v3324_v31 = vmul.f32 %v6476_v23, %v6464_v48  ;;  %vm3329_vm7 = vweird.f32 %v6476_v23 }
 0x464   : > { %4556 = vpow2.f32 %v2051_v54  ;;  %vm3330_vm9 = vmor %vm3328_vm8, %vm3329_vm7 }
 0x466   : > { %v6481_v33 = vpop.eup %4550 }
 0x467   : > { %v1687_v55 = vpop.permute.xlu2 %1686 }
 0x468   : > { %v3003_v12 = vpop.f32.mrf.mxu2  ;;  %v1817_v8 = vsub.f32 %v7454_v52, %v1687_v55  ;;  %v1818_v26 = vsub.f32 %v7455_v4, %v1687_v55  ;;  %v1819_v46 = vsub.f32 %v7456_v10, %v1687_v55  ;;  %v1820_v0 = vsub.f32 %v7457_v20, %v1687_v55  ;;  %v2827_v59 = vpop.f32.mrf.mxu0  ;;  %v2403_v55 = vld [vmem:[#allocation4 + $0xa8] sm:$0xff] }
 0x469   : > { %v3004_v40 = vadd.f32 %v3003_v12, %v2915_v16  ;;  %v2916_v51 = vpop.f32.mrf.mxu1  ;;  %v6486_v45 = vpop.eup %4552  ;;  %v2595_v10 = vmul.f32 %v6415_v36, %v2403_v55  ;;  %v2104_v55 = vld [vmem:[#allocation3 + $0x58] sm:$0xff] }
 0x46a   : > { %v3092_v62 = vpop.f32.mrf.mxu3  ;;  %v2053_v6 = vmul.f32 1.442695, %v1817_v8  ;;  %v2055_v25 = vmul.f32 1.442695, %v1818_v26  ;;  %v2057_v42 = vmul.f32 1.442695, %v1819_v46  ;;  %v2917_v54 = vadd.f32 %v2916_v51, %v2827_v59  ;;  %v6489_v21 = vpop.eup %4554 }
 0x46b   : > { %v3093_v37 = vadd.f32 %v3092_v62, %v3004_v40  ;;  %v2059_v50 = vmul.f32 1.442695, %v1820_v0  ;;  %v6491_v12 = vpop.eup %4556  ;;  %v3325_v8 = vsub.f32 1.0, %v3324_v31  ;;  %v6507_v51 = vpop.permute.xlu1 %2536  ;;  %v3332_v31 = vand.u32 2147483647, %v6464_v48 }
 0x46c   : > { %4558 = vpow2.f32 %v2053_v6 }
 0x46d   : > { %v3142_v16 = vadd.f32 %v3093_v37, %v2594_v30  ;;  %4560 = vpow2.f32 %v2055_v25  ;;  %v3326_v30 = vmul.f32 %v6476_v23, %v3325_v8  ;;  %v3221_v37 = vld [vmem:[#allocation3] sm:$0xff]  ;;  %vm3333_vm10 = vcmp.eq.f32.partialorder %v3332_v31, 8.507059e+37 }
 0x46e   : > { %4562 = vpow2.f32 %v2057_v42  ;;  %v7458_v8 = vld [vmem:[#allocation78_spill] sm:$0xff]  ;;  %vm3258_vm12 = vweird.f32 %v3221_v37 }
 0x46f   : > { %3174 = vst.msk [vmem:[#allocation4 + $0xa0] sm:$0xff] %vm358_vm0, %v3142_v16  ;;  %4564 = vpow2.f32 %v2059_v50  ;;  %v3327_v17 = vadd.f32 %v6476_v23, %v3326_v30  ;;  %v3334_v16 = vand.u32 2147483648, %v6464_v48 }
 0x470   : > { %v3005_v7 = vpop.f32.mrf.mxu2  ;;  %4566 = vpow2.f32 %v1545_v13 }
 0x471   : > { %2270 = vadd.xlane.f32.xlu0 %v6390_v11  ;;  %v3006_v52 = vadd.f32 %v3005_v7, %v2917_v54  ;;  %4568 = vrcp.f32 %v3221_v37  ;;  %v3331_v54 = vsel %vm3330_vm9, %v6476_v23, %v3327_v17  ;;  %v3335_v13 = vor.u32 1.1754944e-38, %v3334_v16 }
 0x472   : > { %v4559_v11 = vpop.eup %4558  ;;  %v3094_v4 = vpop.f32.mrf.mxu3 }
 0x473   : > { %v4561_v26 = vpop.eup %4560  ;;  %v3095_v46 = vadd.f32 %v3094_v4, %v3006_v52  ;;  %1706 = vperm.xlu1 %4275, %v6205_v47   ;;  %v2658_v20 = vpack.c.bf16 %v4559_v11, %v6481_v33  ;;  %v3336_v52 = vsel %vm3333_vm10, %v3335_v13, %v3331_v54  ;;  %v6527_v54 = vld [vmem:[#allocation3 + $0x8] sm:$0xff] }
 0x474   : > { %v4563_v0 = vpop.eup %4562  ;;  %v2659_v40 = vpack.c.bf16 %v4561_v26, %v6486_v45  ;;  %v2292_v62 = vadd.f32 %v4561_v26, %v4559_v11  ;;  %v2136_v11 = vmul.f32 %v7458_v8, %v2104_v55  ;;  %4570 = vrcp.f32 %v6527_v54 }
 0x475   : > { %v4565_v6 = vpop.eup %4564  ;;  %v3143_v25 = vadd.f32 %v3095_v46, %v2595_v10  ;;  %2839 = vmatmul.bf16.gmra.mxu0 %v2658_v20  ;;  %v2660_v42 = vpack.c.bf16 %v4563_v0, %v6489_v21  ;;  %vm3272_vm3 = vweird.f32 %v6527_v54 }
 0x476   : > { %2928 = vmatmul.bf16.gmra.mxu1 %v2659_v40  ;;  %v2661_v36 = vpack.c.bf16 %v4565_v6, %v6491_v12  ;;  %v2293_v50 = vadd.f32 %v4563_v0, %v2292_v62  ;;  %v6505_v59 = vpop.eup %4566  ;;  %v3262_v40 = vand.u32 2147483647, %v3221_v37  ;;  %v1825_v62 = vsub.f32 %v5846_v29, %v6429_v9  ;;  %v2404_v29 = vld [vmem:[#allocation4 + $0xb0] sm:$0xff] }
 0x477   : > { %3175 = vst.msk [vmem:[#allocation4 + $0xa8] sm:$0xff] %vm358_vm0, %v3143_v25  ;;  %3017 = vmatmul.bf16.gmra.mxu2 %v2660_v42  ;;  %v4569_v7 = vpop.eup %4568  ;;  %v6521_v25 = vpop.permute.xlu0 %2571 }
 0x478   : > { %3106 = vmatmul.bf16.gmra.mxu3 %v2661_v36  ;;  %v6501_v47 = vadd.f32 %v4565_v6, %v2293_v50  ;;  %v3254_v26 = vmul.f32 %v4569_v7, %v3221_v37  ;;  %vm3259_vm11 = vweird.f32 %v4569_v7  ;;  %v1826_v6 = vsub.f32 %v5848_v19, %v6429_v9  ;;  %v7459_v50 = vld [vmem:[#allocation115_spill] sm:$0xff] }
 0x479   : > { %vm3260_vm13 = vmor %vm3258_vm12, %vm3259_vm11  ;;  %v1827_v36 = vsub.f32 %v5863_v5, %v6429_v9  ;;  %vm3263_vm14 = vcmp.eq.f32.partialorder %v3262_v40, 8.507059e+37  ;;  %v1828_v17 = vsub.f32 %v7459_v50, %v6429_v9  ;;  %v2069_v16 = vmul.f32 1.442695, %v1825_v62  ;;  %v7462_v40 = vld [vmem:[#allocation61_spill] sm:$0xff] }
 0x47a   : > { %v3255_v46 = vsub.f32 1.0, %v3254_v26  ;;  %v2071_v13 = vmul.f32 1.442695, %v1826_v6  ;;  %v2596_v5 = vmul.f32 %v6294_v28, %v2404_v29  ;;  %v7463_v6 = vld [vmem:[#allocation12_spill] sm:$0xff]  ;;  %v7464_v28 = vld [vmem:[#allocation13_spill] sm:$0xff]  ;;  %v6539_v29 = vpop.eup %4570 }
 0x47b   : > { %2566 = vperm.xlu1 %4275, %v6505_v59   ;;  %v2073_v8 = vmul.f32 1.442695, %v1827_v36  ;;  %4572 = vpow2.f32 %v2069_v16  ;;  %vm3273_vm15 = vweird.f32 %v6539_v29 }
 0x47c   : > { %v3256_v48 = vmul.f32 %v4569_v7, %v3255_v46  ;;  %4574 = vpow2.f32 %v2071_v13  ;;  %v7460_v46 = vld [vmem:[#allocation26_spill] sm:$0xff]  ;;  %v2405_v13 = vld [vmem:[#allocation4 + $0xb8] sm:$0xff]  ;;  %vm3274_vm4 = vmor %vm3272_vm3, %vm3273_vm15 }
 0x47d   : > { %4576 = vpow2.f32 %v2073_v8 }
 0x47e   : > { %2235 = vadd.xlane.f32.xlu2 %v6194_v14  ;;  %v3257_v20 = vadd.f32 %v4569_v7, %v3256_v48  ;;  %v3264_v14 = vand.u32 2147483648, %v3221_v37 }
 0x480   : > { %v3261_v42 = vsel %vm3260_vm13, %v4569_v7, %v3257_v20  ;;  %v3265_v30 = vor.u32 1.1754944e-38, %v3264_v14  ;;  %v2109_v7 = vld [vmem:[#allocation3 + $0x80] sm:$0xff] }
 0x481   : > { %v2141_v48 = vmul.f32 %v7460_v46, %v2109_v7  ;;  %v6543_v7 = vpop.eup %4572 }
 0x482   : > { %v2216_v4 = vpop.xlane.xlu1 %2215  ;;  %v3266_v31 = vsel %vm3263_vm14, %v3265_v30, %v3261_v42  ;;  %v6535_v30 = vld [vmem:[#allocation3 + $0x40] sm:$0xff] }
 0x483   : > { %v2328_v10 = vadd.f32 %v2216_v4, %v2136_v11  ;;  %v2075_v11 = vmul.f32 1.442695, %v1828_v17  ;;  %vm3370_vm5 = vweird.f32 %v6535_v30 }
 0x485   : > { %3760 = vperm.xlu0 %4274, %v3336_v52   ;;  %2361 = vst.msk [vmem:[#allocation3 + $0x58] sm:$0xff] %vm293_vm2, %v2328_v10  ;;  %4578 = vpow2.f32 %v2075_v11  ;;  %v6547_v11 = vpop.permute.xlu2 %2546 }
 0x486   : > { %4580 = vrcp.f32 %v6535_v30 }
 0x48f   : > { %v2830_v23 = vpop.f32.mrf.mxu0 }
 0x490   : > { %v2919_v0 = vpop.f32.mrf.mxu1 }
 0x491   : > { %v2920_v37 = vadd.f32 %v2919_v0, %v2830_v23  ;;  %v7461_v0 = vld [vmem:[#allocation112_spill] sm:$0xff] }
 0x496   : > { %3735 = vperm.xlu2 %4273, %v3266_v31   ;;  %v2112_v31 = vld [vmem:[#allocation3 + $0x98] sm:$0xff] }
 0x497   : > { %v3008_v55 = vpop.f32.mrf.mxu2  ;;  %v2832_v4 = vpop.f32.mrf.mxu0 }
 0x498   : > { %v3009_v19 = vadd.f32 %v3008_v55, %v2920_v37  ;;  %v3097_v52 = vpop.f32.mrf.mxu3  ;;  %v2921_v26 = vpop.f32.mrf.mxu1 }
 0x499   : > { %v2922_v17 = vadd.f32 %v2921_v26, %v2832_v4  ;;  %v2597_v4 = vmul.f32 %v6447_v44, %v2405_v13 }
 0x49a   : > { %v3098_v9 = vadd.f32 %v3097_v52, %v3009_v19  ;;  %v1692_v10 = vpop.permute.xlu1 %1691 }
 0x49b   : > { %v1821_v14 = vsub.f32 %v7461_v0, %v1692_v10  ;;  %v1822_v62 = vsub.f32 %v7462_v40, %v1692_v10  ;;  %v1823_v42 = vsub.f32 %v7463_v6, %v1692_v10  ;;  %v1824_v36 = vsub.f32 %v7464_v28, %v1692_v10  ;;  %v7465_v10 = vld [vmem:[#allocation15_spill] sm:$0xff] }
 0x49c   : > { %v3144_v23 = vadd.f32 %v3098_v9, %v2596_v5  ;;  %v6545_v5 = vpop.eup %4574  ;;  %v2144_v46 = vmul.f32 %v7465_v10, %v2112_v31 }
 0x49d   : > { %v2061_v16 = vmul.f32 1.442695, %v1821_v14  ;;  %v2063_v37 = vmul.f32 1.442695, %v1822_v62  ;;  %v2065_v55 = vmul.f32 1.442695, %v1823_v42 }
 0x49e   : > { %v2241_v20 = vpop.xlane.xlu0 %2240  ;;  %3176 = vst.msk [vmem:[#allocation4 + $0xb0] sm:$0xff] %vm358_vm0, %v3144_v23  ;;  %v2067_v19 = vmul.f32 1.442695, %v1824_v36  ;;  %v2105_v62 = vld [vmem:[#allocation3 + $0x60] sm:$0xff] }
 0x49f   : > { %v2333_v50 = vadd.f32 %v2241_v20, %v2141_v48  ;;  %v3010_v52 = vpop.f32.mrf.mxu2  ;;  %4582 = vpow2.f32 %v2061_v16  ;;  %v6551_v48 = vpop.eup %4576 }
 0x4a0   : > { %v3011_v8 = vadd.f32 %v3010_v52, %v2922_v17  ;;  %4584 = vpow2.f32 %v2063_v37  ;;  %v3099_v9 = vpop.f32.mrf.mxu3  ;;  %v6553_v23 = vpop.eup %4578  ;;  %v3268_v52 = vmul.f32 %v6539_v29, %v6527_v54 }
 0x4a1   : > { %2366 = vst.msk [vmem:[#allocation3 + $0x80] sm:$0xff] %vm293_vm2, %v2333_v50  ;;  %4586 = vpow2.f32 %v2065_v55  ;;  %v6555_v40 = vpop.eup %4580  ;;  %v7466_v50 = vld [vmem:[#allocation25_spill] sm:$0xff] }
 0x4a2   : > { %v3100_v26 = vadd.f32 %v3099_v9, %v3011_v8  ;;  %4588 = vpow2.f32 %v2067_v19  ;;  %v2137_v17 = vmul.f32 %v7466_v50, %v2105_v62  ;;  %v3366_v8 = vmul.f32 %v6555_v40, %v6535_v30  ;;  %v7469_v62 = vld [vmem:[#allocation119_spill] sm:$0xff] }
 0x4a3   : > { %vm3371_vm1 = vweird.f32 %v6555_v40 }
 0x4a4   : > { %v3145_v0 = vadd.f32 %v3100_v26, %v2597_v4  ;;  %v3269_v4 = vsub.f32 1.0, %v3268_v52  ;;  %v3367_v26 = vsub.f32 1.0, %v3366_v8  ;;  %v3276_v8 = vand.u32 2147483647, %v6527_v54  ;;  %vm3372_vm6 = vmor %vm3370_vm5, %vm3371_vm1 }
 0x4a5   : > { %v4583_v6 = vpop.eup %4582  ;;  %2245 = vadd.xlane.f32.xlu1 %v6197_v43 }
 0x4a6   : > { %v2256_v20 = vpop.xlane.xlu0 %2255  ;;  %3177 = vst.msk [vmem:[#allocation4 + $0xb8] sm:$0xff] %vm358_vm0, %v3145_v0  ;;  %v4585_v44 = vpop.eup %4584  ;;  %v2662_v42 = vpack.c.bf16 %v6543_v7, %v4583_v6  ;;  %v7468_v0 = vld [vmem:[#allocation117_spill] sm:$0xff]  ;;  %v3368_v50 = vmul.f32 %v6555_v40, %v3367_v26  ;;  %v3374_v26 = vand.u32 2147483647, %v6535_v30  ;;  %vm3277_vm7 = vcmp.eq.f32.partialorder %v3276_v8, 8.507059e+37 }
 0x4a7   : > { %v2336_v14 = vadd.f32 %v2256_v20, %v2144_v46  ;;  %v4587_v28 = vpop.eup %4586  ;;  %v2663_v36 = vpack.c.bf16 %v6545_v5, %v4585_v44  ;;  %v2297_v16 = vadd.f32 %v4585_v44, %v4583_v6  ;;  %v7467_v46 = vld [vmem:[#allocation116_spill] sm:$0xff]  ;;  %v7470_v44 = vld [vmem:[#allocation7_spill] sm:$0xff] }
 0x4a8   : > { %v4589_v37 = vpop.eup %4588  ;;  %2844 = vmatmul.bf16.gmra.mxu0 %v2662_v42  ;;  %v2664_v31 = vpack.c.bf16 %v6551_v48, %v4587_v28  ;;  %v2221_v13 = vpop.xlane.xlu2 %2220  ;;  %v3369_v52 = vadd.f32 %v6555_v40, %v3368_v50  ;;  %vm3375_vm8 = vcmp.eq.f32.partialorder %v3374_v26, 8.507059e+37 }
 0x4a9   : > { %2369 = vst.msk [vmem:[#allocation3 + $0x98] sm:$0xff] %vm293_vm2, %v2336_v14  ;;  %2933 = vmatmul.bf16.gmra.mxu1 %v2663_v36  ;;  %v2665_v55 = vpack.c.bf16 %v6553_v23, %v4589_v37  ;;  %v2329_v43 = vadd.f32 %v2221_v13, %v2137_v17  ;;  %v2298_v19 = vadd.f32 %v4587_v28, %v2297_v16  ;;  %v3703_v16 = vld [vmem:[#allocation4 + $0x10] sm:$0xff] }
 0x4aa   : > { %3022 = vmatmul.bf16.gmra.mxu2 %v2664_v31  ;;  %v3270_v28 = vmul.f32 %v6539_v29, %v3269_v4  ;;  %v3376_v4 = vand.u32 2147483648, %v6535_v30 }
 0x4ab   : > { %3111 = vmatmul.bf16.gmra.mxu3 %v2665_v55  ;;  %2362 = vst.msk [vmem:[#allocation3 + $0x60] sm:$0xff] %vm293_vm2, %v2329_v43  ;;  %v6571_v9 = vadd.f32 %v4589_v37, %v2298_v19  ;;  %v3224_v43 = vld [vmem:[#allocation3 + $0x18] sm:$0xff]  ;;  %v3278_v19 = vand.u32 2147483648, %v6527_v54 }
 0x4ac   : > { %v3271_v55 = vadd.f32 %v6539_v29, %v3270_v28  ;;  %v3377_v54 = vor.u32 1.1754944e-38, %v3376_v4  ;;  %vm3300_vm10 = vweird.f32 %v3224_v43 }
 0x4af   : > { %2285 = vadd.xlane.f32.xlu0 %v6460_v60 }
 0x4b0   : > { %v1702_v10 = vpop.permute.xlu2 %1701 }
 0x4b1   : > { %v1829_v20 = vsub.f32 %v7467_v46, %v1702_v10  ;;  %v1830_v14 = vsub.f32 %v7468_v0, %v1702_v10  ;;  %v1831_v6 = vsub.f32 %v7469_v62, %v1702_v10  ;;  %v1832_v42 = vsub.f32 %v7470_v44, %v1702_v10 }
 0x4b2   : > { %v3275_v10 = vsel %vm3274_vm4, %v6539_v29, %v3271_v55  ;;  %v3373_v0 = vsel %vm3372_vm6, %v6555_v40, %v3369_v52  ;;  %v3304_v52 = vand.u32 2147483647, %v3224_v43 }
 0x4b3   : > { %v2077_v60 = vmul.f32 1.442695, %v1829_v20  ;;  %v2079_v36 = vmul.f32 1.442695, %v1830_v14  ;;  %v2081_v17 = vmul.f32 1.442695, %v1831_v6  ;;  %v3378_v44 = vsel %vm3375_vm8, %v3377_v54, %v3373_v0 }
 0x4b4   : > { %v2083_v31 = vmul.f32 1.442695, %v1832_v42  ;;  %v3279_v20 = vor.u32 1.1754944e-38, %v3278_v19  ;;  %vm3305_vm12 = vcmp.eq.f32.partialorder %v3304_v52, 8.507059e+37  ;;  %v2115_v0 = vld [vmem:[#allocation3 + $0xb0] sm:$0xff]  ;;  %v2257_v54 = vadd.f32 %v6323_v58, %v6320_v41 }
 0x4b5   : > { %4590 = vpow2.f32 %v2077_v60 }
 0x4b6   : > { %4592 = vpow2.f32 %v2079_v36  ;;  %v3280_v62 = vsel %vm3277_vm7, %v3279_v20, %v3275_v10  ;;  %v6615_v36 = vpop.permute.xlu1 %2551 }
 0x4b7   : > { %4594 = vpow2.f32 %v2081_v17  ;;  %v2107_v17 = vld [vmem:[#allocation3 + $0x70] sm:$0xff] }
 0x4b8   : > { %4596 = vrcp.f32 %v3224_v43 }
 0x4b9   : > { %v3746_v37 = vpop.permute.xlu0 %3745  ;;  %4598 = vpow2.f32 %v2083_v31 }
 0x4ba   : > { %v3895_v13 = vmul.f32 %v3746_v37, %v3703_v16  ;;  %v7471_v37 = vld [vmem:[#allocation69_spill] sm:$0xff] }
 0x4bb   : > { %v6599_v46 = vpop.eup %4590  ;;  %v2139_v31 = vmul.f32 %v7471_v37, %v2107_v17  ;;  %v2258_v17 = vadd.f32 %v6325_v27, %v2257_v54  ;;  %v7473_v27 = vld [vmem:[#allocation9_spill] sm:$0xff] }
 0x4bc   : > { %3927 = vst.msk [vmem:[%s6584_s29 + $0x10] sm:$0xff] %vm358_vm0, %v3895_v13  ;;  %v6602_v14 = vpop.eup %4592  ;;  %v7476_v54 = vld [vmem:[#allocation121_spill] sm:$0xff] }
 0x4bd   : > { %v2307_v6 = vadd.f32 %v6602_v14, %v6599_v46  ;;  %v6606_v30 = vpop.eup %4594 }
 0x4be   : > { %3740 = vperm.xlu1 %4275, %v3280_v62   ;;  %v4597_v29 = vpop.eup %4596  ;;  %v6621_v62 = vld [vmem:[#allocation3 + $0x58] sm:$0xff] }
 0x4bf   : > { %2250 = vadd.xlane.f32.xlu2 %v6261_v56  ;;  %v2308_v42 = vadd.f32 %v6606_v30, %v2307_v6  ;;  %v6610_v40 = vpop.eup %4598  ;;  %v3296_v60 = vmul.f32 %v4597_v29, %v3224_v43  ;;  %vm3301_vm9 = vweird.f32 %v4597_v29  ;;  %v3306_v56 = vand.u32 2147483648, %v3224_v43  ;;  %v7472_v6 = vld [vmem:[#allocation18_spill] sm:$0xff] }
 0x4c0   : > { %vm3302_vm11 = vmor %vm3300_vm10, %vm3301_vm9  ;;  %4600 = vrcp.f32 %v6621_v62  ;;  %v2406_v43 = vld [vmem:[#allocation4 + $0xc0] sm:$0xff]  ;;  %vm3412_vm14 = vweird.f32 %v6621_v62 }
 0x4c1   : > { %v6613_v28 = vadd.f32 %v6610_v40, %v2308_v42  ;;  %v3297_v50 = vsub.f32 1.0, %v3296_v60  ;;  %v3307_v4 = vor.u32 1.1754944e-38, %v3306_v56  ;;  %v2598_v41 = vmul.f32 %v6507_v51, %v2406_v43  ;;  %v6639_v43 = vpop.permute.xlu2 %2561 }
 0x4c2   : > { %v2259_v56 = vadd.f32 %v6333_v39, %v2258_v17 }
 0x4c3   : > { %3775 = vperm.xlu0 %4274, %v3378_v44   ;;  %v3298_v16 = vmul.f32 %v4597_v29, %v3297_v50  ;;  %v2147_v44 = vmul.f32 %v7472_v6, %v2115_v0 }
 0x4c5   : > { %v3299_v19 = vadd.f32 %v4597_v29, %v3298_v16  ;;  %v6626_v16 = vld [vmem:[#allocation3 + $0x20] sm:$0xff] }
 0x4c6   : > { %4602 = vrcp.f32 %v6626_v16  ;;  %v6632_v52 = vpop.eup %4600  ;;  %vm3314_vm3 = vweird.f32 %v6626_v16 }
 0x4c7   : > { %v3303_v8 = vsel %vm3302_vm11, %v4597_v29, %v3299_v19  ;;  %v3408_v17 = vmul.f32 %v6632_v52, %v6621_v62  ;;  %vm3413_vm13 = vweird.f32 %v6632_v52 }
 0x4c8   : > { %v3308_v26 = vsel %vm3305_vm12, %v3307_v4, %v3303_v8  ;;  %vm6677_vm15 = vmor %vm3412_vm14, %vm3413_vm13 }
 0x4cd   : > { %v2231_v13 = vpop.xlane.xlu1 %2230 }
 0x4ce   : > { %v2331_v55 = vadd.f32 %v2231_v13, %v2139_v31 }
 0x4d0   : > { %2364 = vst.msk [vmem:[#allocation3 + $0x70] sm:$0xff] %vm293_vm2, %v2331_v55 }
 0x4d7   : > { %3750 = vperm.xlu2 %4273, %v3308_v26   ;;  %v7474_v26 = vld [vmem:[#allocation10_spill] sm:$0xff] }
 0x4da   : > { %v2835_v10 = vpop.f32.mrf.mxu0 }
 0x4db   : > { %v2924_v20 = vpop.f32.mrf.mxu1 }
 0x4dc   : > { %v2925_v42 = vadd.f32 %v2924_v20, %v2835_v10  ;;  %v7475_v20 = vld [vmem:[#allocation120_spill] sm:$0xff] }
 0x4e2   : > { %v3013_v29 = vpop.f32.mrf.mxu2  ;;  %v2837_v13 = vpop.f32.mrf.mxu0 }
 0x4e3   : > { %v3014_v37 = vadd.f32 %v3013_v29, %v2925_v42  ;;  %v3102_v31 = vpop.f32.mrf.mxu3  ;;  %v2926_v55 = vpop.f32.mrf.mxu1 }
 0x4e4   : > { %v2271_v60 = vpop.xlane.xlu0 %2270  ;;  %v2927_v51 = vadd.f32 %v2926_v55, %v2837_v13  ;;  %v2108_v55 = vld [vmem:[#allocation3 + $0x78] sm:$0xff] }
 0x4e5   : > { %v2339_v50 = vadd.f32 %v2271_v60, %v2147_v44  ;;  %v3103_v58 = vadd.f32 %v3102_v31, %v3014_v37  ;;  %v1707_v19 = vpop.permute.xlu1 %1706  ;;  %v2407_v60 = vld [vmem:[#allocation4 + $0xc8] sm:$0xff]  ;;  %v6644_v37 = vpop.eup %4602 }
 0x4e6   : > { %v1833_v4 = vsub.f32 %v7473_v27, %v1707_v19  ;;  %v1834_v10 = vsub.f32 %v7474_v26, %v1707_v19  ;;  %v1835_v0 = vsub.f32 %v7475_v20, %v1707_v19  ;;  %v1836_v6 = vsub.f32 %v7476_v54, %v1707_v19  ;;  %v7477_v27 = vld [vmem:[#allocation16_spill] sm:$0xff] }
 0x4e7   : > { %2372 = vst.msk [vmem:[#allocation3 + $0xb0] sm:$0xff] %vm293_vm2, %v2339_v50  ;;  %v3146_v8 = vadd.f32 %v3103_v58, %v2598_v41  ;;  %v2599_v58 = vmul.f32 %v6383_v32, %v2407_v60  ;;  %v3409_v19 = vsub.f32 1.0, %v3408_v17  ;;  %v3706_v60 = vld [vmem:[#allocation4 + $0x28] sm:$0xff]  ;;  %vm3315_vm1 = vweird.f32 %v6644_v37 }
 0x4e8   : > { %v2085_v44 = vmul.f32 1.442695, %v1833_v4  ;;  %v2087_v42 = vmul.f32 1.442695, %v1834_v10  ;;  %2260 = vadd.xlane.f32.xlu1 %v2259_v56  ;;  %v2089_v39 = vmul.f32 1.442695, %v1835_v0  ;;  %v3310_v56 = vmul.f32 %v6644_v37, %v6626_v16  ;;  %vm3316_vm5 = vmor %vm3314_vm3, %vm3315_vm1 }
 0x4e9   : > { %3178 = vst.msk [vmem:[#allocation4 + $0xc0] sm:$0xff] %vm358_vm0, %v3146_v8  ;;  %v2091_v29 = vmul.f32 1.442695, %v1836_v6  ;;  %v2140_v4 = vmul.f32 %v7477_v27, %v2108_v55  ;;  %v3410_v20 = vmul.f32 %v6632_v52, %v3409_v19  ;;  %v3701_v19 = vld [vmem:[#allocation4] sm:$0xff]  ;;  %v2408_v27 = vld [vmem:[#allocation4 + $0xd0] sm:$0xff] }
 0x4ea   : > { %v3015_v50 = vpop.f32.mrf.mxu2  ;;  %4604 = vpow2.f32 %v2085_v44  ;;  %v3311_v0 = vsub.f32 1.0, %v3310_v56 }
 0x4eb   : > { %v3016_v31 = vadd.f32 %v3015_v50, %v2927_v51  ;;  %4606 = vpow2.f32 %v2087_v42  ;;  %v3104_v41 = vpop.f32.mrf.mxu3 }
 0x4ec   : > { %4608 = vpow2.f32 %v2089_v39 }
 0x4ed   : > { %2300 = vadd.xlane.f32.xlu0 %v6571_v9  ;;  %v3105_v13 = vadd.f32 %v3104_v41, %v3016_v31  ;;  %4610 = vpow2.f32 %v2091_v29  ;;  %v3312_v31 = vmul.f32 %v6644_v37, %v3311_v0  ;;  %v3416_v41 = vand.u32 2147483647, %v6621_v62 }
 0x4ef   : > { %v3147_v9 = vadd.f32 %v3105_v13, %v2599_v58  ;;  %vm3417_vm4 = vcmp.eq.f32.partialorder %v3416_v41, 8.507059e+37 }
 0x4f0   : > { %v6649_v8 = vpop.eup %4604 }
 0x4f1   : > { %3179 = vst.msk [vmem:[#allocation4 + $0xc8] sm:$0xff] %vm358_vm0, %v3147_v9  ;;  %v6653_v26 = vpop.eup %4606  ;;  %v2236_v10 = vpop.xlane.xlu2 %2235  ;;  %v2666_v32 = vpack.c.bf16 %v6649_v8, %v6599_v46  ;;  %v3313_v9 = vadd.f32 %v6644_v37, %v3312_v31  ;;  %v2409_v31 = vld [vmem:[#allocation4 + $0xd8] sm:$0xff] }
 0x4f2   : > { %v6658_v54 = vpop.eup %4608  ;;  %v2332_v6 = vadd.f32 %v2236_v10, %v2140_v4  ;;  %v2667_v51 = vpack.c.bf16 %v6653_v26, %v6602_v14  ;;  %v2840_v46 = vpop.f32.mrf.mxu0  ;;  %v3411_v14 = vadd.f32 %v6632_v52, %v3410_v20 }
 0x4f3   : > { %v6662_v44 = vpop.eup %4610  ;;  %2849 = vmatmul.bf16.gmra.mxu0 %v2666_v32  ;;  %v2668_v42 = vpack.c.bf16 %v6658_v54, %v6606_v30  ;;  %v2929_v29 = vpop.f32.mrf.mxu1  ;;  %v3418_v30 = vand.u32 2147483648, %v6621_v62  ;;  %v3320_v32 = vand.u32 2147483648, %v6626_v16 }
 0x4f4   : > { %2365 = vst.msk [vmem:[#allocation3 + $0x78] sm:$0xff] %vm293_vm2, %v2332_v6  ;;  %2938 = vmatmul.bf16.gmra.mxu1 %v2667_v51  ;;  %v2669_v50 = vpack.c.bf16 %v6662_v44, %v6610_v40  ;;  %v3227_v40 = vld [vmem:[#allocation3 + $0x30] sm:$0xff]  ;;  %v2930_v13 = vadd.f32 %v2929_v29, %v2840_v46  ;;  %v3415_v56 = vsel %vm6677_vm15, %v6632_v52, %v3411_v14  ;;  %v3318_v6 = vand.u32 2147483647, %v6626_v16 }
 0x4f5   : > { %3027 = vmatmul.bf16.gmra.mxu2 %v2668_v42  ;;  %v3419_v10 = vor.u32 1.1754944e-38, %v3418_v30  ;;  %4612 = vrcp.f32 %v3227_v40  ;;  %v2600_v51 = vmul.f32 %v6547_v11, %v2408_v27  ;;  %v3321_v29 = vor.u32 1.1754944e-38, %v3320_v32 }
 0x4f6   : > { %3116 = vmatmul.bf16.gmra.mxu3 %v2669_v50  ;;  %vm3319_vm6 = vcmp.eq.f32.partialorder %v3318_v6, 8.507059e+37  ;;  %v3348_v27 = vand.u32 2147483648, %v3227_v40  ;;  %vm3342_vm8 = vweird.f32 %v3227_v40 }
 0x4f7   : > { %v3761_v39 = vpop.permute.xlu0 %3760  ;;  %v3420_v52 = vsel %vm3417_vm4, %v3419_v10, %v3415_v56 }
 0x4f8   : > { %v3898_v17 = vmul.f32 %v3761_v39, %v3706_v60  ;;  %v3317_v60 = vsel %vm3316_vm5, %v6644_v37, %v3313_v9  ;;  %v2601_v37 = vmul.f32 %v6615_v36, %v2409_v31  ;;  %v3349_v32 = vor.u32 1.1754944e-38, %v3348_v27  ;;  %v3702_v27 = vld [vmem:[#allocation4 + $0x8] sm:$0xff] }
 0x4f9   : > { %v3736_v55 = vpop.permute.xlu2 %3735 }
 0x4fa   : > { %3930 = vst.msk [vmem:[%s6584_s29 + $0x28] sm:$0xff] %vm358_vm0, %v3898_v17  ;;  %v3018_v4 = vpop.f32.mrf.mxu2  ;;  %v3893_v62 = vmul.f32 %v3736_v55, %v3701_v19  ;;  %v2842_v39 = vpop.f32.mrf.mxu0  ;;  %v3322_v17 = vsel %vm3319_vm6, %v3321_v29, %v3317_v60 }
 0x4fb   : > { %v3019_v20 = vadd.f32 %v3018_v4, %v2930_v13  ;;  %v3107_v0 = vpop.f32.mrf.mxu3  ;;  %v2931_v46 = vpop.f32.mrf.mxu1  ;;  %v3346_v4 = vand.u32 2147483647, %v3227_v40 }
 0x4fc   : > { %3925 = vst.msk [vmem:[%s6584_s29] sm:$0xff] %vm358_vm0, %v3893_v62  ;;  %v4613_v16 = vpop.eup %4612  ;;  %v2932_v14 = vadd.f32 %v2931_v46, %v2842_v39  ;;  %v2110_v62 = vld [vmem:[#allocation3 + $0x88] sm:$0xff] }
 0x4fd   : > { %v3108_v42 = vadd.f32 %v3107_v0, %v3019_v20  ;;  %v3338_v58 = vmul.f32 %v4613_v16, %v3227_v40  ;;  %vm3343_vm7 = vweird.f32 %v4613_v16  ;;  %vm3347_vm10 = vcmp.eq.f32.partialorder %v3346_v4, 8.507059e+37  ;;  %v7480_v20 = vld [vmem:[#allocation17_spill] sm:$0xff] }
 0x4fe   : > { %vm3344_vm9 = vmor %vm3342_vm8, %vm3343_vm7  ;;  %v2142_v36 = vmul.f32 %v7480_v20, %v2110_v62  ;;  %v2312_v40 = vadd.f32 %v6653_v26, %v6649_v8  ;;  %v3709_v20 = vld [vmem:[#allocation4 + $0x40] sm:$0xff] }
 0x4ff   : > { %v3148_v50 = vadd.f32 %v3108_v42, %v2600_v51  ;;  %v3339_v19 = vsub.f32 1.0, %v3338_v58  ;;  %v2118_v51 = vld [vmem:[#allocation3 + $0xc8] sm:$0xff]  ;;  %v6701_v42 = vld [vmem:[#allocation3 + $0x70] sm:$0xff] }
 0x500   : > { %2265 = vadd.xlane.f32.xlu2 %v6338_v57  ;;  %v6697_v57 = vpop.permute.xlu1 %2566  ;;  %v2150_v60 = vmul.f32 %v6223_v22, %v2118_v51  ;;  %4614 = vrcp.f32 %v6701_v42  ;;  %v2313_v29 = vadd.f32 %v6658_v54, %v2312_v40  ;;  %vm3454_vm12 = vweird.f32 %v6701_v42 }
 0x501   : > { %3790 = vperm.xlu0 %4274, %v3420_v52   ;;  %3180 = vst.msk [vmem:[#allocation4 + $0xd0] sm:$0xff] %vm358_vm0, %v3148_v50  ;;  %3755 = vperm.xlu1 %4275, %v3322_v17   ;;  %v3340_v56 = vmul.f32 %v4613_v16, %v3339_v19  ;;  %v2272_v50 = vadd.f32 %v6374_v34, %v6372_v1 }
 0x502   : > { %v3020_v30 = vpop.f32.mrf.mxu2  ;;  %v2314_v22 = vadd.f32 %v6662_v44, %v2313_v29  ;;  %v3460_v29 = vand.u32 2147483648, %v6701_v42 }
 0x503   : > { %v3021_v11 = vadd.f32 %v3020_v30, %v2932_v14  ;;  %v3109_v41 = vpop.f32.mrf.mxu3  ;;  %v3341_v9 = vadd.f32 %v4613_v16, %v3340_v56  ;;  %v6715_v14 = vld [vmem:[#allocation3 + $0x38] sm:$0xff]  ;;  %v2273_v8 = vadd.f32 %v6376_v35, %v2272_v50  ;;  %v2410_v35 = vld [vmem:[#allocation4 + $0xe0] sm:$0xff] }
 0x504   : > { %vm3356_vm4 = vweird.f32 %v6715_v14 }
 0x505   : > { %v3110_v13 = vadd.f32 %v3109_v41, %v3021_v11  ;;  %v3345_v10 = vsel %vm3344_vm9, %v4613_v16, %v3341_v9  ;;  %v2274_v1 = vadd.f32 %v6379_v63, %v2273_v8  ;;  %v2602_v63 = vmul.f32 %v6442_v61, %v2410_v35 }
 0x506   : > { %v3350_v0 = vsel %vm3347_vm10, %v3349_v32, %v3345_v10  ;;  %v6713_v16 = vpop.eup %4614 }
 0x507   : > { %v3149_v55 = vadd.f32 %v3110_v13, %v2601_v37  ;;  %v3450_v54 = vmul.f32 %v6713_v16, %v6701_v42  ;;  %v2111_v13 = vld [vmem:[#allocation3 + $0x90] sm:$0xff]  ;;  %vm3455_vm11 = vweird.f32 %v6713_v16 }
 0x508   : > { %vm3456_vm13 = vmor %vm3454_vm12, %vm3455_vm11 }
 0x509   : > { %3181 = vst.msk [vmem:[#allocation4 + $0xd8] sm:$0xff] %vm358_vm0, %v3149_v55  ;;  %v3451_v34 = vsub.f32 1.0, %v3450_v54 }
 0x50b   : > { %v3452_v55 = vmul.f32 %v6713_v16, %v3451_v34 }
 0x50d   : > { %v3453_v40 = vadd.f32 %v6713_v16, %v3452_v55  ;;  %v3704_v55 = vld [vmem:[#allocation4 + $0x18] sm:$0xff] }
 0x518   : > { %v2246_v6 = vpop.xlane.xlu1 %2245  ;;  %3765 = vperm.xlu2 %4273, %v3350_v0   ;;  %v7481_v0 = vld [vmem:[#allocation19_spill] sm:$0xff] }
 0x519   : > { %v2334_v52 = vadd.f32 %v2246_v6, %v2142_v36  ;;  %v2143_v6 = vmul.f32 %v7481_v0, %v2111_v13 }
 0x51b   : > { %2367 = vst.msk [vmem:[#allocation3 + $0x88] sm:$0xff] %vm293_vm2, %v2334_v52 }
 0x522   : > { %v2286_v39 = vpop.xlane.xlu0 %2285  ;;  %v6711_v17 = vld [vmem:[#allocation3 + $0x88] sm:$0xff] }
 0x523   : > { %v2342_v46 = vadd.f32 %v2286_v39, %v2150_v60  ;;  %4616 = vrcp.f32 %v6711_v17  ;;  %vm3496_vm3 = vweird.f32 %v6711_v17 }
 0x524   : > { %4618 = vrcp.f32 %v6715_v14 }
 0x525   : > { %2375 = vst.msk [vmem:[#allocation3 + $0xc8] sm:$0xff] %vm293_vm2, %v2342_v46  ;;  %v2845_v26 = vpop.f32.mrf.mxu0 }
 0x526   : > { %v2934_v31 = vpop.f32.mrf.mxu1 }
 0x527   : > { %v2935_v11 = vadd.f32 %v2934_v31, %v2845_v26  ;;  %v3458_v26 = vand.u32 2147483647, %v6701_v42 }
 0x529   : > { %v6724_v30 = vpop.eup %4616  ;;  %vm3459_vm14 = vcmp.eq.f32.partialorder %v3458_v26, 8.507059e+37 }
 0x52a   : > { %v6726_v44 = vpop.eup %4618  ;;  %v3492_v19 = vmul.f32 %v6724_v30, %v6711_v17  ;;  %vm3497_vm15 = vweird.f32 %v6724_v30 }
 0x52b   : > { %2315 = vadd.xlane.f32.xlu0 %v2314_v22  ;;  %2275 = vadd.xlane.f32.xlu1 %v2274_v1  ;;  %v3352_v62 = vmul.f32 %v6726_v44, %v6715_v14  ;;  %v2411_v22 = vld [vmem:[#allocation4 + $0xe8] sm:$0xff]  ;;  %v3457_v1 = vsel %vm3456_vm13, %v6713_v16, %v3453_v40  ;;  %vm3357_vm1 = vweird.f32 %v6726_v44  ;;  %v3502_v16 = vand.u32 2147483648, %v6711_v17  ;;  %vm3498_vm5 = vmor %vm3496_vm3, %vm3497_vm15 }
 0x52c   : > { %v3493_v39 = vsub.f32 1.0, %v3492_v19  ;;  %vm3358_vm6 = vmor %vm3356_vm4, %vm3357_vm1 }
 0x52d   : > { %v3023_v41 = vpop.f32.mrf.mxu2  ;;  %v2847_v9 = vpop.f32.mrf.mxu0  ;;  %v3353_v50 = vsub.f32 1.0, %v3352_v62 }
 0x52e   : > { %v3024_v58 = vadd.f32 %v3023_v41, %v2935_v11  ;;  %v3112_v37 = vpop.f32.mrf.mxu3  ;;  %v2936_v10 = vpop.f32.mrf.mxu1  ;;  %v3494_v34 = vmul.f32 %v6724_v30, %v3493_v39  ;;  %v2603_v11 = vmul.f32 %v6639_v43, %v2411_v22  ;;  %v3461_v41 = vor.u32 1.1754944e-38, %v3460_v29  ;;  %v2121_v39 = vld [vmem:[#allocation3 + $0xe0] sm:$0xff] }
 0x52f   : > { %v2937_v46 = vadd.f32 %v2936_v10, %v2847_v9  ;;  %v3362_v9 = vand.u32 2147483648, %v6715_v14 }
 0x530   : > { %v3113_v56 = vadd.f32 %v3112_v37, %v3024_v58  ;;  %v3741_v4 = vpop.permute.xlu1 %3740  ;;  %v3354_v58 = vmul.f32 %v6726_v44, %v3353_v50  ;;  %v3230_v37 = vld [vmem:[#allocation3 + $0x48] sm:$0xff]  ;;  %v3462_v19 = vsel %vm3459_vm14, %v3461_v41, %v3457_v1  ;;  %v2153_v50 = vmul.f32 %v6281_v53, %v2121_v39  ;;  %v6772_v1 = vld [vmem:[#allocation3 + $0x50] sm:$0xff] }
 0x531   : > { %v3894_v32 = vmul.f32 %v3741_v4, %v3702_v27  ;;  %4620 = vrcp.f32 %v3230_v37  ;;  %v3500_v27 = vand.u32 2147483647, %v6711_v17  ;;  %v3360_v4 = vand.u32 2147483647, %v6715_v14 }
 0x532   : > { %v3150_v52 = vadd.f32 %v3113_v56, %v2602_v63  ;;  %v2251_v60 = vpop.xlane.xlu2 %2250  ;;  %v3495_v56 = vadd.f32 %v6724_v30, %v3494_v34  ;;  %v3355_v43 = vadd.f32 %v6726_v44, %v3354_v58  ;;  %vm3384_vm10 = vweird.f32 %v3230_v37  ;;  %v2114_v58 = vld [vmem:[#allocation3 + $0xa8] sm:$0xff] }
 0x533   : > { %3926 = vst.msk [vmem:[%s6584_s29 + $0x8] sm:$0xff] %vm358_vm0, %v3894_v32  ;;  %v2335_v61 = vadd.f32 %v2251_v60, %v2143_v6  ;;  %v3503_v32 = vor.u32 1.1754944e-38, %v3502_v16  ;;  %vm3501_vm7 = vcmp.eq.f32.partialorder %v3500_v27, 8.507059e+37  ;;  %vm3361_vm8 = vcmp.eq.f32.partialorder %v3360_v4, 8.507059e+37 }
 0x534   : > { %3182 = vst.msk [vmem:[#allocation4 + $0xe0] sm:$0xff] %vm358_vm0, %v3150_v52  ;;  %v3499_v62 = vsel %vm3498_vm5, %v6724_v30, %v3495_v56  ;;  %v3359_v10 = vsel %vm3358_vm6, %v6726_v44, %v3355_v43  ;;  %v3390_v60 = vand.u32 2147483648, %v3230_v37  ;;  %v3388_v30 = vand.u32 2147483647, %v3230_v37  ;;  %v3705_v56 = vld [vmem:[#allocation4 + $0x20] sm:$0xff] }
 0x535   : > { %v3776_v36 = vpop.permute.xlu0 %3775  ;;  %v3025_v8 = vpop.f32.mrf.mxu2  ;;  %2368 = vst.msk [vmem:[#allocation3 + $0x90] sm:$0xff] %vm293_vm2, %v2335_v61  ;;  %v3504_v0 = vsel %vm3501_vm7, %v3503_v32, %v3499_v62  ;;  %vm3398_vm4 = vweird.f32 %v6772_v1 }
 0x536   : > { %v3901_v51 = vmul.f32 %v3776_v36, %v3709_v20  ;;  %v3026_v31 = vadd.f32 %v3025_v8, %v2937_v46  ;;  %v3114_v54 = vpop.f32.mrf.mxu3  ;;  %v3363_v20 = vor.u32 1.1754944e-38, %v3362_v9  ;;  %v3391_v61 = vor.u32 1.1754944e-38, %v3390_v60 }
 0x537   : > { %v4621_v36 = vpop.eup %4620  ;;  %vm3389_vm12 = vcmp.eq.f32.partialorder %v3388_v30, 8.507059e+37 }
 0x538   : > { %3933 = vst.msk [vmem:[%s6584_s29 + $0x40] sm:$0xff] %vm358_vm0, %v3901_v51  ;;  %v3115_v35 = vadd.f32 %v3114_v54, %v3026_v31  ;;  %v3364_v6 = vsel %vm3361_vm8, %v3363_v20, %v3359_v10  ;;  %v3380_v17 = vmul.f32 %v4621_v36, %v3230_v37  ;;  %vm3385_vm9 = vweird.f32 %v4621_v36 }
 0x539   : > { %vm3386_vm11 = vmor %vm3384_vm10, %vm3385_vm9  ;;  %v2287_v31 = vadd.f32 %v6486_v45, %v6481_v33 }
 0x53a   : > { %v3151_v13 = vadd.f32 %v3115_v35, %v2603_v11  ;;  %v3751_v42 = vpop.permute.xlu2 %3750  ;;  %v3381_v52 = vsub.f32 1.0, %v3380_v17  ;;  %v3712_v35 = vld [vmem:[#allocation4 + $0x58] sm:$0xff] }
 0x53b   : > { %v3896_v63 = vmul.f32 %v3751_v42, %v3704_v55  ;;  %v2288_v34 = vadd.f32 %v6489_v21, %v2287_v31 }
 0x53c   : > { %3183 = vst.msk [vmem:[#allocation4 + $0xe8] sm:$0xff] %vm358_vm0, %v3151_v13  ;;  %v3382_v14 = vmul.f32 %v4621_v36, %v3381_v52 }
 0x53d   : > { %3928 = vst.msk [vmem:[%s6584_s29 + $0x18] sm:$0xff] %vm358_vm0, %v3896_v63  ;;  %v2289_v53 = vadd.f32 %v6491_v12, %v2288_v34  ;;  %v7482_v63 = vld [vmem:[#allocation20_spill] sm:$0xff] }
 0x53e   : > { %v3383_v51 = vadd.f32 %v4621_v36, %v3382_v14  ;;  %v2146_v12 = vmul.f32 %v7482_v63, %v2114_v58 }
 0x53f   : > { %3805 = vperm.xlu0 %4274, %v3462_v19  }
 0x540   : > { %v3387_v44 = vsel %vm3386_vm11, %v4621_v36, %v3383_v51  ;;  %v3233_v51 = vld [vmem:[#allocation3 + $0x60] sm:$0xff] }
 0x541   : > { %2280 = vadd.xlane.f32.xlu2 %v6421_v15  ;;  %v2113_v15 = vld [vmem:[#allocation3 + $0xa0] sm:$0xff]  ;;  %v3392_v40 = vsel %vm3389_vm12, %v3391_v61, %v3387_v44  ;;  %v3707_v61 = vld [vmem:[#allocation4 + $0x30] sm:$0xff]  ;;  %vm3426_vm8 = vweird.f32 %v3233_v51 }
 0x542   : > { %v2145_v46 = vmul.f32 %v6228_v2, %v2113_v15 }
 0x544   : > { %3770 = vperm.xlu1 %4275, %v3364_v6   ;;  %v2412_v6 = vld [vmem:[#allocation4 + $0xf0] sm:$0xff] }
 0x545   : > { %v2604_v60 = vmul.f32 %v6697_v57, %v2412_v6  ;;  %v2413_v57 = vld [vmem:[#allocation4 + $0xf8] sm:$0xff] }
 0x547   : > { %3820 = vperm.xlu0 %4274, %v3504_v0  }
 0x559   : > { %3780 = vperm.xlu2 %4273, %v3392_v40  }
 0x55b   : > { %v2261_v29 = vpop.xlane.xlu1 %2260 }
 0x55c   : > { %v2337_v22 = vadd.f32 %v2261_v29, %v2145_v46 }
 0x55e   : > { %2370 = vst.msk [vmem:[#allocation3 + $0xa0] sm:$0xff] %vm293_vm2, %v2337_v22 }
 0x560   : > { %v2301_v8 = vpop.xlane.xlu0 %2300 }
 0x561   : > { %v2345_v26 = vadd.f32 %v2301_v8, %v2153_v50 }
 0x563   : > { %2378 = vst.msk [vmem:[#allocation3 + $0xe0] sm:$0xff] %vm293_vm2, %v2345_v26  ;;  %v3404_v26 = vand.u32 2147483648, %v6772_v1 }
 0x565   : > { %v3241_v54 = vld [vmem:[#allocation3 + $0xa0] sm:$0xff] }
 0x566   : > { %4622 = vrcp.f32 %v3241_v54  ;;  %v3544_v45 = vand.u32 2147483648, %v3241_v54  ;;  %v3542_v55 = vand.u32 2147483647, %v3241_v54  ;;  %vm3538_vm14 = vweird.f32 %v3241_v54 }
 0x567   : > { %4624 = vrcp.f32 %v6772_v1 }
 0x568   : > { %v3545_v10 = vor.u32 1.1754944e-38, %v3544_v45  ;;  %vm3543_vm1 = vcmp.eq.f32.partialorder %v3542_v55, 8.507059e+37  ;;  %4626 = vrcp.f32 %v3233_v51  ;;  %v3430_v55 = vand.u32 2147483647, %v3233_v51 }
 0x56a   : > { %vm3431_vm10 = vcmp.eq.f32.partialorder %v3430_v55, 8.507059e+37 }
 0x56c   : > { %v4623_v2 = vpop.eup %4622 }
 0x56d   : > { %v3534_v11 = vmul.f32 %v4623_v2, %v3241_v54  ;;  %v6777_v13 = vpop.eup %4624  ;;  %vm3539_vm13 = vweird.f32 %v4623_v2  ;;  %v3402_v54 = vand.u32 2147483647, %v6772_v1 }
 0x56e   : > { %2290 = vadd.xlane.f32.xlu1 %v2289_v53  ;;  %v3394_v27 = vmul.f32 %v6777_v13, %v6772_v1  ;;  %vm3540_vm15 = vmor %vm3538_vm14, %vm3539_vm13  ;;  %vm3399_vm3 = vweird.f32 %v6777_v13  ;;  %v2605_v53 = vmul.f32 %v6521_v25, %v2413_v57 }
 0x56f   : > { %v3535_v37 = vsub.f32 1.0, %v3534_v11  ;;  %vm3400_vm5 = vmor %vm3398_vm4, %vm3399_vm3  ;;  %vm3403_vm6 = vcmp.eq.f32.partialorder %v3402_v54, 8.507059e+37  ;;  %v6824_v54 = vld [vmem:[#allocation3 + $0x98] sm:$0xff] }
 0x570   : > { %v2850_v21 = vpop.f32.mrf.mxu0  ;;  %v3395_v0 = vsub.f32 1.0, %v3394_v27 }
 0x571   : > { %v3536_v42 = vmul.f32 %v4623_v2, %v3535_v37  ;;  %v2939_v19 = vpop.f32.mrf.mxu1 }
 0x572   : > { %v2940_v36 = vadd.f32 %v2939_v19, %v2850_v21  ;;  %v3396_v15 = vmul.f32 %v6777_v13, %v3395_v0  ;;  %v2124_v21 = vld [vmem:[#allocation3 + $0xf8] sm:$0xff] }
 0x573   : > { %v3791_v41 = vpop.permute.xlu0 %3790  ;;  %v3756_v43 = vpop.permute.xlu1 %3755  ;;  %v3537_v9 = vadd.f32 %v4623_v2, %v3536_v42  ;;  %v2156_v63 = vmul.f32 %v6354_v18, %v2124_v21 }
 0x574   : > { %v3904_v33 = vmul.f32 %v3791_v41, %v3712_v35  ;;  %v2266_v16 = vpop.xlane.xlu2 %2265  ;;  %v3897_v4 = vmul.f32 %v3756_v43, %v3705_v56  ;;  %v3397_v22 = vadd.f32 %v6777_v13, %v3396_v15  ;;  %v3405_v41 = vor.u32 1.1754944e-38, %v3404_v26  ;;  %v2116_v56 = vld [vmem:[#allocation3 + $0xb8] sm:$0xff] }
 0x575   : > { %v2338_v62 = vadd.f32 %v2266_v16, %v2146_v12  ;;  %v3541_v32 = vsel %vm3540_vm15, %v4623_v2, %v3537_v9  ;;  %v4627_v2 = vpop.eup %4626  ;;  %v7483_v16 = vld [vmem:[#allocation21_spill] sm:$0xff] }
 0x576   : > { %3936 = vst.msk [vmem:[%s6584_s29 + $0x58] sm:$0xff] %vm358_vm0, %v3904_v33  ;;  %v3546_v20 = vsel %vm3543_vm1, %v3545_v10, %v3541_v32  ;;  %v3401_v35 = vsel %vm3400_vm5, %v6777_v13, %v3397_v22  ;;  %v3422_v33 = vmul.f32 %v4627_v2, %v3233_v51  ;;  %vm3427_vm7 = vweird.f32 %v4627_v2  ;;  %v6807_v32 = vld [vmem:[#allocation3 + $0x68] sm:$0xff] }
 0x577   : > { %3929 = vst.msk [vmem:[%s6584_s29 + $0x20] sm:$0xff] %vm358_vm0, %v3897_v4  ;;  %3835 = vperm.xlu0 %4274, %v3546_v20   ;;  %v3406_v37 = vsel %vm3403_vm6, %v3405_v41, %v3401_v35  ;;  %vm3428_vm9 = vmor %vm3426_vm8, %vm3427_vm7  ;;  %v2148_v9 = vmul.f32 %v7483_v16, %v2116_v56  ;;  %v3715_v20 = vld [vmem:[#allocation4 + $0x70] sm:$0xff]  ;;  %vm3440_vm1 = vweird.f32 %v6807_v32  ;;  %v6851_v16 = vld [vmem:[#allocation3 + $0xc8] sm:$0xff] }
 0x578   : > { %2371 = vst.msk [vmem:[#allocation3 + $0xa8] sm:$0xff] %vm293_vm2, %v2338_v62  ;;  %v3028_v17 = vpop.f32.mrf.mxu2  ;;  %v2852_v40 = vpop.f32.mrf.mxu0  ;;  %v3423_v45 = vsub.f32 1.0, %v3422_v33  ;;  %v2302_v62 = vadd.f32 %v6545_v5, %v6543_v7  ;;  %v6814_v5 = vld [vmem:[#allocation3 + $0x80] sm:$0xff] }
 0x579   : > { %v3029_v52 = vadd.f32 %v3028_v17, %v2940_v36  ;;  %v3117_v14 = vpop.f32.mrf.mxu3  ;;  %v2941_v39 = vpop.f32.mrf.mxu1  ;;  %vm3482_vm6 = vweird.f32 %v6814_v5 }
 0x57a   : > { %v2942_v50 = vadd.f32 %v2941_v39, %v2852_v40  ;;  %v3424_v1 = vmul.f32 %v4627_v2, %v3423_v45  ;;  %v2303_v18 = vadd.f32 %v6551_v48, %v2302_v62  ;;  %v3718_v40 = vld [vmem:[#allocation4 + $0x88] sm:$0xff]  ;;  %v6833_v45 = vld [vmem:[#allocation3 + $0xb0] sm:$0xff] }
 0x57b   : > { %v3118_v30 = vadd.f32 %v3117_v14, %v3029_v52  ;;  %v2117_v52 = vld [vmem:[#allocation3 + $0xc0] sm:$0xff] }
 0x57c   : > { %v3766_v44 = vpop.permute.xlu2 %3765  ;;  %v3425_v42 = vadd.f32 %v4627_v2, %v3424_v1  ;;  %v2304_v17 = vadd.f32 %v6553_v23, %v2303_v18 }
 0x57d   : > { %v3899_v46 = vmul.f32 %v3766_v44, %v3707_v61  ;;  %v3152_v29 = vadd.f32 %v3118_v30, %v2604_v60  ;;  %v2149_v60 = vmul.f32 %v6317_v49, %v2117_v52 }
 0x57e   : > { %v3429_v25 = vsel %vm3428_vm9, %v4627_v2, %v3425_v42  ;;  %v6826_v2 = vld [vmem:[#allocation3 + $0x78] sm:$0xff]  ;;  %v3446_v42 = vand.u32 2147483648, %v6807_v32 }
 0x57f   : > { %3931 = vst.msk [vmem:[%s6584_s29 + $0x30] sm:$0xff] %vm358_vm0, %v3899_v46  ;;  %v3708_v46 = vld [vmem:[#allocation4 + $0x38] sm:$0xff]  ;;  %v6856_v62 = vld [vmem:[#allocation3 + $0xa8] sm:$0xff] }
 0x580   : > { %3184 = vst.msk [vmem:[#allocation4 + $0xf0] sm:$0xff] %vm358_vm0, %v3152_v29  ;;  %v3030_v8 = vpop.f32.mrf.mxu2 }
 0x581   : > { %v3031_v31 = vadd.f32 %v3030_v8, %v2942_v50  ;;  %v3119_v34 = vpop.f32.mrf.mxu3 }
 0x582   : > { %2295 = vadd.xlane.f32.xlu2 %v6501_v47  ;;  %v3432_v47 = vand.u32 2147483648, %v3233_v51 }
 0x583   : > { %v3120_v11 = vadd.f32 %v3119_v34, %v3031_v31 }
 0x584   : > { %v3433_v19 = vor.u32 1.1754944e-38, %v3432_v47  ;;  %v6839_v47 = vld [vmem:[#allocation3 + $0x90] sm:$0xff] }
 0x585   : > { %v3153_v58 = vadd.f32 %v3120_v11, %v2605_v53  ;;  %v3710_v11 = vld [vmem:[#allocation4 + $0x48] sm:$0xff] }
 0x586   : > { %v3434_v13 = vsel %vm3431_vm10, %v3433_v19, %v3429_v25  ;;  %v3444_v25 = vand.u32 2147483647, %v6807_v32 }
 0x587   : > { %3185 = vst.msk [vmem:[#allocation4 + $0xf8] sm:$0xff] %vm358_vm0, %v3153_v58  ;;  %3785 = vperm.xlu1 %4275, %v3406_v37  }
 0x588   : > { %vm3445_vm4 = vcmp.eq.f32.partialorder %v3444_v25, 8.507059e+37  ;;  %v3514_v25 = vand.u32 2147483647, %v6839_v47 }
 0x59a   : > { %3795 = vperm.xlu2 %4273, %v3434_v13  }
 0x59e   : > { %v2316_v12 = vpop.xlane.xlu0 %2315  ;;  %v2276_v27 = vpop.xlane.xlu1 %2275 }
 0x59f   : > { %v2348_v43 = vadd.f32 %v2316_v12, %v2156_v63  ;;  %v2340_v4 = vadd.f32 %v2276_v27, %v2148_v9  ;;  %v3488_v27 = vand.u32 2147483648, %v6814_v5 }
 0x5a1   : > { %2381 = vst.msk [vmem:[#allocation3 + $0xf8] sm:$0xff] %vm293_vm2, %v2348_v43 }
 0x5a2   : > { %2373 = vst.msk [vmem:[#allocation3 + $0xb8] sm:$0xff] %vm293_vm2, %v2340_v4 }
 0x5a9   : > { %v3244_v10 = vld [vmem:[#allocation3 + $0xb8] sm:$0xff] }
 0x5aa   : > { %4628 = vrcp.f32 %v3244_v10  ;;  %v3586_v48 = vand.u32 2147483648, %v3244_v10  ;;  %v3584_v61 = vand.u32 2147483647, %v3244_v10  ;;  %vm3580_vm12 = vweird.f32 %v3244_v10 }
 0x5ab   : > { %4630 = vrcp.f32 %v6807_v32 }
 0x5ac   : > { %4632 = vrcp.f32 %v6814_v5  ;;  %v3587_v57 = vor.u32 1.1754944e-38, %v3586_v48  ;;  %vm3585_vm14 = vcmp.eq.f32.partialorder %v3584_v61, 8.507059e+37 }
 0x5ad   : > { %4634 = vrcp.f32 %v6824_v54 }
 0x5ae   : > { %4636 = vrcp.f32 %v6826_v2 }
 0x5af   : > { %4638 = vrcp.f32 %v6833_v45 }
 0x5b0   : > { %v4629_v6 = vpop.eup %4628  ;;  %4640 = vrcp.f32 %v6839_v47 }
 0x5b1   : > { %v3806_v36 = vpop.permute.xlu0 %3805  ;;  %v3576_v14 = vmul.f32 %v4629_v6, %v3244_v10  ;;  %2305 = vadd.xlane.f32.xlu1 %v2304_v17  ;;  %v4631_v51 = vpop.eup %4630  ;;  %vm3581_vm11 = vweird.f32 %v4629_v6  ;;  %4642 = vrcp.f32 %v6851_v16 }
 0x5b2   : > { %v3907_v0 = vmul.f32 %v3806_v36, %v3715_v20  ;;  %v3436_v22 = vmul.f32 %v4631_v51, %v6807_v32  ;;  %vm3582_vm13 = vmor %vm3580_vm12, %vm3581_vm11  ;;  %v4633_v34 = vpop.eup %4632  ;;  %vm3441_vm15 = vweird.f32 %v4631_v51  ;;  %v3486_v32 = vand.u32 2147483647, %v6814_v5 }
 0x5b3   : > { %v3577_v7 = vsub.f32 1.0, %v3576_v14  ;;  %v3478_v58 = vmul.f32 %v4633_v34, %v6814_v5  ;;  %v6835_v1 = vpop.eup %4634  ;;  %vm3442_vm3 = vmor %vm3440_vm1, %vm3441_vm15  ;;  %vm3483_vm5 = vweird.f32 %v4633_v34  ;;  %4644 = vrcp.f32 %v6856_v62  ;;  %v6872_v5 = vld [vmem:[#allocation3 + $0xe0] sm:$0xff] }
 0x5b4   : > { %3939 = vst.msk [vmem:[%s6584_s29 + $0x70] sm:$0xff] %vm358_vm0, %v3907_v0  ;;  %v2281_v30 = vpop.xlane.xlu2 %2280  ;;  %v3437_v31 = vsub.f32 1.0, %v3436_v22  ;;  %v6841_v55 = vpop.eup %4636  ;;  %v3520_v13 = vmul.f32 %v6835_v1, %v6824_v54  ;;  %vm3484_vm7 = vmor %vm3482_vm6, %vm3483_vm5  ;;  %v3489_v0 = vor.u32 1.1754944e-38, %v3488_v27  ;;  %vm3487_vm8 = vcmp.eq.f32.partialorder %v3486_v32, 8.507059e+37 }
 0x5b5   : > { %v3578_v44 = vmul.f32 %v4629_v6, %v3577_v7  ;;  %v2341_v15 = vadd.f32 %v2281_v30, %v2149_v60  ;;  %v3479_v33 = vsub.f32 1.0, %v3478_v58  ;;  %v3464_v63 = vmul.f32 %v6841_v55, %v6826_v2  ;;  %v6853_v9 = vpop.eup %4638 }
 0x5b6   : > { %v3771_v29 = vpop.permute.xlu1 %3770  ;;  %v3438_v41 = vmul.f32 %v4631_v51, %v3437_v31  ;;  %v3521_v43 = vsub.f32 1.0, %v3520_v13  ;;  %v6858_v10 = vpop.eup %4640  ;;  %v3562_v36 = vmul.f32 %v6853_v9, %v6833_v45  ;;  %vm3525_vm9 = vweird.f32 %v6835_v1 }
 0x5b7   : > { %v3579_v50 = vadd.f32 %v4629_v6, %v3578_v44  ;;  %2374 = vst.msk [vmem:[#allocation3 + $0xc0] sm:$0xff] %vm293_vm2, %v2341_v15  ;;  %v3900_v49 = vmul.f32 %v3771_v29, %v3708_v46  ;;  %v3480_v19 = vmul.f32 %v4633_v34, %v3479_v33  ;;  %v3465_v4 = vsub.f32 1.0, %v3464_v63 }
 0x5b8   : > { %v3439_v37 = vadd.f32 %v4631_v51, %v3438_v41  ;;  %v3522_v20 = vmul.f32 %v6835_v1, %v3521_v43  ;;  %v3506_v17 = vmul.f32 %v6858_v10, %v6839_v47  ;;  %v3563_v7 = vsub.f32 1.0, %v3562_v36 }
 0x5b9   : > { %v3821_v23 = vpop.permute.xlu0 %3820  ;;  %v3583_v8 = vsel %vm3582_vm13, %v4629_v6, %v3579_v50  ;;  %3932 = vst.msk [vmem:[%s6584_s29 + $0x38] sm:$0xff] %vm358_vm0, %v3900_v49  ;;  %v3481_v56 = vadd.f32 %v4633_v34, %v3480_v19  ;;  %v3466_v6 = vmul.f32 %v6841_v55, %v3465_v4  ;;  %v3530_v60 = vand.u32 2147483648, %v6824_v54 }
 0x5ba   : > { %v3910_v39 = vmul.f32 %v3821_v23, %v3718_v40  ;;  %v3588_v26 = vsel %vm3585_vm14, %v3587_v57, %v3583_v8  ;;  %v3443_v21 = vsel %vm3442_vm3, %v4631_v51, %v3439_v37  ;;  %v3523_v14 = vadd.f32 %v6835_v1, %v3522_v20  ;;  %v6874_v51 = vpop.eup %4642 }
 0x5bb   : > { %3850 = vperm.xlu0 %4274, %v3588_v26   ;;  %v3485_v18 = vsel %vm3484_vm7, %v4633_v34, %v3481_v56  ;;  %v3467_v48 = vadd.f32 %v6841_v55, %v3466_v6  ;;  %vm3469_vm10 = vweird.f32 %v6841_v55  ;;  %v3507_v30 = vsub.f32 1.0, %v3506_v17  ;;  %v6881_v61 = vpop.eup %4644 }
 0x5bc   : > { %3942 = vst.msk [vmem:[%s6584_s29 + $0x88] sm:$0xff] %vm358_vm0, %v3910_v39  ;;  %v3781_v53 = vpop.permute.xlu2 %3780  ;;  %v3490_v52 = vsel %vm3487_vm8, %v3489_v0, %v3485_v18  ;;  %vm3524_vm11 = vweird.f32 %v6824_v54  ;;  %v3528_v15 = vand.u32 2147483647, %v6824_v54  ;;  %v3474_v40 = vand.u32 2147483648, %v6826_v2 }
 0x5bd   : > { %v3902_v35 = vmul.f32 %v3781_v53, %v3710_v11  ;;  %vm6886_vm12 = vmor %vm3524_vm11, %vm3525_vm9  ;;  %vm3468_vm13 = vweird.f32 %v6826_v2  ;;  %v3472_v39 = vand.u32 2147483647, %v6826_v2  ;;  %4646 = vrcp.f32 %v6872_v5  ;;  %v6906_v53 = vld [vmem:[#allocation3 + $0xf8] sm:$0xff] }
 0x5be   : > { %v6879_v44 = vld [vmem:[#allocation3 + $0xc0] sm:$0xff]  ;;  %v3527_v46 = vsel %vm6886_vm12, %v6835_v1, %v3523_v14  ;;  %vm3470_vm14 = vmor %vm3468_vm13, %vm3469_vm10  ;;  %v3564_v29 = vmul.f32 %v6853_v9, %v3563_v7  ;;  %v3604_v50 = vmul.f32 %v6874_v51, %v6851_v16  ;;  %v3531_v22 = vor.u32 1.1754944e-38, %v3530_v60 }
 0x5bf   : > { %3934 = vst.msk [vmem:[%s6584_s29 + $0x48] sm:$0xff] %vm358_vm0, %v3902_v35  ;;  %4648 = vrcp.f32 %v6879_v44  ;;  %v3471_v49 = vsel %vm3470_vm14, %v6841_v55, %v3467_v48  ;;  %v3508_v57 = vmul.f32 %v6858_v10, %v3507_v30  ;;  %v3548_v8 = vmul.f32 %v6881_v61, %v6856_v62 }
 0x5c0   : > { %vm3529_vm15 = vcmp.eq.f32.partialorder %v3528_v15, 8.507059e+37  ;;  %v3475_v26 = vor.u32 1.1754944e-38, %v3474_v40  ;;  %vm3473_vm1 = vcmp.eq.f32.partialorder %v3472_v39, 8.507059e+37  ;;  %v3565_v34 = vadd.f32 %v6853_v9, %v3564_v29 }
 0x5c1   : > { %v3532_v31 = vsel %vm3529_vm15, %v3531_v22, %v3527_v46  ;;  %vm3567_vm3 = vweird.f32 %v6853_v9  ;;  %v3605_v2 = vsub.f32 1.0, %v3604_v50  ;;  %v3572_v35 = vand.u32 2147483648, %v6833_v45 }
 0x5c2   : > { %v3476_v54 = vsel %vm3473_vm1, %v3475_v26, %v3471_v49  ;;  %v3509_v41 = vadd.f32 %v6858_v10, %v3508_v57  ;;  %v3549_v58 = vsub.f32 1.0, %v3548_v8  ;;  %vm3566_vm5 = vweird.f32 %v6833_v45 }
 0x5c3   : > { %2310 = vadd.xlane.f32.xlu2 %v6613_v28  ;;  %v3447_v28 = vor.u32 1.1754944e-38, %v3446_v42  ;;  %v6908_v11 = vpop.eup %4646  ;;  %v3570_v33 = vand.u32 2147483647, %v6833_v45  ;;  %v3516_v1 = vand.u32 2147483648, %v6839_v47  ;;  %v2119_v42 = vld [vmem:[#allocation3 + $0xd0] sm:$0xff]  ;;  %vm6918_vm6 = vmor %vm3566_vm5, %vm3567_vm3  ;;  %vm3510_vm7 = vweird.f32 %v6839_v47 }
 0x5c4   : > { %4650 = vrcp.f32 %v6906_v53  ;;  %v3606_v45 = vmul.f32 %v6874_v51, %v3605_v2  ;;  %v3646_v13 = vmul.f32 %v6908_v11, %v6872_v5  ;;  %v3550_v63 = vmul.f32 %v6881_v61, %v3549_v58 }
 0x5c5   : > { %v3448_v12 = vsel %vm3445_vm4, %v3447_v28, %v3443_v21  ;;  %vm3511_vm4 = vweird.f32 %v6858_v10  ;;  %v6913_v37 = vpop.eup %4648  ;;  %v3569_v21 = vsel %vm6918_vm6, %v6853_v9, %v3565_v34  ;;  %v3573_v28 = vor.u32 1.1754944e-38, %v3572_v35 }
 0x5c6   : > { %vm6928_vm8 = vmor %vm3510_vm7, %vm3511_vm4  ;;  %v2151_v56 = vmul.f32 %v6370_v38, %v2119_v42  ;;  %vm3571_vm9 = vcmp.eq.f32.partialorder %v3570_v33, 8.507059e+37  ;;  %v3517_v43 = vor.u32 1.1754944e-38, %v3516_v1  ;;  %vm3515_vm10 = vcmp.eq.f32.partialorder %v3514_v25, 8.507059e+37 }
 0x5c7   : > { %v3513_v47 = vsel %vm6928_vm8, %v6858_v10, %v3509_v41  ;;  %v3574_v27 = vsel %vm3571_vm9, %v3573_v28, %v3569_v21  ;;  %vm3609_vm11 = vweird.f32 %v6874_v51  ;;  %v3607_v18 = vadd.f32 %v6874_v51, %v3606_v45  ;;  %v2120_v41 = vld [vmem:[#allocation3 + $0xd8] sm:$0xff] }
 0x5c8   : > { %v3518_v32 = vsel %vm3515_vm10, %v3517_v43, %v3513_v47  ;;  %v3647_v10 = vsub.f32 1.0, %v3646_v13  ;;  %v3614_v36 = vand.u32 2147483648, %v6851_v16  ;;  %v3551_v38 = vadd.f32 %v6881_v61, %v3550_v63 }
 0x5c9   : > { %vm3553_vm12 = vweird.f32 %v6881_v61  ;;  %vm3608_vm13 = vweird.f32 %v6851_v16  ;;  %v3612_v6 = vand.u32 2147483647, %v6851_v16  ;;  %v3558_v17 = vand.u32 2147483648, %v6856_v62 }
 0x5ca   : > { %3800 = vperm.xlu1 %4275, %v3448_v12   ;;  %v3590_v12 = vmul.f32 %v6913_v37, %v6879_v44  ;;  %v6944_v20 = vpop.eup %4650  ;;  %vm3610_vm14 = vmor %vm3608_vm13, %vm3609_vm11  ;;  %vm3552_vm15 = vweird.f32 %v6856_v62  ;;  %v3648_v60 = vmul.f32 %v6908_v11, %v3647_v10  ;;  %v3615_v48 = vor.u32 1.1754944e-38, %v3614_v36 }
 0x5cb   : > { %v3611_v14 = vsel %vm3610_vm14, %v6874_v51, %v3607_v18  ;;  %vm6958_vm1 = vmor %vm3552_vm15, %vm3553_vm12  ;;  %v3688_v16 = vmul.f32 %v6944_v20, %v6906_v53  ;;  %vm3613_vm3 = vcmp.eq.f32.partialorder %v3612_v6, 8.507059e+37  ;;  %v3721_v51 = vld [vmem:[#allocation4 + $0xa0] sm:$0xff]  ;;  %vm3651_vm5 = vweird.f32 %v6908_v11 }
 0x5cc   : > { %v3591_v0 = vsub.f32 1.0, %v3590_v12  ;;  %v3555_v30 = vsel %vm6958_vm1, %v6881_v61, %v3551_v38  ;;  %v3616_v23 = vsel %vm3613_vm3, %v3615_v48, %v3611_v14  ;;  %v3649_v29 = vadd.f32 %v6908_v11, %v3648_v60 }
 0x5cd   : > { %v3689_v50 = vsub.f32 1.0, %v3688_v16  ;;  %v3656_v61 = vand.u32 2147483648, %v6872_v5  ;;  %vm3595_vm6 = vweird.f32 %v6913_v37  ;;  %vm3650_vm7 = vweird.f32 %v6872_v5  ;;  %v2122_v16 = vld [vmem:[#allocation3 + $0xe8] sm:$0xff] }
 0x5ce   : > { %v3592_v15 = vmul.f32 %v6913_v37, %v3591_v0  ;;  %v3654_v57 = vand.u32 2147483647, %v6872_v5  ;;  %v3600_v8 = vand.u32 2147483648, %v6879_v44  ;;  %vm3652_vm8 = vmor %vm3650_vm7, %vm3651_vm5  ;;  %vm3594_vm9 = vweird.f32 %v6879_v44 }
 0x5cf   : > { %v3598_v26 = vand.u32 2147483647, %v6879_v44  ;;  %vm3596_vm10 = vmor %vm3594_vm9, %vm3595_vm6  ;;  %v3657_v34 = vor.u32 1.1754944e-38, %v3656_v61  ;;  %vm3693_vm13 = vweird.f32 %v6944_v20  ;;  %v3698_v44 = vand.u32 2147483648, %v6906_v53 }
 0x5d0   : > { %v3593_v22 = vadd.f32 %v6913_v37, %v3592_v15  ;;  %vm3655_vm11 = vcmp.eq.f32.partialorder %v3654_v57, 8.507059e+37  ;;  %v3601_v5 = vor.u32 1.1754944e-38, %v3600_v8  ;;  %v2152_v42 = vmul.f32 %v6417_v24, %v2120_v41  ;;  %v3711_v24 = vld [vmem:[#allocation4 + $0x50] sm:$0xff] }
 0x5d1   : > { %vm3599_vm12 = vcmp.eq.f32.partialorder %v3598_v26, 8.507059e+37  ;;  %vm3692_vm14 = vweird.f32 %v6906_v53  ;;  %v3699_v13 = vor.u32 1.1754944e-38, %v3698_v44  ;;  %v2154_v48 = vmul.f32 %v6440_v3, %v2122_v16  ;;  %v3714_v26 = vld [vmem:[#allocation4 + $0x68] sm:$0xff]  ;;  %v3728_v16 = vld [vmem:[#allocation4 + $0xd8] sm:$0xff] }
 0x5d2   : > { %3815 = vperm.xlu1 %4275, %v3490_v52   ;;  %v3556_v52 = vand.u32 2147483647, %v6856_v62  ;;  %v3559_v62 = vor.u32 1.1754944e-38, %v3558_v17  ;;  %v3597_v2 = vsel %vm3596_vm10, %v6913_v37, %v3593_v22  ;;  %v3696_v37 = vand.u32 2147483647, %v6906_v53  ;;  %vm3694_vm15 = vmor %vm3692_vm14, %vm3693_vm13 }
 0x5d3   : > { %v3602_v33 = vsel %vm3599_vm12, %v3601_v5, %v3597_v2  ;;  %v3716_v5 = vld [vmem:[#allocation4 + $0x78] sm:$0xff] }
 0x5d4   : > { %vm3557_vm4 = vcmp.eq.f32.partialorder %v3556_v52, 8.507059e+37  ;;  %vm3697_vm3 = vcmp.eq.f32.partialorder %v3696_v37, 8.507059e+37  ;;  %v3719_v37 = vld [vmem:[#allocation4 + $0x90] sm:$0xff] }
 0x5d5   : > { %v3560_v46 = vsel %vm3557_vm4, %v3559_v62, %v3555_v30  ;;  %v3724_v62 = vld [vmem:[#allocation4 + $0xb8] sm:$0xff] }
 0x5da   : > { %3830 = vperm.xlu1 %4275, %v3532_v31   ;;  %v3653_v31 = vsel %vm3652_vm8, %v6908_v11, %v3649_v29 }
 0x5db   : > { %3810 = vperm.xlu2 %4273, %v3476_v54   ;;  %v3690_v54 = vmul.f32 %v6944_v20, %v3689_v50  ;;  %v3658_v35 = vsel %vm3655_vm11, %v3657_v34, %v3653_v31 }
 0x5dd   : > { %v3691_v1 = vadd.f32 %v6944_v20, %v3690_v54 }
 0x5df   : > { %v3695_v19 = vsel %vm3694_vm15, %v6944_v20, %v3691_v1  ;;  %v3717_v1 = vld [vmem:[#allocation4 + $0x80] sm:$0xff] }
 0x5e0   : > { %v3700_v12 = vsel %vm3697_vm3, %v3699_v13, %v3695_v19  ;;  %v3720_v13 = vld [vmem:[#allocation4 + $0x98] sm:$0xff] }
 0x5e1   : > { %v2291_v9 = vpop.xlane.xlu1 %2290 }
 0x5e2   : > { %v2343_v4 = vadd.f32 %v2291_v9, %v2151_v56  ;;  %3845 = vperm.xlu1 %4275, %v3574_v27  }
 0x5e3   : > { %3825 = vperm.xlu2 %4273, %v3518_v32   ;;  %v3713_v32 = vld [vmem:[#allocation4 + $0x60] sm:$0xff] }
 0x5e4   : > { %2376 = vst.msk [vmem:[#allocation3 + $0xd0] sm:$0xff] %vm293_vm2, %v2343_v4 }
 0x5e9   : > { %v3836_v40 = vpop.permute.xlu0 %3835 }
 0x5ea   : > { %v3913_v39 = vmul.f32 %v3836_v40, %v3721_v51  ;;  %3860 = vperm.xlu1 %4275, %v3616_v23  }
 0x5eb   : > { %3840 = vperm.xlu2 %4273, %v3560_v46   ;;  %v3247_v49 = vld [vmem:[#allocation3 + $0xd0] sm:$0xff] }
 0x5ec   : > { %3945 = vst.msk [vmem:[%s6584_s29 + $0xa0] sm:$0xff] %vm358_vm0, %v3913_v39  ;;  %4652 = vrcp.f32 %v3247_v49  ;;  %v3628_v45 = vand.u32 2147483648, %v3247_v49  ;;  %v3626_v47 = vand.u32 2147483647, %v3247_v49  ;;  %vm3622_vm4 = vweird.f32 %v3247_v49  ;;  %v2123_v39 = vld [vmem:[#allocation3 + $0xf0] sm:$0xff] }
 0x5ed   : > { %v2155_v29 = vmul.f32 %v6505_v59, %v2123_v39 }
 0x5ee   : > { %v3629_v43 = vor.u32 1.1754944e-38, %v3628_v45  ;;  %vm3627_vm6 = vcmp.eq.f32.partialorder %v3626_v47, 8.507059e+37 }
 0x5f2   : > { %v4653_v58 = vpop.eup %4652  ;;  %3875 = vperm.xlu1 %4275, %v3658_v35  }
 0x5f3   : > { %3855 = vperm.xlu2 %4273, %v3602_v33   ;;  %v3618_v11 = vmul.f32 %v4653_v58, %v3247_v49  ;;  %vm3623_vm1 = vweird.f32 %v4653_v58 }
 0x5f4   : > { %vm3624_vm5 = vmor %vm3622_vm4, %vm3623_vm1 }
 0x5f5   : > { %v2296_v55 = vpop.xlane.xlu2 %2295  ;;  %v3619_v25 = vsub.f32 1.0, %v3618_v11 }
 0x5f6   : > { %v2344_v21 = vadd.f32 %v2296_v55, %v2152_v42 }
 0x5f7   : > { %v3620_v28 = vmul.f32 %v4653_v58, %v3619_v25 }
 0x5f8   : > { %2377 = vst.msk [vmem:[#allocation3 + $0xd8] sm:$0xff] %vm293_vm2, %v2344_v21 }
 0x5f9   : > { %v3786_v63 = vpop.permute.xlu1 %3785  ;;  %v3621_v53 = vadd.f32 %v4653_v58, %v3620_v28 }
 0x5fa   : > { %v3903_v56 = vmul.f32 %v3786_v63, %v3711_v24  ;;  %3890 = vperm.xlu1 %4275, %v3700_v12  }
 0x5fb   : > { %v3625_v9 = vsel %vm3624_vm5, %v4653_v58, %v3621_v53  ;;  %v3722_v53 = vld [vmem:[#allocation4 + $0xa8] sm:$0xff] }
 0x5fc   : > { %3935 = vst.msk [vmem:[%s6584_s29 + $0x50] sm:$0xff] %vm358_vm0, %v3903_v56  ;;  %v3630_v27 = vsel %vm3627_vm6, %v3629_v43, %v3625_v9 }
 0x5fd   : > { %3865 = vperm.xlu0 %4274, %v3630_v27   ;;  %v3796_v4 = vpop.permute.xlu2 %3795 }
 0x5fe   : > { %v3905_v18 = vmul.f32 %v3796_v4, %v3713_v32  ;;  %v3723_v32 = vld [vmem:[#allocation4 + $0xb0] sm:$0xff] }
 0x5ff   : > { %v3248_v10 = vld [vmem:[#allocation3 + $0xd8] sm:$0xff] }
 0x600   : > { %3937 = vst.msk [vmem:[%s6584_s29 + $0x60] sm:$0xff] %vm358_vm0, %v3905_v18  ;;  %4654 = vrcp.f32 %v3248_v10  ;;  %v3642_v0 = vand.u32 2147483648, %v3248_v10  ;;  %v3640_v17 = vand.u32 2147483647, %v3248_v10  ;;  %vm3636_vm8 = vweird.f32 %v3248_v10 }
 0x602   : > { %v3643_v14 = vor.u32 1.1754944e-38, %v3642_v0  ;;  %vm3641_vm10 = vcmp.eq.f32.partialorder %v3640_v17, 8.507059e+37  ;;  %v3726_v0 = vld [vmem:[#allocation4 + $0xc8] sm:$0xff] }
 0x606   : > { %v4655_v20 = vpop.eup %4654 }
 0x607   : > { %v3632_v36 = vmul.f32 %v4655_v20, %v3248_v10  ;;  %vm3637_vm7 = vweird.f32 %v4655_v20 }
 0x608   : > { %vm3638_vm9 = vmor %vm3636_vm8, %vm3637_vm7 }
 0x609   : > { %v3633_v38 = vsub.f32 1.0, %v3632_v36  ;;  %v3725_v36 = vld [vmem:[#allocation4 + $0xc0] sm:$0xff] }
 0x60b   : > { %v3634_v6 = vmul.f32 %v4655_v20, %v3633_v38 }
 0x60d   : > { %v3635_v52 = vadd.f32 %v4655_v20, %v3634_v6 }
 0x60f   : > { %v3639_v7 = vsel %vm3638_vm9, %v4655_v20, %v3635_v52  ;;  %v3729_v52 = vld [vmem:[#allocation4 + $0xe0] sm:$0xff] }
 0x610   : > { %v3644_v60 = vsel %vm3641_vm10, %v3643_v14, %v3639_v7 }
 0x611   : > { %3870 = vperm.xlu2 %4273, %v3644_v60  }
 0x624   : > { %v2306_v30 = vpop.xlane.xlu1 %2305 }
 0x625   : > { %v2346_v15 = vadd.f32 %v2306_v30, %v2154_v48  ;;  %v3732_v30 = vld [vmem:[#allocation4 + $0xf8] sm:$0xff] }
 0x627   : > { %2379 = vst.msk [vmem:[#allocation3 + $0xe8] sm:$0xff] %vm293_vm2, %v2346_v15 }
 0x62d   : > { %v3851_v51 = vpop.permute.xlu0 %3850 }
 0x62e   : > { %v3916_v40 = vmul.f32 %v3851_v51, %v3724_v62  ;;  %v3250_v23 = vld [vmem:[#allocation3 + $0xe8] sm:$0xff]  ;;  %v3727_v51 = vld [vmem:[#allocation4 + $0xd0] sm:$0xff] }
 0x62f   : > { %4656 = vrcp.f32 %v3250_v23  ;;  %v3670_v3 = vand.u32 2147483648, %v3250_v23  ;;  %v3668_v8 = vand.u32 2147483647, %v3250_v23  ;;  %vm3664_vm12 = vweird.f32 %v3250_v23 }
 0x630   : > { %3948 = vst.msk [vmem:[%s6584_s29 + $0xb8] sm:$0xff] %vm358_vm0, %v3916_v40 }
 0x631   : > { %v3671_v2 = vor.u32 1.1754944e-38, %v3670_v3  ;;  %vm3669_vm14 = vcmp.eq.f32.partialorder %v3668_v8, 8.507059e+37 }
 0x635   : > { %v4657_v46 = vpop.eup %4656 }
 0x636   : > { %v2311_v50 = vpop.xlane.xlu2 %2310  ;;  %v3660_v61 = vmul.f32 %v4657_v46, %v3250_v23  ;;  %vm3665_vm11 = vweird.f32 %v4657_v46 }
 0x637   : > { %v2347_v22 = vadd.f32 %v2311_v50, %v2155_v29  ;;  %vm3666_vm13 = vmor %vm3664_vm12, %vm3665_vm11  ;;  %v3730_v50 = vld [vmem:[#allocation4 + $0xe8] sm:$0xff] }
 0x638   : > { %v3661_v49 = vsub.f32 1.0, %v3660_v61 }
 0x639   : > { %2380 = vst.msk [vmem:[#allocation3 + $0xf0] sm:$0xff] %vm293_vm2, %v2347_v22 }
 0x63a   : > { %v3662_v57 = vmul.f32 %v4657_v46, %v3661_v49 }
 0x63c   : > { %v3801_v31 = vpop.permute.xlu1 %3800  ;;  %v3663_v54 = vadd.f32 %v4657_v46, %v3662_v57 }
 0x63d   : > { %v3906_v34 = vmul.f32 %v3801_v31, %v3714_v26 }
 0x63e   : > { %v3811_v59 = vpop.permute.xlu2 %3810  ;;  %v3667_v35 = vsel %vm3666_vm13, %v4657_v46, %v3663_v54  ;;  %v3731_v46 = vld [vmem:[#allocation4 + $0xf0] sm:$0xff] }
 0x63f   : > { %3938 = vst.msk [vmem:[%s6584_s29 + $0x68] sm:$0xff] %vm358_vm0, %v3906_v34  ;;  %v3908_v41 = vmul.f32 %v3811_v59, %v3716_v5  ;;  %v3672_v58 = vsel %vm3669_vm14, %v3671_v2, %v3667_v35 }
 0x640   : > { %3880 = vperm.xlu0 %4274, %v3672_v58   ;;  %v3251_v33 = vld [vmem:[#allocation3 + $0xf0] sm:$0xff] }
 0x641   : > { %3940 = vst.msk [vmem:[%s6584_s29 + $0x78] sm:$0xff] %vm358_vm0, %v3908_v41  ;;  %4658 = vrcp.f32 %v3251_v33  ;;  %v3684_v45 = vand.u32 2147483648, %v3251_v33  ;;  %v3682_v24 = vand.u32 2147483647, %v3251_v33  ;;  %vm3678_vm15 = vweird.f32 %v3251_v33 }
 0x643   : > { %v3685_v9 = vor.u32 1.1754944e-38, %v3684_v45  ;;  %vm3683_vm3 = vcmp.eq.f32.partialorder %v3682_v24, 8.507059e+37 }
 0x644   : > { %v3816_v44 = vpop.permute.xlu1 %3815 }
 0x645   : > { %v3909_v11 = vmul.f32 %v3816_v44, %v3717_v1 }
 0x646   : > { %v3826_v42 = vpop.permute.xlu2 %3825 }
 0x647   : > { %v4659_v55 = vpop.eup %4658  ;;  %3941 = vst.msk [vmem:[%s6584_s29 + $0x80] sm:$0xff] %vm358_vm0, %v3909_v11  ;;  %v3911_v25 = vmul.f32 %v3826_v42, %v3719_v37 }
 0x648   : > { %v3674_v21 = vmul.f32 %v4659_v55, %v3251_v33  ;;  %vm3679_vm2 = vweird.f32 %v4659_v55 }
 0x649   : > { %3943 = vst.msk [vmem:[%s6584_s29 + $0x90] sm:$0xff] %vm358_vm0, %v3911_v25  ;;  %vm3680_vm1 = vmor %vm3678_vm15, %vm3679_vm2 }
 0x64a   : > { %v3675_v19 = vsub.f32 1.0, %v3674_v21 }
 0x64c   : > { %v3831_v28 = vpop.permute.xlu1 %3830  ;;  %v3676_v47 = vmul.f32 %v4659_v55, %v3675_v19 }
 0x64d   : > { %v3912_v63 = vmul.f32 %v3831_v28, %v3720_v13 }
 0x64e   : > { %v3841_v12 = vpop.permute.xlu2 %3840  ;;  %v3677_v56 = vadd.f32 %v4659_v55, %v3676_v47 }
 0x64f   : > { %3944 = vst.msk [vmem:[%s6584_s29 + $0x98] sm:$0xff] %vm358_vm0, %v3912_v63  ;;  %v3914_v43 = vmul.f32 %v3841_v12, %v3722_v53 }
 0x650   : > { %v3681_v27 = vsel %vm3680_vm1, %v4659_v55, %v3677_v56 }
 0x651   : > { %3946 = vst.msk [vmem:[%s6584_s29 + $0xa8] sm:$0xff] %vm358_vm0, %v3914_v43  ;;  %v3686_v4 = vsel %vm3683_vm3, %v3685_v9, %v3681_v27 }
 0x652   : > { %3885 = vperm.xlu2 %4273, %v3686_v4  }
 0x654   : > { %v3846_v18 = vpop.permute.xlu1 %3845 }
 0x655   : > { %v3915_v10 = vmul.f32 %v3846_v18, %v3723_v32 }
 0x656   : > { %v3856_v20 = vpop.permute.xlu2 %3855 }
 0x657   : > { %3947 = vst.msk [vmem:[%s6584_s29 + $0xb0] sm:$0xff] %vm358_vm0, %v3915_v10  ;;  %v3917_v38 = vmul.f32 %v3856_v20, %v3725_v36 }
 0x659   : > { %3949 = vst.msk [vmem:[%s6584_s29 + $0xc0] sm:$0xff] %vm358_vm0, %v3917_v38 }
 0x65c   : > { %v3861_v6 = vpop.permute.xlu1 %3860 }
 0x65d   : > { %v3918_v17 = vmul.f32 %v3861_v6, %v3726_v0 }
 0x65f   : > { %3950 = vst.msk [vmem:[%s6584_s29 + $0xc8] sm:$0xff] %vm358_vm0, %v3918_v17 }
 0x664   : > { %v3876_v14 = vpop.permute.xlu1 %3875 }
 0x665   : > { %v3921_v7 = vmul.f32 %v3876_v14, %v3729_v52 }
 0x667   : > { %3953 = vst.msk [vmem:[%s6584_s29 + $0xe0] sm:$0xff] %vm358_vm0, %v3921_v7 }
 0x66b   : > { %v3871_v60 = vpop.permute.xlu2 %3870 }
 0x66c   : > { %v3920_v48 = vmul.f32 %v3871_v60, %v3728_v16  ;;  %v3891_v15 = vpop.permute.xlu1 %3890 }
 0x66d   : > { %v3924_v62 = vmul.f32 %v3891_v15, %v3732_v30 }
 0x66e   : > { %3952 = vst.msk [vmem:[%s6584_s29 + $0xd8] sm:$0xff] %vm358_vm0, %v3920_v48 }
 0x66f   : > { %3956 = vst.msk [vmem:[%s6584_s29 + $0xf8] sm:$0xff] %vm358_vm0, %v3924_v62  ;;  %v3866_v40 = vpop.permute.xlu0 %3865 }
 0x670   : > { %v3919_v23 = vmul.f32 %v3866_v40, %v3727_v51 }
 0x672   : > { %3951 = vst.msk [vmem:[%s6584_s29 + $0xd0] sm:$0xff] %vm358_vm0, %v3919_v23 }
 0x6ac   : > { %v3886_v39 = vpop.permute.xlu2 %3885 }
 0x6ad   : > { %v3923_v29 = vmul.f32 %v3886_v39, %v3731_v46 }
 0x6af   : > { %3955 = vst.msk [vmem:[%s6584_s29 + $0xf0] sm:$0xff] %vm358_vm0, %v3923_v29 }
 0x6b2   : > { %v3881_v61 = vpop.permute.xlu0 %3880 }
 0x6b3   : > { %v3922_v22 = vmul.f32 %v3881_v61, %v3730_v50 }
 0x6b5   : > { %3954 = vst.msk [vmem:[%s6584_s29 + $0xe8] sm:$0xff] %vm358_vm0, %v3922_v22 }
 0x6b6 PF: > { %s13_s14 = sadd.s32 1, %s4682_s14   ;;  %s7492_s12 = smov %s4678_s13 }
 0x6b7   : > { %p10_p5 = scmp.ge.s32.totalorder %s13_s14, 4   ;;  %s7493_s13 = smov %s7495_s15 }
 0x6b9   :  { %12 = sbr.rel (!%p10_p5) target bundleno = 2 (0x2), region = 76 }

</bundles_post_ra>
